<compile_context>
chip_gen: v7x
topology: tpu7x:2x2x1
jax: 0.10.0
libtpu: 0.0.40
codegen_flags: <defaults>
</compile_context>

<pallas_src>
import functools

import jax
import jax.numpy as jnp
from jax.experimental import pallas as pl
from jax.experimental.pallas import tpu as pltpu


# ----------------------------- Pallas kernels ------------------------------ #

def _tower_kernel(xm_ref, win_ref, bin_ref, w1_ref, b1_ref, w2_ref, b2_ref,
                  pvw_ref, pvb_ref, pv_ref, act_ref, pat_ref, *, rows, W, ch, k_in):
    """Input conv (step 0) + one residual block per grid step + fused 1x1 heads conv
    (last step).  Activation (rows, ch) lives in `act_ref` across grid steps."""
    i = pl.program_id(1)
    nblk = pl.num_programs(1)

    def conv3x3(x2d, w_ref_, bias):
        # 3x3 same-padding conv as ONE MXU matmul with K = 9*ch.  Taps are rolls of
        # the row-major activation; masks zero the taps that fall off the board
        # (zero-padding).  Rolls never leak across images because out-of-board taps
        # are exactly the masked ones (requires rows % (H*W) == 0 -- asserted host-side).
        for k in range(9):
            dy, dx = k // 3 - 1, k % 3 - 1
            off = dy * W + dx
            if off == 0:
                t = x2d
            else:
                t = (pltpu.roll(x2d, shift=(-off) % rows, axis=0)
                     * xm_ref[:, k_in + k:k_in + k + 1])
            pat_ref[:, k * ch:(k + 1) * ch] = t
        return jnp.dot(pat_ref[...].astype(jnp.bfloat16), w_ref_[...],
                       preferred_element_type=jnp.float32) + bias

    @pl.when(i == 0)            # start of a batch chunk: input conv (im2col cols) + ReLU
    def _():
        y0 = jnp.dot(xm_ref[:, 0:k_in].astype(jnp.bfloat16), win_ref[...],
                     preferred_element_type=jnp.float32) + bin_ref[...]
        act_ref[...] = jnp.maximum(y0, 0.0)

    x = act_ref[...]
    h = jnp.maximum(conv3x3(x, w1_ref, b1_ref[...]), 0.0)
    y = jnp.maximum(conv3x3(h, w2_ref, b2_ref[...]) + x, 0.0)
    act_ref[...] = y

    @pl.when(i == nblk - 1)     # only HBM write: fused policy(2)+value(1) 1x1 convs + ReLU
    def _():
        pv = jnp.dot(y.astype(jnp.bfloat16), pvw_ref[...],
                     preferred_element_type=jnp.float32) + pvb_ref[...]
        pv_ref[...] = jnp.maximum(pv, 0.0)


def _heads_kernel(pvt_ref, v01_ref, pfcb_ref, w1_ref, b1_ref, w2_ref, b2_ref,
                  pol_ref, val_ref):
    """Policy + value FC heads for the whole batch, all on the MXU."""
    p0 = pvt_ref[0].astype(jnp.bfloat16)          # (N, HW) policy channel 0
    p1 = pvt_ref[1].astype(jnp.bfloat16)          # (N, HW) policy channel 1
    v = pvt_ref[2].astype(jnp.bfloat16)           # (N, HW) value channel

    # policy FC: PyTorch's NCHW flatten handled by per-channel (HW, B2) weight slabs.
    logits = (jnp.dot(p0, v01_ref[0], preferred_element_type=jnp.float32)
              + jnp.dot(p1, v01_ref[1], preferred_element_type=jnp.float32)
              + pfcb_ref[...])                    # (N, B2)
    m = jnp.max(logits, axis=-1, keepdims=True)
    e = jnp.exp(logits - m)
    # exact reciprocal (off the critical path) so each policy row sums to 1.
    pol_ref[...] = e / jnp.sum(e, axis=-1, keepdims=True)

    # value head: FC1 + ReLU + FC2 + tanh
    h = jnp.maximum(jnp.dot(v, w1_ref[...], preferred_element_type=jnp.float32)
                    + b1_ref[...], 0.0)           # (N, 256)
    val = jnp.dot(h.astype(jnp.bfloat16), w2_ref[...],
                  preferred_element_type=jnp.float32) + b2_ref[...]
    val_ref[...] = jnp.tanh(val)                  # (N, 1)


# ------------------------------ JAX wrappers -------------------------------- #

def _tap_masks(H, W, reps):
    """(reps*H*W, 9) f32 mask: 1 where the 3x3 tap stays on the board."""
    hh = jnp.arange(H)[:, None]
    ww = jnp.arange(W)[None, :]
    cols = []
    for k in range(9):
        dy, dx = k // 3 - 1, k % 3 - 1
        valid = ((hh + dy >= 0) & (hh + dy < H) & (ww + dx >= 0) & (ww + dx < W))
        cols.append(valid.reshape(H * W).astype(jnp.float32))
    m = jnp.stack(cols, axis=-1)                  # (H*W, 9)
    return jnp.tile(m, (reps, 1))                 # (reps*H*W, 9)


def _num_chunks(N, HW, C):
    """Batch split: prefer >=2 chunks when the batch tiles cleanly (lets v7x shard the
    'parallel' axis across both TensorCores); grow the split until the per-chunk VMEM
    footprint (resident activation + patch scratch + lane-padded in/out blocks) fits a
    budget safe on v5e/v6e/v7x."""
    budget = 20 << 20
    def fits(nc):
        Mc = (N // nc) * HW
        if nc > 1 and Mc % 8:                     # (8,128) rule on partial blocks
            return False
        per_row = 4 * (C + 9 * C + 2 * 128 + 2 * 128)   # act + patches + 2x in + 2x out
        return Mc * per_row <= budget
    best = None
    for d in range(1, N + 1):
        if N % d:
            continue
        if fits(d):
            best = d
            if d >= 2:
                break
    return best if best is not None else 1


def _tower(x_nhwc, params):
    N, H, W, Cin = x_nhwc.shape
    C = params["bw1"].shape[-1]
    nb = params["bw1"].shape[0]
    HW = H * W
    M = N * HW
    K_in = 9 * Cin

    n_chunks = _num_chunks(N, HW, C)
    Mc = M // n_chunks
    assert Mc % HW == 0, "chunks must hold whole images (rolls must not cross images)"
    assert n_chunks == 1 or Mc % 8 == 0

    # Host-side prep: im2col of the 3-channel input (27 cols, zero-padded) + the 9
    # per-row tap masks for the block convs.  Both ride in ONE (M, 36) array; any
    # (M, <128) block pads to 128 lanes in VMEM anyway, so this adds no VMEM cost.
    xp = jnp.pad(x_nhwc, ((0, 0), (1, 1), (1, 1), (0, 0)))
    cols = [xp[:, ky:ky + H, kx:kx + W, :] for ky in range(3) for kx in range(3)]
    im2col = jnp.concatenate(cols, axis=-1).reshape(M, K_in)
    masks = _tap_masks(H, W, N)                           # (M, 9)
    fused = jnp.concatenate([im2col, masks], axis=-1)     # (M, K_in + 9)

    kern = functools.partial(_tower_kernel, rows=Mc, W=W, ch=C, k_in=K_in)
    flops = 2 * M * (K_in * C + nb * 2 * 9 * C * C + 3 * C)
    bytes_acc = 4 * M * (K_in + 9 + 3) + 2 * (K_in * C + nb * 18 * C * C + 3 * C) \
        + 4 * (C + nb * 2 * C + 3)

    # TODO(synk): at realistic widths (C>=128) bump the bw1/bw2 specs to
    # pipeline_mode=pl.Buffered(3) and switch the patch scratch to bf16.
    return pl.pallas_call(
        kern,
        out_shape=jax.ShapeDtypeStruct((M, 3), jnp.float32),
        grid=(n_chunks, nb),
        in_specs=[
            pl.BlockSpec((Mc, K_in + 9), lambda b, i: (b, 0)),        # im2col + masks
            pl.BlockSpec((K_in, C), lambda b, i: (0, 0)),             # input conv W (bf16)
            pl.BlockSpec((1, C), lambda b, i: (0, 0)),                # input conv bias
            pl.BlockSpec((None, 9 * C, C), lambda b, i: (i, 0, 0)),   # block conv1 W (bf16)
            pl.BlockSpec((None, 1, C), lambda b, i: (i, 0, 0)),       # block conv1 bias
            pl.BlockSpec((None, 9 * C, C), lambda b, i: (i, 0, 0)),   # block conv2 W (bf16)
            pl.BlockSpec((None, 1, C), lambda b, i: (i, 0, 0)),       # block conv2 bias
            pl.BlockSpec((C, 3), lambda b, i: (0, 0)),                # merged 1x1 heads W
            pl.BlockSpec((1, 3), lambda b, i: (0, 0)),                # merged 1x1 heads b
        ],
        out_specs=pl.BlockSpec((Mc, 3), lambda b, i: (b, 0)),
        scratch_shapes=[pltpu.VMEM((Mc, C), jnp.float32),             # resident activation
                        pltpu.VMEM((Mc, 9 * C), jnp.float32)],        # im2col patch buffer
        compiler_params=pltpu.CompilerParams(
            dimension_semantics=("parallel", "arbitrary"),
            vmem_limit_bytes=48 * 1024 * 1024),
        cost_estimate=pl.CostEstimate(flops=int(flops), transcendentals=0,
                                      bytes_accessed=int(bytes_acc)),
    )(fused, params["w_in"], params["b_in"],
      params["bw1"], params["bb1"], params["bw2"], params["bb2"],
      params["pv_w"], params["pv_b"])


def _heads(pv_flat, params, N, HW):
    B2 = HW
    # Tiny XLA-side transform between the two pallas_calls: only the 3-channel pv map
    # (M, 3) round-trips HBM, never the (M, C) feature map.
    pvt = jnp.transpose(pv_flat.reshape(N, HW, 3), (2, 0, 1))   # (3, N, HW)
    pol, val = pl.pallas_call(
        _heads_kernel,
        out_shape=(jax.ShapeDtypeStruct((N, B2), jnp.float32),
                   jax.ShapeDtypeStruct((N, 1), jnp.float32)),
    )(pvt, params["pfc_v"], params["pfc_b"],
      params["vfc1_w"], params["vfc1_b"], params["vfc2_w"], params["vfc2_b"])
    return pol, val


def gomoku_forward(x_nchw, params):
    x = jnp.transpose(x_nchw, (0, 2, 3, 1)).astype(jnp.float32)    # NCHW -> NHWC
    N, H, W, _ = x.shape
    pv = _tower(x, params)                                         # (N*H*W, 3)
    return _heads(pv, params, N, H * W)


# --------------------------- parameter setup ------------------------------- #

def _fold_bn(conv_b, gamma, beta, mean, var, eps=1e-5):
    scale = gamma / jnp.sqrt(var + eps)
    bias = beta + scale * (conv_b - mean)
    return scale, bias


def _conv_bn_params(key, cin, cout, ksize):
    ks = jax.random.split(key, 6)
    fan_in = cin * ksize * ksize
    w = jax.random.normal(ks[0], (cout, cin, ksize, ksize), jnp.float32) / jnp.sqrt(fan_in)
    b = 0.05 * jax.random.normal(ks[1], (cout,), jnp.float32)
    gamma = 1.0 + 0.1 * jax.random.normal(ks[2], (cout,), jnp.float32)
    beta = 0.1 * jax.random.normal(ks[3], (cout,), jnp.float32)
    mean = 0.1 * jax.random.normal(ks[4], (cout,), jnp.float32)
    var = 1.0 + 0.1 * jnp.abs(jax.random.normal(ks[5], (cout,), jnp.float32))
    scale, bias = _fold_bn(b, gamma, beta, mean, var)
    # torch (Cout, Cin, kh, kw) -> (kh*kw*Cin, Cout); BN scale folded into the weight.
    w_k = jnp.transpose(w, (2, 3, 1, 0)).reshape(ksize * ksize * cin, cout) * scale
    return w_k, bias.reshape(1, cout)


def _linear_params(key, in_f, out_f):
    k1, k2 = jax.random.split(key)
    w = jax.random.normal(k1, (out_f, in_f), jnp.float32) / jnp.sqrt(in_f)
    b = 0.05 * jax.random.normal(k2, (out_f,), jnp.float32)
    return w, b


def init_params(key, board_size, num_filters, num_blocks):
    assert num_blocks >= 1
    b2 = board_size * board_size
    C = num_filters
    bf16 = jnp.bfloat16
    keys = jax.random.split(key, 2 * num_blocks + 6)
    p = {}
    w_in, p["b_in"] = _conv_bn_params(keys[0], 3, C, 3)
    p["w_in"] = w_in.astype(bf16)                                    # (27, C)

    w1s, b1s, w2s, b2s = [], [], [], []
    for i in range(num_blocks):
        w1, b1 = _conv_bn_params(keys[1 + 2 * i], C, C, 3)
        w2, b2b = _conv_bn_params(keys[2 + 2 * i], C, C, 3)
        w1s.append(w1); b1s.append(b1); w2s.append(w2); b2s.append(b2b)
    p["bw1"] = jnp.stack(w1s).astype(bf16); p["bb1"] = jnp.stack(b1s)   # (nb,9C,C),(nb,1,C)
    p["bw2"] = jnp.stack(w2s).astype(bf16); p["bb2"] = jnp.stack(b2s)

    pw, pb = _conv_bn_params(keys[2 * num_blocks + 1], C, 2, 1)      # (C,2),(1,2)
    vw, vb = _conv_bn_params(keys[2 * num_blocks + 2], C, 1, 1)      # (C,1),(1,1)
    p["pv_w"] = jnp.concatenate([pw, vw], axis=1).astype(bf16)       # (C,3)
    p["pv_b"] = jnp.concatenate([pb, vb], axis=1)                    # (1,3)

    wp, bp = _linear_params(keys[2 * num_blocks + 3], 2 * b2, b2)
    # PyTorch flattens NCHW (index = c*B2 + hw): split W^T into per-channel slabs so
    # logits = p0 @ V0 + p1 @ V1 matches x_pt @ W_pt^T exactly.
    p["pfc_v"] = wp.T.reshape(2, b2, b2).astype(bf16)                # (2,B2,B2)
    p["pfc_b"] = bp.reshape(1, b2)

    w1, b1 = _linear_params(keys[2 * num_blocks + 4], b2, 256)
    w2, b2v = _linear_params(keys[2 * num_blocks + 5], 256, 1)
    p["vfc1_w"], p["vfc1_b"] = w1.T.astype(bf16), b1.reshape(1, 256)  # (B2,256),(1,256)
    p["vfc2_w"], p["vfc2_b"] = w2.T.astype(bf16), b2v.reshape(1, 1)   # (256,1),(1,1)
    return p


# --------------------- pure-JAX reference (same params) --------------------- #

def reference_forward(x_nchw, params):
    x = jnp.transpose(x_nchw, (0, 2, 3, 1)).astype(jnp.float32)
    N, H, W, _ = x.shape
    C = params["bw1"].shape[-1]
    HW = H * W

    def conv3(x, wflat, b, res=None, relu=True):
        cout = wflat.shape[-1]
        cin = wflat.shape[0] // 9
        xp = jnp.pad(x, ((0, 0), (1, 1), (1, 1), (0, 0)))
        cols = [xp[:, ky:ky + H, kx:kx + W, :] for ky in range(3) for kx in range(3)]
        pat = jnp.concatenate(cols, axis=-1).reshape(N, HW, 9 * cin)
        y = jnp.einsum("nmk,kc->nmc", pat, wflat.astype(jnp.float32)) + b
        if res is not None:
            y = y + res.reshape(N, HW, cout)
        if relu:
            y = jnp.maximum(y, 0.0)
        return y.reshape(N, H, W, cout)

    x = conv3(x, params["w_in"], params["b_in"])
    for i in range(params["bw1"].shape[0]):
        h = conv3(x, params["bw1"][i], params["bb1"][i])
        x = conv3(h, params["bw2"][i], params["bb2"][i], res=x)

    xf = x.reshape(N * HW, C)
    pv = jnp.maximum(xf @ params["pv_w"].astype(jnp.float32) + params["pv_b"], 0.0)
    pv = pv.reshape(N, HW, 3)
    logits = (pv[:, :, 0] @ params["pfc_v"][0].astype(jnp.float32)
              + pv[:, :, 1] @ params["pfc_v"][1].astype(jnp.float32)
              + params["pfc_b"])
    policy = jax.nn.softmax(logits, axis=1)
    v = pv[:, :, 2]                                                   # (N, HW)
    hdn = jnp.maximum(v @ params["vfc1_w"].astype(jnp.float32) + params["vfc1_b"], 0.0)
    value = jnp.tanh(hdn @ params["vfc2_w"].astype(jnp.float32) + params["vfc2_b"])
    return policy, value


if __name__ == "__main__":
    board_size = 8        # small board for the synthetic run (module default is 15)
    num_filters = 32
    num_blocks = 2
    batch = 2

    key = jax.random.PRNGKey(0)
    kp, kx = jax.random.split(key)
    params = init_params(kp, board_size, num_filters, num_blocks)
    x = jax.random.normal(kx, (batch, 3, board_size, board_size), jnp.float32)

    policy, value = jax.jit(gomoku_forward)(x, params)
    jax.block_until_ready((policy, value))

    assert policy.shape == (batch, board_size * board_size)
    assert value.shape == (batch, 1)

    p_ref, v_ref = jax.jit(reference_forward)(x, params)
    jax.block_until_ready((p_ref, v_ref))
    assert jnp.allclose(policy, p_ref, atol=2e-2, rtol=2e-2)
    assert jnp.allclose(value, v_ref, atol=2e-2, rtol=2e-2)
    assert bool(jnp.all(jnp.isfinite(policy))) and bool(jnp.all(jnp.isfinite(value)))

    print("KERNEL_OK")
</pallas_src>

<mosaic_0001>
module attributes {stable_mosaic.version = 11 : i64} {
  func.func @_tower_kernel(%arg0: i32, %arg1: i32, %arg2: memref<64x36xf32, #tpu.memory_space<vmem>>, %arg3: memref<27x32xbf16, #tpu.memory_space<vmem>>, %arg4: memref<1x32xf32, #tpu.memory_space<vmem>>, %arg5: memref<1x288x32xbf16, #tpu.memory_space<vmem>>, %arg6: memref<1x1x32xf32, #tpu.memory_space<vmem>>, %arg7: memref<1x288x32xbf16, #tpu.memory_space<vmem>>, %arg8: memref<1x1x32xf32, #tpu.memory_space<vmem>>, %arg9: memref<32x3xbf16, #tpu.memory_space<vmem>>, %arg10: memref<1x3xf32, #tpu.memory_space<vmem>>, %arg11: memref<64x3xf32, #tpu.memory_space<vmem>>, %arg12: memref<64x32xf32, #tpu.memory_space<vmem>>, %arg13: memref<64x288xf32, #tpu.memory_space<vmem>>) attributes {dimension_semantics = [#tpu.dimension_semantics<parallel>, #tpu.dimension_semantics<arbitrary>], iteration_bounds = array<i64: 2, 2>, scalar_prefetch = 0 : i64, scratch_operands = 2 : i64, tpu.core_type = #tpu.core_type<tc>, window_params = [{transform_indices = @transform_0, window_bounds = array<i64: 64, 36>}, {pipeline_mode = #tpu.pipeline_mode<synchronous>, transform_indices = @transform_1, window_bounds = array<i64: 27, 32>}, {pipeline_mode = #tpu.pipeline_mode<synchronous>, transform_indices = @transform_2, window_bounds = array<i64: 1, 32>}, {transform_indices = @transform_3, window_bounds = array<i64: 1, 288, 32>}, {transform_indices = @transform_4, window_bounds = array<i64: 1, 1, 32>}, {transform_indices = @transform_5, window_bounds = array<i64: 1, 288, 32>}, {transform_indices = @transform_6, window_bounds = array<i64: 1, 1, 32>}, {pipeline_mode = #tpu.pipeline_mode<synchronous>, transform_indices = @transform_7, window_bounds = array<i64: 32, 3>}, {pipeline_mode = #tpu.pipeline_mode<synchronous>, transform_indices = @transform_8, window_bounds = array<i64: 1, 3>}, {transform_indices = @transform_9, window_bounds = array<i64: 64, 3>}]} {
    %c0_i32 = arith.constant 0 : i32
    %0 = arith.cmpi eq, %arg1, %c0_i32 : i32
    %1 = arith.extui %0 : i1 to i32
    %c0_i32_0 = arith.constant 0 : i32
    %2 = arith.cmpi ne, %1, %c0_i32_0 : i32
    scf.if %2 {
      %c0_86 = arith.constant 0 : index
      %c0_87 = arith.constant 0 : index
      %113 = vector.load %arg2[%c0_86, %c0_87] : memref<64x36xf32, #tpu.memory_space<vmem>>, vector<64x27xf32>
      %114 = arith.truncf %113 : vector<64x27xf32> to vector<64x27xbf16>
      %c0_88 = arith.constant 0 : index
      %c0_89 = arith.constant 0 : index
      %115 = vector.load %arg3[%c0_88, %c0_89] : memref<27x32xbf16, #tpu.memory_space<vmem>>, vector<27x32xbf16>
      %cst_90 = arith.constant dense<0.000000e+00> : vector<64x32xf32>
      %116 = tpu.matmul %114, %115, %cst_90 {dimension_numbers = #tpu.dot_dimension_numbers<[1], [0], [0], [1], [0, 0, 1, 1], [], []>} : vector<64x27xbf16>, vector<27x32xbf16>, vector<64x32xf32> -> vector<64x32xf32>
      %c0_91 = arith.constant 0 : index
      %c0_92 = arith.constant 0 : index
      %117 = vector.load %arg4[%c0_91, %c0_92] : memref<1x32xf32, #tpu.memory_space<vmem>>, vector<1x32xf32>
      %118 = vector.broadcast %117 : vector<1x32xf32> to vector<64x32xf32>
      %119 = arith.addf %116, %118 : vector<64x32xf32>
      %cst_93 = arith.constant 0.000000e+00 : f32
      %120 = vector.broadcast %cst_93 : f32 to vector<64x32xf32>
      %121 = arith.maximumf %119, %120 : vector<64x32xf32>
      %c0_94 = arith.constant 0 : index
      %c0_95 = arith.constant 0 : index
      %122 = vector.load %arg12[%c0_94, %c0_95] : memref<64x32xf32, #tpu.memory_space<vmem>>, vector<64x32xf32>
      tpu.vector_store %arg12[%c0_94, %c0_95], %121 {strides = array<i32>} : memref<64x32xf32, #tpu.memory_space<vmem>>, vector<64x32xf32>,
    } else {
    }
    %c0 = arith.constant 0 : index
    %c0_1 = arith.constant 0 : index
    %3 = vector.load %arg12[%c0, %c0_1] : memref<64x32xf32, #tpu.memory_space<vmem>>, vector<64x32xf32>
    %c0_2 = arith.constant 0 : index
    %c0_3 = arith.constant 0 : index
    %c0_4 = arith.constant 0 : index
    %4 = vector.load %arg6[%c0_2, %c0_3, %c0_4] : memref<1x1x32xf32, #tpu.memory_space<vmem>>, vector<1x1x32xf32>
    %5 = vector.shape_cast %4 : vector<1x1x32xf32> to vector<1x32xf32>
    %c9_i32 = arith.constant 9 : i32
    %6 = tpu.dynamic_rotate %3 by %c9_i32 dim 0 : vector<64x32xf32>, i32 -> vector<64x32xf32>
    %c0_5 = arith.constant 0 : index
    %c27 = arith.constant 27 : index
    %7 = vector.load %arg2[%c0_5, %c27] : memref<64x36xf32, #tpu.memory_space<vmem>>, vector<64x1xf32>
    %8 = vector.broadcast %7 : vector<64x1xf32> to vector<64x32xf32>
    %9 = arith.mulf %6, %8 : vector<64x32xf32>
    %c0_6 = arith.constant 0 : index
    %c0_7 = arith.constant 0 : index
    %10 = vector.load %arg13[%c0_6, %c0_7] : memref<64x288xf32, #tpu.memory_space<vmem>>, vector<64x32xf32>
    tpu.vector_store %arg13[%c0_6, %c0_7], %9 {strides = array<i32>} : memref<64x288xf32, #tpu.memory_space<vmem>>, vector<64x32xf32>,
    %c8_i32 = arith.constant 8 : i32
    %11 = tpu.dynamic_rotate %3 by %c8_i32 dim 0 : vector<64x32xf32>, i32 -> vector<64x32xf32>
    %c0_8 = arith.constant 0 : index
    %c28 = arith.constant 28 : index
    %12 = vector.load %arg2[%c0_8, %c28] : memref<64x36xf32, #tpu.memory_space<vmem>>, vector<64x1xf32>
    %13 = vector.broadcast %12 : vector<64x1xf32> to vector<64x32xf32>
    %14 = arith.mulf %11, %13 : vector<64x32xf32>
    %c0_9 = arith.constant 0 : index
    %c32 = arith.constant 32 : index
    %15 = vector.load %arg13[%c0_9, %c32] : memref<64x288xf32, #tpu.memory_space<vmem>>, vector<64x32xf32>
    tpu.vector_store %arg13[%c0_9, %c32], %14 {strides = array<i32>} : memref<64x288xf32, #tpu.memory_space<vmem>>, vector<64x32xf32>,
    %c7_i32 = arith.constant 7 : i32
    %16 = tpu.dynamic_rotate %3 by %c7_i32 dim 0 : vector<64x32xf32>, i32 -> vector<64x32xf32>
    %c0_10 = arith.constant 0 : index
    %c29 = arith.constant 29 : index
    %17 = vector.load %arg2[%c0_10, %c29] : memref<64x36xf32, #tpu.memory_space<vmem>>, vector<64x1xf32>
    %18 = vector.broadcast %17 : vector<64x1xf32> to vector<64x32xf32>
    %19 = arith.mulf %16, %18 : vector<64x32xf32>
    %c0_11 = arith.constant 0 : index
    %c64 = arith.constant 64 : index
    %20 = vector.load %arg13[%c0_11, %c64] : memref<64x288xf32, #tpu.memory_space<vmem>>, vector<64x32xf32>
    tpu.vector_store %arg13[%c0_11, %c64], %19 {strides = array<i32>} : memref<64x288xf32, #tpu.memory_space<vmem>>, vector<64x32xf32>,
    %c1_i32 = arith.constant 1 : i32
    %21 = tpu.dynamic_rotate %3 by %c1_i32 dim 0 : vector<64x32xf32>, i32 -> vector<64x32xf32>
    %c0_12 = arith.constant 0 : index
    %c30 = arith.constant 30 : index
    %22 = vector.load %arg2[%c0_12, %c30] : memref<64x36xf32, #tpu.memory_space<vmem>>, vector<64x1xf32>
    %23 = vector.broadcast %22 : vector<64x1xf32> to vector<64x32xf32>
    %24 = arith.mulf %21, %23 : vector<64x32xf32>
    %c0_13 = arith.constant 0 : index
    %c96 = arith.constant 96 : index
    %25 = vector.load %arg13[%c0_13, %c96] : memref<64x288xf32, #tpu.memory_space<vmem>>, vector<64x32xf32>
    tpu.vector_store %arg13[%c0_13, %c96], %24 {strides = array<i32>} : memref<64x288xf32, #tpu.memory_space<vmem>>, vector<64x32xf32>,
    %c0_14 = arith.constant 0 : index
    %c128 = arith.constant 128 : index
    %26 = vector.load %arg13[%c0_14, %c128] : memref<64x288xf32, #tpu.memory_space<vmem>>, vector<64x32xf32>
    tpu.vector_store %arg13[%c0_14, %c128], %3 {strides = array<i32>} : memref<64x288xf32, #tpu.memory_space<vmem>>, vector<64x32xf32>,
    %c63_i32 = arith.constant 63 : i32
    %27 = tpu.dynamic_rotate %3 by %c63_i32 dim 0 : vector<64x32xf32>, i32 -> vector<64x32xf32>
    %c0_15 = arith.constant 0 : index
    %c32_16 = arith.constant 32 : index
    %28 = vector.load %arg2[%c0_15, %c32_16] : memref<64x36xf32, #tpu.memory_space<vmem>>, vector<64x1xf32>
    %29 = vector.broadcast %28 : vector<64x1xf32> to vector<64x32xf32>
    %30 = arith.mulf %27, %29 : vector<64x32xf32>
    %c0_17 = arith.constant 0 : index
    %c160 = arith.constant 160 : index
    %31 = vector.load %arg13[%c0_17, %c160] : memref<64x288xf32, #tpu.memory_space<vmem>>, vector<64x32xf32>
    tpu.vector_store %arg13[%c0_17, %c160], %30 {strides = array<i32>} : memref<64x288xf32, #tpu.memory_space<vmem>>, vector<64x32xf32>,
    %c57_i32 = arith.constant 57 : i32
    %32 = tpu.dynamic_rotate %3 by %c57_i32 dim 0 : vector<64x32xf32>, i32 -> vector<64x32xf32>
    %c0_18 = arith.constant 0 : index
    %c33 = arith.constant 33 : index
    %33 = vector.load %arg2[%c0_18, %c33] : memref<64x36xf32, #tpu.memory_space<vmem>>, vector<64x1xf32>
    %34 = vector.broadcast %33 : vector<64x1xf32> to vector<64x32xf32>
    %35 = arith.mulf %32, %34 : vector<64x32xf32>
    %c0_19 = arith.constant 0 : index
    %c192 = arith.constant 192 : index
    %36 = vector.load %arg13[%c0_19, %c192] : memref<64x288xf32, #tpu.memory_space<vmem>>, vector<64x32xf32>
    tpu.vector_store %arg13[%c0_19, %c192], %35 {strides = array<i32>} : memref<64x288xf32, #tpu.memory_space<vmem>>, vector<64x32xf32>,
    %c56_i32 = arith.constant 56 : i32
    %37 = tpu.dynamic_rotate %3 by %c56_i32 dim 0 : vector<64x32xf32>, i32 -> vector<64x32xf32>
    %c0_20 = arith.constant 0 : index
    %c34 = arith.constant 34 : index
    %38 = vector.load %arg2[%c0_20, %c34] : memref<64x36xf32, #tpu.memory_space<vmem>>, vector<64x1xf32>
    %39 = vector.broadcast %38 : vector<64x1xf32> to vector<64x32xf32>
    %40 = arith.mulf %37, %39 : vector<64x32xf32>
    %c0_21 = arith.constant 0 : index
    %c224 = arith.constant 224 : index
    %41 = vector.load %arg13[%c0_21, %c224] : memref<64x288xf32, #tpu.memory_space<vmem>>, vector<64x32xf32>
    tpu.vector_store %arg13[%c0_21, %c224], %40 {strides = array<i32>} : memref<64x288xf32, #tpu.memory_space<vmem>>, vector<64x32xf32>,
    %c55_i32 = arith.constant 55 : i32
    %42 = tpu.dynamic_rotate %3 by %c55_i32 dim 0 : vector<64x32xf32>, i32 -> vector<64x32xf32>
    %c0_22 = arith.constant 0 : index
    %c35 = arith.constant 35 : index
    %43 = vector.load %arg2[%c0_22, %c35] : memref<64x36xf32, #tpu.memory_space<vmem>>, vector<64x1xf32>
    %44 = vector.broadcast %43 : vector<64x1xf32> to vector<64x32xf32>
    %45 = arith.mulf %42, %44 : vector<64x32xf32>
    %c0_23 = arith.constant 0 : index
    %c256 = arith.constant 256 : index
    %46 = vector.load %arg13[%c0_23, %c256] : memref<64x288xf32, #tpu.memory_space<vmem>>, vector<64x32xf32>
    tpu.vector_store %arg13[%c0_23, %c256], %45 {strides = array<i32>} : memref<64x288xf32, #tpu.memory_space<vmem>>, vector<64x32xf32>,
    %c0_24 = arith.constant 0 : index
    %c0_25 = arith.constant 0 : index
    %47 = vector.load %arg13[%c0_24, %c0_25] : memref<64x288xf32, #tpu.memory_space<vmem>>, vector<64x288xf32>
    %48 = arith.truncf %47 : vector<64x288xf32> to vector<64x288xbf16>
    %c0_26 = arith.constant 0 : index
    %c0_27 = arith.constant 0 : index
    %c0_28 = arith.constant 0 : index
    %49 = vector.load %arg5[%c0_26, %c0_27, %c0_28] : memref<1x288x32xbf16, #tpu.memory_space<vmem>>, vector<1x288x32xbf16>
    %50 = vector.shape_cast %49 : vector<1x288x32xbf16> to vector<288x32xbf16>
    %cst = arith.constant dense<0.000000e+00> : vector<64x32xf32>
    %51 = tpu.matmul %48, %50, %cst {dimension_numbers = #tpu.dot_dimension_numbers<[1], [0], [0], [1], [0, 0, 1, 1], [], []>} : vector<64x288xbf16>, vector<288x32xbf16>, vector<64x32xf32> -> vector<64x32xf32>
    %52 = vector.broadcast %5 : vector<1x32xf32> to vector<64x32xf32>
    %53 = arith.addf %51, %52 : vector<64x32xf32>
    %cst_29 = arith.constant 0.000000e+00 : f32
    %54 = vector.broadcast %cst_29 : f32 to vector<64x32xf32>
    %55 = arith.maximumf %53, %54 : vector<64x32xf32>
    %c0_30 = arith.constant 0 : index
    %c0_31 = arith.constant 0 : index
    %c0_32 = arith.constant 0 : index
    %56 = vector.load %arg8[%c0_30, %c0_31, %c0_32] : memref<1x1x32xf32, #tpu.memory_space<vmem>>, vector<1x1x32xf32>
    %57 = vector.shape_cast %56 : vector<1x1x32xf32> to vector<1x32xf32>
    %c9_i32_33 = arith.constant 9 : i32
    %58 = tpu.dynamic_rotate %55 by %c9_i32_33 dim 0 : vector<64x32xf32>, i32 -> vector<64x32xf32>
    %c0_34 = arith.constant 0 : index
    %c27_35 = arith.constant 27 : index
    %59 = vector.load %arg2[%c0_34, %c27_35] : memref<64x36xf32, #tpu.memory_space<vmem>>, vector<64x1xf32>
    %60 = vector.broadcast %59 : vector<64x1xf32> to vector<64x32xf32>
    %61 = arith.mulf %58, %60 : vector<64x32xf32>
    %c0_36 = arith.constant 0 : index
    %c0_37 = arith.constant 0 : index
    %62 = vector.load %arg13[%c0_36, %c0_37] : memref<64x288xf32, #tpu.memory_space<vmem>>, vector<64x32xf32>
    tpu.vector_store %arg13[%c0_36, %c0_37], %61 {strides = array<i32>} : memref<64x288xf32, #tpu.memory_space<vmem>>, vector<64x32xf32>,
    %c8_i32_38 = arith.constant 8 : i32
    %63 = tpu.dynamic_rotate %55 by %c8_i32_38 dim 0 : vector<64x32xf32>, i32 -> vector<64x32xf32>
    %c0_39 = arith.constant 0 : index
    %c28_40 = arith.constant 28 : index
    %64 = vector.load %arg2[%c0_39, %c28_40] : memref<64x36xf32, #tpu.memory_space<vmem>>, vector<64x1xf32>
    %65 = vector.broadcast %64 : vector<64x1xf32> to vector<64x32xf32>
    %66 = arith.mulf %63, %65 : vector<64x32xf32>
    %c0_41 = arith.constant 0 : index
    %c32_42 = arith.constant 32 : index
    %67 = vector.load %arg13[%c0_41, %c32_42] : memref<64x288xf32, #tpu.memory_space<vmem>>, vector<64x32xf32>
    tpu.vector_store %arg13[%c0_41, %c32_42], %66 {strides = array<i32>} : memref<64x288xf32, #tpu.memory_space<vmem>>, vector<64x32xf32>,
    %c7_i32_43 = arith.constant 7 : i32
    %68 = tpu.dynamic_rotate %55 by %c7_i32_43 dim 0 : vector<64x32xf32>, i32 -> vector<64x32xf32>
    %c0_44 = arith.constant 0 : index
    %c29_45 = arith.constant 29 : index
    %69 = vector.load %arg2[%c0_44, %c29_45] : memref<64x36xf32, #tpu.memory_space<vmem>>, vector<64x1xf32>
    %70 = vector.broadcast %69 : vector<64x1xf32> to vector<64x32xf32>
    %71 = arith.mulf %68, %70 : vector<64x32xf32>
    %c0_46 = arith.constant 0 : index
    %c64_47 = arith.constant 64 : index
    %72 = vector.load %arg13[%c0_46, %c64_47] : memref<64x288xf32, #tpu.memory_space<vmem>>, vector<64x32xf32>
    tpu.vector_store %arg13[%c0_46, %c64_47], %71 {strides = array<i32>} : memref<64x288xf32, #tpu.memory_space<vmem>>, vector<64x32xf32>,
    %c1_i32_48 = arith.constant 1 : i32
    %73 = tpu.dynamic_rotate %55 by %c1_i32_48 dim 0 : vector<64x32xf32>, i32 -> vector<64x32xf32>
    %c0_49 = arith.constant 0 : index
    %c30_50 = arith.constant 30 : index
    %74 = vector.load %arg2[%c0_49, %c30_50] : memref<64x36xf32, #tpu.memory_space<vmem>>, vector<64x1xf32>
    %75 = vector.broadcast %74 : vector<64x1xf32> to vector<64x32xf32>
    %76 = arith.mulf %73, %75 : vector<64x32xf32>
    %c0_51 = arith.constant 0 : index
    %c96_52 = arith.constant 96 : index
    %77 = vector.load %arg13[%c0_51, %c96_52] : memref<64x288xf32, #tpu.memory_space<vmem>>, vector<64x32xf32>
    tpu.vector_store %arg13[%c0_51, %c96_52], %76 {strides = array<i32>} : memref<64x288xf32, #tpu.memory_space<vmem>>, vector<64x32xf32>,
    %c0_53 = arith.constant 0 : index
    %c128_54 = arith.constant 128 : index
    %78 = vector.load %arg13[%c0_53, %c128_54] : memref<64x288xf32, #tpu.memory_space<vmem>>, vector<64x32xf32>
    tpu.vector_store %arg13[%c0_53, %c128_54], %55 {strides = array<i32>} : memref<64x288xf32, #tpu.memory_space<vmem>>, vector<64x32xf32>,
    %c63_i32_55 = arith.constant 63 : i32
    %79 = tpu.dynamic_rotate %55 by %c63_i32_55 dim 0 : vector<64x32xf32>, i32 -> vector<64x32xf32>
    %c0_56 = arith.constant 0 : index
    %c32_57 = arith.constant 32 : index
    %80 = vector.load %arg2[%c0_56, %c32_57] : memref<64x36xf32, #tpu.memory_space<vmem>>, vector<64x1xf32>
    %81 = vector.broadcast %80 : vector<64x1xf32> to vector<64x32xf32>
    %82 = arith.mulf %79, %81 : vector<64x32xf32>
    %c0_58 = arith.constant 0 : index
    %c160_59 = arith.constant 160 : index
    %83 = vector.load %arg13[%c0_58, %c160_59] : memref<64x288xf32, #tpu.memory_space<vmem>>, vector<64x32xf32>
    tpu.vector_store %arg13[%c0_58, %c160_59], %82 {strides = array<i32>} : memref<64x288xf32, #tpu.memory_space<vmem>>, vector<64x32xf32>,
    %c57_i32_60 = arith.constant 57 : i32
    %84 = tpu.dynamic_rotate %55 by %c57_i32_60 dim 0 : vector<64x32xf32>, i32 -> vector<64x32xf32>
    %c0_61 = arith.constant 0 : index
    %c33_62 = arith.constant 33 : index
    %85 = vector.load %arg2[%c0_61, %c33_62] : memref<64x36xf32, #tpu.memory_space<vmem>>, vector<64x1xf32>
    %86 = vector.broadcast %85 : vector<64x1xf32> to vector<64x32xf32>
    %87 = arith.mulf %84, %86 : vector<64x32xf32>
    %c0_63 = arith.constant 0 : index
    %c192_64 = arith.constant 192 : index
    %88 = vector.load %arg13[%c0_63, %c192_64] : memref<64x288xf32, #tpu.memory_space<vmem>>, vector<64x32xf32>
    tpu.vector_store %arg13[%c0_63, %c192_64], %87 {strides = array<i32>} : memref<64x288xf32, #tpu.memory_space<vmem>>, vector<64x32xf32>,
    %c56_i32_65 = arith.constant 56 : i32
    %89 = tpu.dynamic_rotate %55 by %c56_i32_65 dim 0 : vector<64x32xf32>, i32 -> vector<64x32xf32>
    %c0_66 = arith.constant 0 : index
    %c34_67 = arith.constant 34 : index
    %90 = vector.load %arg2[%c0_66, %c34_67] : memref<64x36xf32, #tpu.memory_space<vmem>>, vector<64x1xf32>
    %91 = vector.broadcast %90 : vector<64x1xf32> to vector<64x32xf32>
    %92 = arith.mulf %89, %91 : vector<64x32xf32>
    %c0_68 = arith.constant 0 : index
    %c224_69 = arith.constant 224 : index
    %93 = vector.load %arg13[%c0_68, %c224_69] : memref<64x288xf32, #tpu.memory_space<vmem>>, vector<64x32xf32>
    tpu.vector_store %arg13[%c0_68, %c224_69], %92 {strides = array<i32>} : memref<64x288xf32, #tpu.memory_space<vmem>>, vector<64x32xf32>,
    %c55_i32_70 = arith.constant 55 : i32
    %94 = tpu.dynamic_rotate %55 by %c55_i32_70 dim 0 : vector<64x32xf32>, i32 -> vector<64x32xf32>
    %c0_71 = arith.constant 0 : index
    %c35_72 = arith.constant 35 : index
    %95 = vector.load %arg2[%c0_71, %c35_72] : memref<64x36xf32, #tpu.memory_space<vmem>>, vector<64x1xf32>
    %96 = vector.broadcast %95 : vector<64x1xf32> to vector<64x32xf32>
    %97 = arith.mulf %94, %96 : vector<64x32xf32>
    %c0_73 = arith.constant 0 : index
    %c256_74 = arith.constant 256 : index
    %98 = vector.load %arg13[%c0_73, %c256_74] : memref<64x288xf32, #tpu.memory_space<vmem>>, vector<64x32xf32>
    tpu.vector_store %arg13[%c0_73, %c256_74], %97 {strides = array<i32>} : memref<64x288xf32, #tpu.memory_space<vmem>>, vector<64x32xf32>,
    %c0_75 = arith.constant 0 : index
    %c0_76 = arith.constant 0 : index
    %99 = vector.load %arg13[%c0_75, %c0_76] : memref<64x288xf32, #tpu.memory_space<vmem>>, vector<64x288xf32>
    %100 = arith.truncf %99 : vector<64x288xf32> to vector<64x288xbf16>
    %c0_77 = arith.constant 0 : index
    %c0_78 = arith.constant 0 : index
    %c0_79 = arith.constant 0 : index
    %101 = vector.load %arg7[%c0_77, %c0_78, %c0_79] : memref<1x288x32xbf16, #tpu.memory_space<vmem>>, vector<1x288x32xbf16>
    %102 = vector.shape_cast %101 : vector<1x288x32xbf16> to vector<288x32xbf16>
    %cst_80 = arith.constant dense<0.000000e+00> : vector<64x32xf32>
    %103 = tpu.matmul %100, %102, %cst_80 {dimension_numbers = #tpu.dot_dimension_numbers<[1], [0], [0], [1], [0, 0, 1, 1], [], []>} : vector<64x288xbf16>, vector<288x32xbf16>, vector<64x32xf32> -> vector<64x32xf32>
    %104 = vector.broadcast %57 : vector<1x32xf32> to vector<64x32xf32>
    %105 = arith.addf %103, %104 : vector<64x32xf32>
    %106 = arith.addf %105, %3 : vector<64x32xf32>
    %cst_81 = arith.constant 0.000000e+00 : f32
    %107 = vector.broadcast %cst_81 : f32 to vector<64x32xf32>
    %108 = arith.maximumf %106, %107 : vector<64x32xf32>
    %c0_82 = arith.constant 0 : index
    %c0_83 = arith.constant 0 : index
    %109 = vector.load %arg12[%c0_82, %c0_83] : memref<64x32xf32, #tpu.memory_space<vmem>>, vector<64x32xf32>
    tpu.vector_store %arg12[%c0_82, %c0_83], %108 {strides = array<i32>} : memref<64x32xf32, #tpu.memory_space<vmem>>, vector<64x32xf32>,
    %c1_i32_84 = arith.constant 1 : i32
    %110 = arith.cmpi eq, %arg1, %c1_i32_84 : i32
    %111 = arith.extui %110 : i1 to i32
    %c0_i32_85 = arith.constant 0 : i32
    %112 = arith.cmpi ne, %111, %c0_i32_85 : i32
    scf.if %112 {
      %113 = arith.truncf %108 : vector<64x32xf32> to vector<64x32xbf16>
      %c0_86 = arith.constant 0 : index
      %c0_87 = arith.constant 0 : index
      %114 = vector.load %arg9[%c0_86, %c0_87] : memref<32x3xbf16, #tpu.memory_space<vmem>>, vector<32x3xbf16>
      %cst_88 = arith.constant dense<0.000000e+00> : vector<64x3xf32>
      %115 = tpu.matmul %113, %114, %cst_88 {dimension_numbers = #tpu.dot_dimension_numbers<[1], [0], [0], [1], [0, 0, 1, 1], [], []>} : vector<64x32xbf16>, vector<32x3xbf16>, vector<64x3xf32> -> vector<64x3xf32>
      %c0_89 = arith.constant 0 : index
      %c0_90 = arith.constant 0 : index
      %116 = vector.load %arg10[%c0_89, %c0_90] : memref<1x3xf32, #tpu.memory_space<vmem>>, vector<1x3xf32>
      %117 = vector.broadcast %116 : vector<1x3xf32> to vector<64x3xf32>
      %118 = arith.addf %115, %117 : vector<64x3xf32>
      %cst_91 = arith.constant 0.000000e+00 : f32
      %119 = vector.broadcast %cst_91 : f32 to vector<64x3xf32>
      %120 = arith.maximumf %118, %119 : vector<64x3xf32>
      %c0_92 = arith.constant 0 : index
      %c0_93 = arith.constant 0 : index
      %121 = vector.load %arg11[%c0_92, %c0_93] : memref<64x3xf32, #tpu.memory_space<vmem>>, vector<64x3xf32>
      tpu.vector_store %arg11[%c0_92, %c0_93], %120 {strides = array<i32>} : memref<64x3xf32, #tpu.memory_space<vmem>>, vector<64x3xf32>,
    } else {
    }
    return
  }
  func.func @transform_0(%arg0: i32, %arg1: i32) -> (i32, i32) {
    %c0_i32 = arith.constant 0 : i32
    %c0_i32_0 = arith.constant 0 : i32
    return %arg0, %c0_i32 : i32, i32
  }
  func.func @transform_1(%arg0: i32, %arg1: i32) -> (i32, i32) {
    %c0_i32 = arith.constant 0 : i32
    %c0_i32_0 = arith.constant 0 : i32
    %c0_i32_1 = arith.constant 0 : i32
    return %c0_i32, %c0_i32_0 : i32, i32
  }
  func.func @transform_2(%arg0: i32, %arg1: i32) -> (i32, i32) {
    %c0_i32 = arith.constant 0 : i32
    %c0_i32_0 = arith.constant 0 : i32
    %c0_i32_1 = arith.constant 0 : i32
    return %c0_i32, %c0_i32_0 : i32, i32
  }
  func.func @transform_3(%arg0: i32, %arg1: i32) -> (i32, i32, i32) {
    %c0_i32 = arith.constant 0 : i32
    %c0_i32_0 = arith.constant 0 : i32
    %c0_i32_1 = arith.constant 0 : i32
    return %arg1, %c0_i32, %c0_i32_0 : i32, i32, i32
  }
  func.func @transform_4(%arg0: i32, %arg1: i32) -> (i32, i32, i32) {
    %c0_i32 = arith.constant 0 : i32
    %c0_i32_0 = arith.constant 0 : i32
    %c0_i32_1 = arith.constant 0 : i32
    return %arg1, %c0_i32, %c0_i32_0 : i32, i32, i32
  }
  func.func @transform_5(%arg0: i32, %arg1: i32) -> (i32, i32, i32) {
    %c0_i32 = arith.constant 0 : i32
    %c0_i32_0 = arith.constant 0 : i32
    %c0_i32_1 = arith.constant 0 : i32
    return %arg1, %c0_i32, %c0_i32_0 : i32, i32, i32
  }
  func.func @transform_6(%arg0: i32, %arg1: i32) -> (i32, i32, i32) {
    %c0_i32 = arith.constant 0 : i32
    %c0_i32_0 = arith.constant 0 : i32
    %c0_i32_1 = arith.constant 0 : i32
    return %arg1, %c0_i32, %c0_i32_0 : i32, i32, i32
  }
  func.func @transform_7(%arg0: i32, %arg1: i32) -> (i32, i32) {
    %c0_i32 = arith.constant 0 : i32
    %c0_i32_0 = arith.constant 0 : i32
    %c0_i32_1 = arith.constant 0 : i32
    return %c0_i32, %c0_i32_0 : i32, i32
  }
  func.func @transform_8(%arg0: i32, %arg1: i32) -> (i32, i32) {
    %c0_i32 = arith.constant 0 : i32
    %c0_i32_0 = arith.constant 0 : i32
    %c0_i32_1 = arith.constant 0 : i32
    return %c0_i32, %c0_i32_0 : i32, i32
  }
  func.func @transform_9(%arg0: i32, %arg1: i32) -> (i32, i32) {
    %c0_i32 = arith.constant 0 : i32
    %c0_i32_0 = arith.constant 0 : i32
    return %arg0, %c0_i32 : i32, i32
  }
}

module attributes {stable_mosaic.version = 11 : i64} {
  func.func @_heads_kernel(%arg0: memref<3x2x64xf32, #tpu.memory_space<vmem>>, %arg1: memref<2x64x64xbf16, #tpu.memory_space<vmem>>, %arg2: memref<1x64xf32, #tpu.memory_space<vmem>>, %arg3: memref<64x256xbf16, #tpu.memory_space<vmem>>, %arg4: memref<1x256xf32, #tpu.memory_space<vmem>>, %arg5: memref<256x1xbf16, #tpu.memory_space<vmem>>, %arg6: memref<1x1xf32, #tpu.memory_space<vmem>>, %arg7: memref<2x64xf32, #tpu.memory_space<vmem>>, %arg8: memref<2x1xf32, #tpu.memory_space<vmem>>) attributes {dimension_semantics = [], scalar_prefetch = 0 : i64, scratch_operands = 0 : i64, tpu.core_type = #tpu.core_type<tc>} {
    %c0 = arith.constant 0 : index
    %c0_0 = arith.constant 0 : index
    %c0_1 = arith.constant 0 : index
    %0 = vector.load %arg0[%c0, %c0_0, %c0_1] : memref<3x2x64xf32, #tpu.memory_space<vmem>>, vector<1x2x64xf32>
    %1 = vector.shape_cast %0 : vector<1x2x64xf32> to vector<2x64xf32>
    %2 = arith.truncf %1 : vector<2x64xf32> to vector<2x64xbf16>
    %c1 = arith.constant 1 : index
    %c0_2 = arith.constant 0 : index
    %c0_3 = arith.constant 0 : index
    %3 = vector.load %arg0[%c1, %c0_2, %c0_3] : memref<3x2x64xf32, #tpu.memory_space<vmem>>, vector<1x2x64xf32>
    %4 = vector.shape_cast %3 : vector<1x2x64xf32> to vector<2x64xf32>
    %5 = arith.truncf %4 : vector<2x64xf32> to vector<2x64xbf16>
    %c2 = arith.constant 2 : index
    %c0_4 = arith.constant 0 : index
    %c0_5 = arith.constant 0 : index
    %6 = vector.load %arg0[%c2, %c0_4, %c0_5] : memref<3x2x64xf32, #tpu.memory_space<vmem>>, vector<1x2x64xf32>
    %7 = vector.shape_cast %6 : vector<1x2x64xf32> to vector<2x64xf32>
    %8 = arith.truncf %7 : vector<2x64xf32> to vector<2x64xbf16>
    %c0_6 = arith.constant 0 : index
    %c0_7 = arith.constant 0 : index
    %c0_8 = arith.constant 0 : index
    %9 = vector.load %arg1[%c0_6, %c0_7, %c0_8] : memref<2x64x64xbf16, #tpu.memory_space<vmem>>, vector<1x64x64xbf16>
    %10 = vector.shape_cast %9 : vector<1x64x64xbf16> to vector<64x64xbf16>
    %cst = arith.constant dense<0.000000e+00> : vector<2x64xf32>
    %11 = tpu.matmul %2, %10, %cst {dimension_numbers = #tpu.dot_dimension_numbers<[1], [0], [0], [1], [0, 0, 1, 1], [], []>} : vector<2x64xbf16>, vector<64x64xbf16>, vector<2x64xf32> -> vector<2x64xf32>
    %c1_9 = arith.constant 1 : index
    %c0_10 = arith.constant 0 : index
    %c0_11 = arith.constant 0 : index
    %12 = vector.load %arg1[%c1_9, %c0_10, %c0_11] : memref<2x64x64xbf16, #tpu.memory_space<vmem>>, vector<1x64x64xbf16>
    %13 = vector.shape_cast %12 : vector<1x64x64xbf16> to vector<64x64xbf16>
    %cst_12 = arith.constant dense<0.000000e+00> : vector<2x64xf32>
    %14 = tpu.matmul %5, %13, %cst_12 {dimension_numbers = #tpu.dot_dimension_numbers<[1], [0], [0], [1], [0, 0, 1, 1], [], []>} : vector<2x64xbf16>, vector<64x64xbf16>, vector<2x64xf32> -> vector<2x64xf32>
    %15 = arith.addf %11, %14 : vector<2x64xf32>
    %c0_13 = arith.constant 0 : index
    %c0_14 = arith.constant 0 : index
    %16 = vector.load %arg2[%c0_13, %c0_14] : memref<1x64xf32, #tpu.memory_space<vmem>>, vector<1x64xf32>
    %17 = vector.broadcast %16 : vector<1x64xf32> to vector<2x64xf32>
    %18 = arith.addf %15, %17 : vector<2x64xf32>
    %cst_15 = arith.constant dense<0xFF800000> : vector<2xf32>
    %19 = vector.multi_reduction <maximumf>, %18, %cst_15 [1] : vector<2x64xf32> to vector<2xf32>
    %20 = vector.shape_cast %19 : vector<2xf32> to vector<2x1xf32>
    %21 = vector.broadcast %20 : vector<2x1xf32> to vector<2x64xf32>
    %22 = arith.subf %18, %21 : vector<2x64xf32>
    %23 = math.exp %22 : vector<2x64xf32>
    %cst_16 = arith.constant dense<0.000000e+00> : vector<2xf32>
    %24 = vector.multi_reduction <add>, %23, %cst_16 [1] : vector<2x64xf32> to vector<2xf32>
    %25 = vector.shape_cast %24 : vector<2xf32> to vector<2x1xf32>
    %26 = vector.broadcast %25 : vector<2x1xf32> to vector<2x64xf32>
    %27 = arith.divf %23, %26 : vector<2x64xf32>
    %c0_17 = arith.constant 0 : index
    %c0_18 = arith.constant 0 : index
    %28 = vector.load %arg7[%c0_17, %c0_18] : memref<2x64xf32, #tpu.memory_space<vmem>>, vector<2x64xf32>
    tpu.vector_store %arg7[%c0_17, %c0_18], %27 {strides = array<i32>} : memref<2x64xf32, #tpu.memory_space<vmem>>, vector<2x64xf32>,
    %c0_19 = arith.constant 0 : index
    %c0_20 = arith.constant 0 : index
    %29 = vector.load %arg3[%c0_19, %c0_20] : memref<64x256xbf16, #tpu.memory_space<vmem>>, vector<64x256xbf16>
    %cst_21 = arith.constant dense<0.000000e+00> : vector<2x256xf32>
    %30 = tpu.matmul %8, %29, %cst_21 {dimension_numbers = #tpu.dot_dimension_numbers<[1], [0], [0], [1], [0, 0, 1, 1], [], []>} : vector<2x64xbf16>, vector<64x256xbf16>, vector<2x256xf32> -> vector<2x256xf32>
    %c0_22 = arith.constant 0 : index
    %c0_23 = arith.constant 0 : index
    %31 = vector.load %arg4[%c0_22, %c0_23] : memref<1x256xf32, #tpu.memory_space<vmem>>, vector<1x256xf32>
    %32 = vector.broadcast %31 : vector<1x256xf32> to vector<2x256xf32>
    %33 = arith.addf %30, %32 : vector<2x256xf32>
    %cst_24 = arith.constant 0.000000e+00 : f32
    %34 = vector.broadcast %cst_24 : f32 to vector<2x256xf32>
    %35 = arith.maximumf %33, %34 : vector<2x256xf32>
    %36 = arith.truncf %35 : vector<2x256xf32> to vector<2x256xbf16>
    %c0_25 = arith.constant 0 : index
    %c0_26 = arith.constant 0 : index
    %37 = vector.load %arg5[%c0_25, %c0_26] : memref<256x1xbf16, #tpu.memory_space<vmem>>, vector<256x1xbf16>
    %cst_27 = arith.constant dense<0.000000e+00> : vector<2x1xf32>
    %38 = tpu.matmul %36, %37, %cst_27 {dimension_numbers = #tpu.dot_dimension_numbers<[1], [0], [0], [1], [0, 0, 1, 1], [], []>} : vector<2x256xbf16>, vector<256x1xbf16>, vector<2x1xf32> -> vector<2x1xf32>
    %c0_28 = arith.constant 0 : index
    %c0_29 = arith.constant 0 : index
    %39 = vector.load %arg6[%c0_28, %c0_29] : memref<1x1xf32, #tpu.memory_space<vmem>>, vector<1x1xf32>
    %40 = vector.broadcast %39 : vector<1x1xf32> to vector<2x1xf32>
    %41 = arith.addf %38, %40 : vector<2x1xf32>
    %42 = math.tanh %41 : vector<2x1xf32>
    %c0_30 = arith.constant 0 : index
    %c0_31 = arith.constant 0 : index
    %43 = vector.load %arg8[%c0_30, %c0_31] : memref<2x1xf32, #tpu.memory_space<vmem>>, vector<2x1xf32>
    tpu.vector_store %arg8[%c0_30, %c0_31], %42 {strides = array<i32>} : memref<2x1xf32, #tpu.memory_space<vmem>>, vector<2x1xf32>,
    return
  }
}

</mosaic_0001>

<bundles_post_ra>
// kernel: gomoku_forward.3
= control target key start
LH: loop header
LB: loop body
LE: loop exit
PB: predicated region body
PF: predicated region fallthrough
CT: control target
= control target key end

     0   :  { %s874_s0 = inlined_call_operand.vmem [shape: f32[3,2,64], index: 0, kind: input, shape index: {}]   ;;  %s875_s1 = inlined_call_operand.vmem [shape: bf16[2,64,64], index: 1, kind: input, shape index: {}]   ;;  %s876_s2 = inlined_call_operand.vmem [shape: f32[1,64], index: 2, kind: input, shape index: {}]   ;;  %s877_s3 = inlined_call_operand.vmem [shape: bf16[64,256], index: 3, kind: input, shape index: {}]   ;;  %s878_s4 = inlined_call_operand.vmem [shape: f32[1,256], index: 4, kind: input, shape index: {}]   ;;  %s879_s5 = inlined_call_operand.vmem [shape: bf16[256,1], index: 5, kind: input, shape index: {}]   ;;  %s880_s6 = inlined_call_operand.<no memory space> [shape: f32[1,1], index: 6, kind: input, shape index: {}]   ;;  %s881_s7 = inlined_call_operand.hbm [shape: f32[2,64], index: 7, kind: output, shape index: {0}]   ;;  %s882_s8 = inlined_call_operand.vmem [shape: f32[2,1], index: 8, kind: output, shape index: {1}]  }
   0x1   :  { %v14_v0 = vstv %s880_s6 }
   0x2   :  { %15 = vst [vmem:[#allocation2] sm:$0x1] %v14_v0 }
   0x3   :  { %v624_v1 = vld [vmem:[%s875_s1 + $0x20] sm:$0xff]   ;;  %v690_v2 = vmov 0.0   ;;  %v626_v4 = vld [vmem:[%s875_s1 + $0x28] sm:$0xff]   ;;  %vm691_vm0 = vmmov 0   ;;  %v628_v6 = vld [vmem:[%s875_s1 + $0x30] sm:$0xff]   ;;  %vm81_vm1 = vcmask 523264  }
   0x4   :  { %596 = vmatprep.subr.bf16.mxu0 %v690_v2  ;;  %608 = vmatprep.subr.bf16.mxu1 %v690_v2  ;;  %v625_v3 = vld [vmem:[%s875_s1] sm:$0xff]   ;;  %v627_v5 = vld [vmem:[%s875_s1 + $0x8] sm:$0xff]   ;;  %v629_v7 = vld [vmem:[%s875_s1 + $0x10] sm:$0xff]   ;;  %v692_v19 = vmov 0  }
   0x5   :  { %597 = vmatpush3.bf16.msra.mxu0 %v624_v1  ;;  %604 = vmatprep.mubr.msk.bf16.mxu0 %vm691_vm0, %v690_v2  ;;  %v630_v8 = vld [vmem:[%s875_s1 + $0x38] sm:$0xff]   ;;  %v517_v10 = vld [vmem:[%s874_s0 + $0x2] sm:$0x3]  ;;  %v32_v11 = vld [vmem:[%s874_s0] sm:$0x3] }
   0x6   :  { %609 = vmatpush3.bf16.msra.mxu1 %v625_v3  ;;  %598 = vmatprep.subr.bf16.mxu0 %v690_v2  ;;  %v631_v9 = vld [vmem:[%s875_s1 + $0x18] sm:$0xff]   ;;  %v634_v12 = vld [vmem:[%s877_s3 + $0x4] ss:$8 sps:$4 sm:$0xff]   ;;  %v36_v13 = vpack.c.bf16 %v517_v10, %v517_v10  ;;  %v632_v14 = vld [vmem:[%s877_s3] ss:$8 sps:$4 sm:$0xff]   ;;  %v33_v15 = vpack.c.bf16 %v32_v11, %v32_v11 }
   0x7   :  { %610 = vmatprep.subr.bf16.mxu1 %v690_v2  ;;  %616 = vmatprep.mubr.msk.bf16.mxu1 %vm691_vm0, %v690_v2  ;;  %v637_v16 = vld [vmem:[%s877_s3 + $0x14] ss:$8 sps:$4 sm:$0xff]   ;;  %v635_v17 = vld [vmem:[%s877_s3 + $0x10] ss:$8 sps:$4 sm:$0xff]   ;;  %v640_v18 = vld [vmem:[%s877_s3 + $0x24] ss:$8 sps:$4 sm:$0xff]  }
   0x8   :  { %v638_v20 = vld [vmem:[%s877_s3 + $0x20] ss:$8 sps:$4 sm:$0xff]   ;;  %v643_v21 = vld [vmem:[%s877_s3 + $0x34] ss:$8 sps:$4 sm:$0xff]  }
   0x9   :  { %599 = vmatpush3.bf16.msra.mxu0 %v626_v4 }
   0xa   :  { %611 = vmatpush3.bf16.msra.mxu1 %v627_v5  ;;  %600 = vmatprep.subr.bf16.mxu0 %v690_v2 }
   0xb   :  { %612 = vmatprep.subr.bf16.mxu1 %v690_v2 }
   0xd   :  { %601 = vmatpush3.bf16.msra.mxu0 %v628_v6 }
   0xe   :  { %613 = vmatpush3.bf16.msra.mxu1 %v629_v7  ;;  %602 = vmatprep.subr.bf16.mxu0 %v690_v2 }
   0xf   :  { %614 = vmatprep.subr.bf16.mxu1 %v690_v2 }
  0x11   :  { %603 = vmatpush3.bf16.msra.mxu0 %v630_v8 }
  0x12   :  { %615 = vmatpush3.bf16.msra.mxu1 %v631_v9  ;;  %276 = vmatprep.subr.bf16.mxu0 %v634_v12 }
  0x14   :  { %605 = vmatmul.mubr.msk.bf16.vlgmr.msra.gmra.mrb[0].mxu0 %vm81_vm1, %v36_v13 }
  0x15   :  { %617 = vmatmul.mubr.msk.bf16.vlgmr.msra.gmra.mrb[0].mxu1 %vm81_vm1, %v33_v15  ;;  %277 = vmatpush1.bf16.msra.mxu0 %v632_v14 }
  0x16   :  { %278 = vmatprep.subr.bf16.mxu0 %v637_v16  ;;  %308 = vmatprep.mubr.bf16.mxu0 %v692_v19 }
  0x19   :  { %279 = vmatpush1.bf16.msra.mxu0 %v635_v17 }
  0x1a   :  { %280 = vmatprep.subr.bf16.mxu0 %v640_v18 }
  0x1b   :  { %16 = vsyncpa [#allocation4], 0  ;;  %v641_v22 = vld [vmem:[%s877_s3 + $0x30] ss:$8 sps:$4 sm:$0xff]   ;;  %v518_v23 = vld [vmem:[%s874_s0 + $0x4] sm:$0x3]  ;;  %v223_v45 = vlaneseq }
  0x1c   :  { %v39_v24 = vpack.c.bf16 %v518_v23, %v518_v23  ;;  %v644_v25 = vld [vmem:[%s879_s5 + $0x40] sm:$0xff]   ;;  %v646_v27 = vld [vmem:[%s879_s5 + $0x48] sm:$0xff]   ;;  %v648_v29 = vld [vmem:[%s879_s5 + $0x50] sm:$0xff]   ;;  %vm200_vm2 = vcmask 517120   ;;  %vm497_vm3 = vcmask 1024   ;;  %s693_s27 = smov [#allocation3]  }
  0x1d   :  { %281 = vmatpush1.bf16.msra.mxu0 %v638_v20  ;;  %v645_v26 = vld [vmem:[%s879_s5] sm:$0xff]   ;;  %574 = vmatprep.subr.bf16.mxu1 %v644_v25  ;;  %v647_v28 = vld [vmem:[%s879_s5 + $0x8] sm:$0xff]   ;;  %v649_v30 = vld [vmem:[%s879_s5 + $0x10] sm:$0xff]   ;;  %v224_v53 = vshrl.u32 %v223_v45, 7  ;;  %s505_s28 = sshll.u32 %s693_s27, 4  ;;  %s506_s28 = int_to_ptr.vmem [resolvable:$true] %s505_s28 }
  0x1e   :  { %282 = vmatprep.subr.bf16.mxu0 %v643_v21  ;;  %575 = vmatpush3.bf16.msra.mxu1 %v645_v26  ;;  %v650_v31 = vld [vmem:[%s879_s5 + $0x58] sm:$0xff]   ;;  %v652_v33 = vld [vmem:[%s879_s5 + $0x60] sm:$0xff]   ;;  %v654_v35 = vld [vmem:[%s879_s5 + $0x68] sm:$0xff]   ;;  %s666_s1 = scalar_lea.vmem %s506_s28, 32  ;;  %p671_p1 = scmp.lt.s32.totalorder %s506_s28, %s506_s28 }
  0x1f   :  { %576 = vmatprep.subr.bf16.mxu1 %v646_v27  ;;  %v651_v32 = vld [vmem:[%s879_s5 + $0x18] sm:$0xff]   ;;  %v653_v34 = vld [vmem:[%s879_s5 + $0x20] sm:$0xff]   ;;  %v655_v36 = vld [vmem:[%s879_s5 + $0x28] sm:$0xff]   ;;  %v225_v55 = vsub.s32 0, %v224_v53  ;;  %v229_v57 = vsub.s32 1, %v224_v53  ;;  %p667_p0 = scmp.ne.s32.totalorder %s506_s28, %s666_s1  ;;  %p672_p2 = scmp.lt.s32.totalorder %s666_s1, %s666_s1 }
  0x20   :  { %v656_v37 = vld [vmem:[%s879_s5 + $0x70] sm:$0xff]   ;;  %v658_v39 = vld [vmem:[%s879_s5 + $0x78] sm:$0xff]   ;;  %v537_v44 = vld [vmem:[%s876_s2] ss:$0 sm:$0xff] }
  0x21   :  { %283 = vmatpush1.bf16.msra.mxu0 %v641_v22  ;;  %v657_v38 = vld [vmem:[%s879_s5 + $0x30] sm:$0xff]   ;;  %v659_v40 = vld [vmem:[%s879_s5 + $0x38] sm:$0xff]   ;;  %v221_v56 = vld [vmem:[%s878_s4] sm:$0x3]  ;;  %p673_p3 = por %p672_p2, %p671_p1 }
  0x22   :  { %577 = vmatpush3.bf16.msra.mxu1 %v647_v28  ;;  %v226_v58 = vrot.slane %v221_v56, %v225_v55  ;;  %v230_v59 = vrot.slane %v221_v56, %v229_v57  ;;  %v547_v12 = vld [vmem:[#allocation2] ss:$0 sm:$0xff] }
  0x23   :  { %578 = vmatprep.subr.bf16.mxu1 %v648_v29  ;;  %p674_p4 = pnand %p673_p3, %p667_p0 }
  0x24   :  { %546 = vmatmul.mubr.msk.bf16.vlgmr.msra.gmra.mrb[4].mxu0 %vm81_vm1, %v39_v24 }
  0x26   :  { %579 = vmatpush3.bf16.msra.mxu1 %v649_v30 }
  0x27   :  { %580 = vmatprep.subr.bf16.mxu1 %v650_v31 }
  0x2a   :  { %581 = vmatpush3.bf16.msra.mxu1 %v651_v32 }
  0x2b   :  { %582 = vmatprep.subr.bf16.mxu1 %v652_v33 }
  0x2e   :  { %583 = vmatpush3.bf16.msra.mxu1 %v653_v34 }
  0x2f   :  { %584 = vmatprep.subr.bf16.mxu1 %v654_v35 }
  0x32   :  { %585 = vmatpush3.bf16.msra.mxu1 %v655_v36 }
  0x33   :  { %586 = vmatprep.subr.bf16.mxu1 %v656_v37 }
  0x36   :  { %587 = vmatpush3.bf16.msra.mxu1 %v657_v38 }
  0x37   :  { %588 = vmatprep.subr.bf16.mxu1 %v658_v39 }
  0x3a   :  { %589 = vmatpush3.bf16.msra.mxu1 %v659_v40 }
  0xe7   :  { %v119_v41 = vpop.f32.mrb[0].mxu0 }
  0xe8   :  { %v186_v42 = vpop.f32.mrb[0].mxu1  ;;  %v606_v43 = vpop.f32.mrb[1].mxu0 }
  0xe9   :  { %v187_v46 = vadd.f32 %v186_v42, %v119_v41  ;;  %v618_v47 = vpop.f32.mrb[1].mxu1  ;;  %v122_v48 = vpop.f32.mrb[2].mxu0 }
  0xea   :  { %v189_v49 = vpop.f32.mrb[2].mxu1  ;;  %v607_v50 = vpop.f32.mrb[3].mxu0 }
  0xeb   :  { %v619_v51 = vpop.f32.mrb[3].mxu1  ;;  %v199_v52 = vadd.f32 %v537_v44, %v187_v46 }
  0xed   :  { %v201_v54 = vsel %vm200_vm2, %v199_v52, -inf }
  0xee   :  { %202 = vmax.xlane.f32.xlu0 %v201_v54 }
  0xf7   :  { %v310_v60 = vpop.f32.mrb[4].mxu0 }
  0xf8   :  { %v311_v61 = vadd.f32 %v310_v60, %v226_v58  ;;  %v312_v62 = vpop.f32.mrb[5].mxu0 }
  0xf9   :  { %v313_v63 = vadd.f32 %v312_v62, %v230_v59  ;;  %v314_v0 = vpop.f32.mrb[6].mxu0 }
  0xfa   :  { %v317_v1 = vmax.f32 %v311_v61, 0.0  ;;  %v315_v2 = vpop.f32.mrb[7].mxu0 }
  0xfb   :  { %v318_v3 = vmax.f32 %v313_v63, 0.0 }
  0xfc   :  { %v319_v4 = vpack.c.bf16 %v317_v1, %v317_v1 }
  0xfd   :  { %v320_v5 = vpack.c.bf16 %v318_v3, %v318_v3 }
  0xff   :  { %488 = vmatprep.mubr.bf16.mxu1 %v320_v5 }
 0x100   :  { %489 = vmatmul.mubr.bf16.vlgmr.msra.gmra.mrb[4].mxu1 %v319_v4 }
 0x17b   :  { %v203_v6 = vpop.xlane.xlu0 %202 }
 0x17c   :  { %v204_v7 = vsub.f32 %v199_v52, %v203_v6 }
 0x17e   :  { %v205_v8 = vmul.f32 1.442695, %v204_v7 }
 0x180   :  { %660 = vpow2.f32 %v205_v8 }
 0x18a   :  { %v661_v9 = vpop.eup %660 }
 0x18b   :  { %v207_v10 = vsel %vm200_vm2, %v661_v9, 0.0 }
 0x18c   :  { %208 = vadd.xlane.f32.xlu0 %v207_v10 }
 0x1d3   :  { %v590_v11 = vpop.f32.mrb[4].mxu1 }
 0x1d4   :  { %v591_v13 = vpop.f32.mrb[5].mxu1 }
 0x1d5   :  { %v592_v14 = vadd.f32 %v591_v13, %v590_v11  ;;  %v593_v15 = vpop.f32.mrb[6].mxu1 }
 0x1d6   :  { %v594_v16 = vpop.f32.mrb[7].mxu1 }
 0x1d7   :  { %v491_v17 = vadd.f32 %v592_v14, %v547_v12 }
 0x1d9   :  { %662 = vtanh.f32 %v491_v17 }
 0x1e3   :  { %v663_v18 = vpop.eup %662 }
 0x1e4   :  { %498 = vst.msk [vmem:[%s882_s8] sm:$0x3] %vm497_vm3, %v663_v18 }
 0x219   :  { %v209_v19 = vpop.xlane.xlu0 %208 }
 0x21a   :  { %664 = vrcp.f32 %v209_v19 }
 0x224   :  { %v665_v20 = vpop.eup %664 }
 0x225   :  { %v211_v21 = vmul.f32 %v665_v20, %v661_v9 }
 0x227   :  { %212 = vst.msk [vmem:[#allocation3] sm:$0x3] %vm200_vm2, %v211_v21 }
 0x228   :  { %677 = shalt.err (!%p674_p4)
}
 0x229   :  { %s678_s8 = scalar_lea.hbm %s881_s7, 32 }
 0x22a   :  { %p679_p5 = scmp.ne.s32.totalorder %s881_s7, %s678_s8  ;;  %p682_p6 = scmp.lt.u32.totalorder %s678_s8, %s881_s7 }
 0x22c   :  { %p684_p7 = pnand %p682_p6, %p679_p5 }
 0x22e   :  { %687 = shalt.err (!%p684_p7)
}
 0x22f   :  { %508 = dma.vmem_to_hbm [thread:$0]  %s506_s28, 32, %s881_s7, [#allocation4]  }
 0x230   :  { %688 = dma.done.wait [#allocation4], 32  }
 0x231   :  { %689 = vsyncadd [#allocation4], 4294967264 }
 0x232   :  { %516 = vsyncpa [#allocation4], 1 }

// kernel: gomoku_forward.2
= control target key start
LH: loop header
LB: loop body
LE: loop exit
PB: predicated region body
PF: predicated region fallthrough
CT: control target
= control target key end

     0   :  { %s3483_s30 = smov 0   ;;  %s3485_s10 = smov 0   ;;  %s4704_s0 = inlined_call_operand.vmem [shape: f32[128,36], index: 0, kind: input, shape index: {}]   ;;  %s4705_s1 = inlined_call_operand.vmem [shape: bf16[27,32], index: 1, kind: input, shape index: {}]   ;;  %s4706_s2 = inlined_call_operand.vmem [shape: f32[1,32], index: 2, kind: input, shape index: {}]   ;;  %s4707_s3 = inlined_call_operand.vmem [shape: bf16[2,288,32], index: 3, kind: input, shape index: {}]   ;;  %s4708_s4 = inlined_call_operand.vmem [shape: f32[2,1,32], index: 4, kind: input, shape index: {}]   ;;  %s4709_s5 = inlined_call_operand.vmem [shape: bf16[2,288,32], index: 5, kind: input, shape index: {}]   ;;  %s4710_s6 = inlined_call_operand.vmem [shape: f32[2,1,32], index: 6, kind: input, shape index: {}]   ;;  %s4711_s7 = inlined_call_operand.vmem [shape: bf16[32,3], index: 7, kind: input, shape index: {}]   ;;  %s4712_s8 = inlined_call_operand.vmem [shape: f32[1,3], index: 8, kind: input, shape index: {}]   ;;  %s4713_s9 = inlined_call_operand.vmem [shape: f32[128,3], index: 9, kind: output, shape index: {}]  }
   0x1   :  { %s3487_s11 = smov 0   ;;  %s3489_s12 = smov 0  }
   0x2   :  { %s3491_s13 = smov 0  }
   0x3 LB: > { %4725 = sst [smem:[#allocation4_spill]] %s3415_s12  ;;  %s28_s14 = sadd.s32 1, %s3411_s11  ;;  %s3419_s13 = sphi %s3491_s13, %s19_s13   ;;  %s3415_s12 = sphi %s3489_s12, %s4780_s12   ;;  %s3411_s11 = sphi %s3487_s11, %s4782_s11   ;;  %s3407_s10 = sphi %s3485_s10, %s4778_s10   ;;  %s3403_s30 = sphi %s3483_s30, %s4781_s30  }
   0x4   : > { %s31_s15 = sadd.s32 1, %s3415_s12  ;;  %p29_p0 = scmp.ge.s32.totalorder %s28_s14, 2 }
   0x5   : > { %p2990_p1 = scmp.ge.s32.totalorder %s3419_s13, 1  ;;  %p336_p2 = scmp.lt.s32.totalorder %s3419_s13, 5 }
   0x6   : > { %s4784_s14 = smov (%p29_p0, %s28_s14), 0  ;;  %s4786_s15 = smov (!%p29_p0, %s31_s15), %s3415_s12 }
   0x7   : > { %4726 = sst [smem:[#allocation5_spill]] %s4784_s14  ;;  %p337_p3 = pnand %p2990_p1, %p336_p2 }
   0x8   : > { %p33_p4 = scmp.ge.s32.totalorder %s4786_s15, 2 }
   0x9   : > { %340 = sbr.rel (%p337_p3) target bundleno = 1506 (0x5e2), region = 56 }
   0xa   : > { %s4788_s15 = smov (%p33_p4, %s4786_s15), 0 }
   0xb   : > { %4727 = sst [smem:[#allocation6_spill]] %s4788_s15 }
  0x10   : > { %s2991_s16 = sshll.u32 %s3407_s10, 3  ;;  %p394_p5 = scmp.lt.s32.totalorder %s3403_s30, 1 }
  0x11   : > { %p389_p6 = scmp.lt.s32.totalorder %s2991_s16, 15  ;;  %p2997_p7 = scmp.ne.s32.totalorder %s3403_s30, 0 }
  0x12   : > { %s3517_s17 = scalar_select %p394_p5, %s3403_s30, 1 }
  0x13   : > { %s4790_s16 = smov (!%p389_p6, %s2991_s16), 15  ;;  %420 = sbr.rel (%p2997_p7) target bundleno = 251 (0xfb), region = 60 }
  0x14   : > { %s3221_s18 = smul.u32 144, %s3517_s17  ;;  %s401_s21 = scalar_lea.vmem %s4708_s4, %s3517_s17  ;;  %v3274_v0 = vld [vmem:[%s4705_s1] sm:$0xff] (!%p2997_p7)   ;;  %vm468_vm0 = vcmask (!%p2997_p7), 1044480   ;;  %v3275_v1 = vld [vmem:[%s4705_s1 + $0x8] sm:$0x3f] (!%p2997_p7)   ;;  %vm469_vm1 = vcmask (!%p2997_p7), 1045504  }
  0x15   : > { %s2992_s22 = sshll.u32 %s4790_s16, 3  ;;  %s409_s25 = scalar_lea.vmem %s4710_s6, %s3517_s17  ;;  %3165 = vmatprep.subr.bf16.mxu0 (!%p2997_p7), %v3274_v0  ;;  %3213 = vmatprep.subr.bf16.mxu1 (!%p2997_p7), %v3274_v0  ;;  %vm455_vm2 = vcmask (!%p2997_p7), 220160   ;;  %v3421_v5 = vmov (!%p2997_p7), 65535   ;;  %v2998_v18 = vld [vmem:[%s4706_s2] ss:$0 sm:$0xff] (!%p2997_p7)  ;;  %vm548_vm3 = vcmask (!%p2997_p7), 261120  }
  0x16   : > { %s3531_s28 = scalar_lea.vmem %s4704_s0, %s2992_s22  ;;  %s3536_s15 = scalar_lea.vmem %s4707_s3, %s3221_s18  ;;  %3166 = vmatpush3.bf16.msra.mxu0 (!%p2997_p7), %v3274_v0  ;;  %3215 = vmatpush3.bf16.msra.mxu1 (!%p2997_p7), %v3274_v0  ;;  %v470_v6 = vsel (!%p2997_p7), %vm468_vm0, 4294967295, %v3421_v5 }
  0x17   : > { %s3541_s19 = scalar_lea.vmem %s4709_s5, %s3221_s18  ;;  %s3546_s23 = scalar_lea.vmem %s4713_s9, %s2992_s22  ;;  %v421_v2 = vld [vmem:[%s3531_s28] sm:$0xff] (!%p2997_p7)  ;;  %v422_v3 = vld [vmem:[%s3531_s28 + $0x8] sm:$0xff] (!%p2997_p7)  ;;  %v423_v9 = vld [vmem:[%s3531_s28 + $0x10] sm:$0xff] (!%p2997_p7)  ;;  %v471_v10 = vsel (!%p2997_p7), %vm469_vm1, %v470_v6, 0 }
  0x18   : > { %v425_v4 = vld [vmem:[%s3531_s28 + $0x20] sm:$0xff] (!%p2997_p7)  ;;  %v429_v7 = vpack.c.bf16 (!%p2997_p7), %v422_v3, %v421_v2  ;;  %v426_v8 = vld [vmem:[%s3531_s28 + $0x28] sm:$0xff] (!%p2997_p7)  ;;  %v424_v12 = vld [vmem:[%s3531_s28 + $0x18] sm:$0xff] (!%p2997_p7)  ;;  %v473_v15 = vand.u32 (!%p2997_p7), %v3275_v1, %v471_v10 }
  0x19   : > { %v431_v11 = vpack.c.bf16 (!%p2997_p7), %v426_v8, %v425_v4  ;;  %v427_v13 = vld [vmem:[%s3531_s28 + $0x30] sm:$0xff] (!%p2997_p7)  ;;  %v428_v14 = vld [vmem:[%s3531_s28 + $0x38] sm:$0xff] (!%p2997_p7)  ;;  %v430_v16 = vpack.c.bf16 (!%p2997_p7), %v424_v12, %v423_v9 }
  0x1a   : > { %3169 = vmatprep.mubr.msk.bf16.mxu0 %vm455_vm2, %v429_v7  ;;  %3167 = vmatprep.subr.bf16.mxu0 %v473_v15  ;;  %v432_v17 = vpack.c.bf16 %v428_v14, %v427_v13 }
  0x1b   : > { %3173 = vmatprep.mubr.msk.bf16.mxu1 %vm455_vm2, %v431_v11  ;;  %3214 = vmatprep.subr.bf16.mxu1 %v473_v15 }
  0x1c   : > { %3168 = vmatpush3.bf16.msra.mxu0 %v473_v15  ;;  %3216 = vmatpush3.bf16.msra.mxu1 %v473_v15 }
  0x1f   : > { %3170 = vmatmul.mubr.msk.bf16.vlgmr.msra.gmra.mrb[0].mxu0 %vm455_vm2, %v430_v16  ;;  %3174 = vmatmul.mubr.msk.bf16.vlgmr.msra.gmra.mrb[0].mxu1 %vm455_vm2, %v432_v17 }
  0xf2   : > { %v3171_v19 = vpop.f32.mrb[0].mxu0  ;;  %v3175_v20 = vpop.f32.mrb[0].mxu1 }
  0xf3   : > { %v518_v21 = vadd.f32 %v3171_v19, %v2998_v18  ;;  %v534_v22 = vadd.f32 %v3175_v20, %v2998_v18  ;;  %v509_v23 = vpop.f32.mrb[1].mxu0  ;;  %v525_v24 = vpop.f32.mrb[1].mxu1 }
  0xf4   : > { %v510_v25 = vadd.f32 %v2998_v18, %v509_v23  ;;  %v526_v26 = vadd.f32 %v2998_v18, %v525_v24  ;;  %v3172_v27 = vpop.f32.mrb[2].mxu0  ;;  %v3176_v28 = vpop.f32.mrb[2].mxu1 }
  0xf5   : > { %v542_v29 = vmax.f32 %v518_v21, 0.0  ;;  %v546_v30 = vmax.f32 %v534_v22, 0.0  ;;  %v521_v31 = vadd.f32 %v3172_v27, %v2998_v18  ;;  %v537_v32 = vadd.f32 %v3176_v28, %v2998_v18  ;;  %v512_v33 = vpop.f32.mrb[3].mxu0  ;;  %v528_v34 = vpop.f32.mrb[3].mxu1 }
  0xf6   : > { %v540_v35 = vmax.f32 %v510_v25, 0.0  ;;  %v544_v36 = vmax.f32 %v526_v26, 0.0  ;;  %v513_v37 = vadd.f32 %v2998_v18, %v512_v33  ;;  %v529_v38 = vadd.f32 %v2998_v18, %v528_v34 }
  0xf7   : > { %551 = vst.msk [vmem:[#allocation2 + $0x10] sm:$0xff] %vm548_vm3, %v542_v29  ;;  %555 = vst.msk [vmem:[#allocation2 + $0x30] sm:$0xff] %vm548_vm3, %v546_v30  ;;  %v543_v39 = vmax.f32 %v521_v31, 0.0  ;;  %v547_v40 = vmax.f32 %v537_v32, 0.0 }
  0xf8   : > { %549 = vst.msk [vmem:[#allocation2] sm:$0xff] %vm548_vm3, %v540_v35  ;;  %553 = vst.msk [vmem:[#allocation2 + $0x20] sm:$0xff] %vm548_vm3, %v544_v36  ;;  %v541_v41 = vmax.f32 %v513_v37, 0.0  ;;  %v545_v42 = vmax.f32 %v529_v38, 0.0 }
  0xf9   : > { %552 = vst.msk [vmem:[#allocation2 + $0x18] sm:$0xff] %vm548_vm3, %v543_v39  ;;  %556 = vst.msk [vmem:[#allocation2 + $0x38] sm:$0xff] %vm548_vm3, %v547_v40 }
  0xfa   : > { %550 = vst.msk [vmem:[#allocation2 + $0x8] sm:$0xff] %vm548_vm3, %v541_v41  ;;  %554 = vst.msk [vmem:[#allocation2 + $0x28] sm:$0xff] %vm548_vm3, %v545_v42 }
  0xfb PF: > { %v3579_v43 = vld [vmem:[%s3531_s28] sm:$0xff]  ;;  %v3422_v44 = vmov 32   ;;  %v3423_v45 = vmov 28   ;;  %v3586_v46 = vld [vmem:[%s3531_s28 + $0x8] sm:$0xff]  ;;  %v3591_v47 = vld [vmem:[%s3531_s28 + $0x18] sm:$0xff]  ;;  %v3424_v48 = vmov 33   ;;  %v574_v2 = vlaneseq }
  0xfc   : > { %3276 = vset.pattern.permute.xlu0 %v3422_v44  ;;  %3277 = vset.pattern.permute.xlu1 %v3423_v45  ;;  %v3597_v49 = vld [vmem:[%s3531_s28 + $0x28] sm:$0xff]  ;;  %v3600_v50 = vld [vmem:[%s3531_s28 + $0x38] sm:$0xff]  ;;  %v3425_v51 = vmov 29   ;;  %v3426_v52 = vmov 34   ;;  %v3611_v53 = vld [vmem:[%s3531_s28 + $0x10] sm:$0xff]  ;;  %v3427_v55 = vmov 30  }
  0xfd   : > { %976 = vperm.xlu0 %3276, %v3579_v43   ;;  %660 = vperm.xlu1 %3277, %v3579_v43   ;;  %v3616_v54 = vld [vmem:[%s3531_s28 + $0x20] sm:$0xff]  ;;  %v3622_v56 = vld [vmem:[%s3531_s28 + $0x30] sm:$0xff]  ;;  %v3428_v57 = vmov 27   ;;  %vm641_vm4 = vcmask 261120   ;;  %v3702_v3 = vshrl.u32 %v574_v2, 7  ;;  %s3429_s27 = smov 32  }
  0xfe   : > { %v3673_v61 = vld [vmem:[#allocation2 + $0x10] sm:$0xff]  ;;  %s3430_s29 = smov 64   ;;  %v3343_v32 = vld [vmem:[%s3536_s15 + $0x40] sm:$0xff]   ;;  %s3431_s10 = smov 96   ;;  %v3345_v38 = vld [vmem:[%s3536_s15 + $0x48] sm:$0xff]   ;;  %vm738_vm7 = vcmask 523520  }
  0xff   : > { %v3666_v58 = vld [vmem:[#allocation2] sm:$0xff]  ;;  %4731 = vst [vmem:[#allocation10_spill] sm:$0xff] %v3673_v61  ;;  %v3681_v1 = vld [vmem:[#allocation2 + $0x30] sm:$0xff]  ;;  %960 = vst.msk [vmem:[#allocation3 + $0x38] sm:$0xff] %vm641_vm4, %v3673_v61  ;;  %vm755_vm5 = vcmp.lt.s32.totalorder %v3702_v3, 7  ;;  %vm576_vm6 = vcmp.lt.s32.totalorder %v3702_v3, 1  ;;  %3067 = vmatprep.subr.bf16.mxu0 %v3343_v32 }
 0x100   : > { %4728 = vst [vmem:[#allocation7_spill] sm:$0xff] %v3666_v58  ;;  %v3671_v60 = vld [vmem:[#allocation2 + $0x38] sm:$0xff]  ;;  %v3677_v63 = vld [vmem:[#allocation2 + $0x20] sm:$0xff]  ;;  %4735 = vst [vmem:[#allocation14_spill] sm:$0xff] %v3681_v1  ;;  %v747_v4 = vrot.slane %v3666_v58, 1  ;;  %v566_v17 = vrot.slane %v3666_v58, 7 }
 0x101   : > { %981 = vperm.xlu0 %3276, %v3586_v46   ;;  %665 = vperm.xlu1 %3277, %v3586_v46   ;;  %v3668_v59 = vld [vmem:[#allocation2 + $0x8] sm:$0xff]  ;;  %4730 = vst [vmem:[#allocation9_spill] sm:$0xff] %v3671_v60  ;;  %v3675_v62 = vld [vmem:[#allocation2 + $0x18] sm:$0xff]  ;;  %4733 = vst [vmem:[#allocation12_spill] sm:$0xff] %v3677_v63  ;;  %v754_v20 = vrot.slane %v3671_v60, 1  ;;  %v749_v25 = vrot.slane %v3673_v61, 1 }
 0x102   : > { %4729 = vst [vmem:[#allocation8_spill] sm:$0xff] %v3668_v59  ;;  %4732 = vst [vmem:[#allocation11_spill] sm:$0xff] %v3675_v62  ;;  %v3679_v0 = vld [vmem:[#allocation2 + $0x28] sm:$0xff]  ;;  %v748_v5 = vrot.slane %v3668_v59, 1  ;;  %v567_v19 = vrot.slane %v3668_v59, 7  ;;  %v3344_v34 = vld [vmem:[%s3536_s15] sm:$0xff]  }
 0x103   : > { %4734 = vst [vmem:[#allocation13_spill] sm:$0xff] %v3679_v0  ;;  %958 = vst.msk [vmem:[#allocation3 + $0x8] sm:$0xff] %vm641_vm4, %v3666_v58  ;;  %v3748_v26 = vsel %vm755_vm5, %v754_v20, %v747_v4  ;;  %v568_v37 = vrot.slane %v3673_v61, 7  ;;  %3068 = vmatpush3.bf16.msra.mxu0 %v3344_v34  ;;  %v3346_v39 = vld [vmem:[%s3536_s15 + $0x8] sm:$0xff]   ;;  %vm852_vm8 = vcmask 785920   ;;  %vm949_vm9 = vcmask 1048320  }
 0x104   : > { %959 = vst.msk [vmem:[#allocation3 + $0x20] sm:$0xff] %vm641_vm4, %v3668_v59  ;;  %961 = vst.msk [vmem:[#allocation3 + $0x50] sm:$0xff] %vm641_vm4, %v3675_v62  ;;  %v3711_v6 = vsel %vm755_vm5, %v747_v4, %v748_v5  ;;  %v3739_v22 = vsel %vm576_vm6, %v566_v17, %v567_v19  ;;  %v3759_v30 = vsel %vm755_vm5, %v748_v5, %v749_v25  ;;  %3069 = vmatprep.subr.bf16.mxu0 %v3345_v38  ;;  %v3347_v4 = vld [vmem:[%s3536_s15 + $0x50] sm:$0xff]   ;;  %v3353_v32 = vld [vmem:[%s3536_s15 + $0x68] sm:$0xff]   ;;  %p3051_p8 = scmp.ne.s32.totalorder %s3403_s30, 1 }
 0x105   : > { %991 = vperm.xlu0 %3276, %v3591_v47   ;;  %3278 = vset.pattern.permute.xlu1 %v3424_v48  ;;  %962 = vst.msk [vmem:[#allocation3 + $0x68] sm:$0xff] %vm641_vm4, %v3677_v63  ;;  %963 = vst.msk [vmem:[#allocation3 + $0x80] sm:$0xff] %vm641_vm4, %v3679_v0  ;;  %v3783_v2 = vsel %vm576_vm6, %v567_v19, %v568_v37  ;;  %v3348_v5 = vld [vmem:[%s3536_s15 + $0x10] sm:$0xff]   ;;  %v3354_v34 = vld [vmem:[%s3536_s15 + $0x28] sm:$0xff]   ;;  %v750_v38 = vrot.slane %v3675_v62, 1  ;;  %vm2867_vm10 = vcmask (!%p3051_p8), 23552  }
 0x106   : > { %1077 = vperm.xlu1 %3278, %v3586_v46   ;;  %964 = vst.msk [vmem:[#allocation3 + $0x98] sm:$0xff] %vm641_vm4, %v3681_v1  ;;  %965 = vst.msk [vmem:[#allocation3 + $0xb0] sm:$0xff] %vm641_vm4, %v3671_v60 }
 0x107   : > { %3070 = vmatpush3.bf16.msra.mxu0 %v3346_v39  ;;  %v573_v39 = vrot.slane %v3671_v60, 7 }
 0x108   : > { %3071 = vmatprep.subr.bf16.mxu0 %v3347_v4  ;;  %v3355_v4 = vld [vmem:[%s3536_s15 + $0x70] sm:$0xff]  }
 0x109   : > { %1001 = vperm.xlu0 %3276, %v3597_v49  }
 0x10a   : > { %3279 = vset.pattern.permute.xlu1 %v3425_v51 }
 0x10b   : > { %774 = vperm.xlu1 %3279, %v3579_v43   ;;  %3072 = vmatpush3.bf16.msra.mxu0 %v3348_v5  ;;  %v3356_v5 = vld [vmem:[%s3536_s15 + $0x30] sm:$0xff]  }
 0x10d   : > { %1011 = vperm.xlu0 %3276, %v3600_v50  }
 0x10f   : > { %3280 = vset.pattern.permute.xlu1 %v3426_v52 }
 0x110   : > { %1168 = vperm.xlu1 %3280, %v3579_v43  }
 0x111   : > { %3295 = vset.pattern.permute.xlu0 %v3424_v48 }
 0x112   : > { %1072 = vperm.xlu0 %3295, %v3579_v43  }
 0x114   : > { %1173 = vperm.xlu1 %3280, %v3586_v46  }
 0x116   : > { %1082 = vperm.xlu0 %3295, %v3611_v53  }
 0x118   : > { %3281 = vset.pattern.permute.xlu1 %v3427_v55 }
 0x119   : > { %876 = vperm.xlu1 %3281, %v3586_v46  }
 0x11a   : > { %1092 = vperm.xlu0 %3295, %v3616_v54  }
 0x11d   : > { %3282 = vset.pattern.permute.xlu1 %v3422_v44 }
 0x11e   : > { %1102 = vperm.xlu0 %3295, %v3622_v56   ;;  %986 = vperm.xlu1 %3282, %v3611_v53  }
 0x122   : > { %3297 = vset.pattern.permute.xlu0 %v3425_v51  ;;  %3283 = vset.pattern.permute.xlu1 %v3423_v45 }
 0x123   : > { %779 = vperm.xlu0 %3297, %v3586_v46   ;;  %670 = vperm.xlu1 %3283, %v3611_v53  }
 0x127   : > { %789 = vperm.xlu0 %3297, %v3591_v47   ;;  %675 = vperm.xlu1 %3283, %v3591_v47  }
 0x12b   : > { %799 = vperm.xlu0 %3297, %v3597_v49   ;;  %3284 = vset.pattern.permute.xlu1 %v3424_v48 }
 0x12c   : > { %1087 = vperm.xlu1 %3284, %v3591_v47  }
 0x12f   : > { %809 = vperm.xlu0 %3297, %v3600_v50  }
 0x130   : > { %3285 = vset.pattern.permute.xlu1 %v3425_v51 }
 0x131   : > { %784 = vperm.xlu1 %3285, %v3611_v53  }
 0x133   : > { %3300 = vset.pattern.permute.xlu0 %v3427_v55 }
 0x134   : > { %871 = vperm.xlu0 %3300, %v3579_v43  }
 0x135   : > { %3286 = vset.pattern.permute.xlu1 %v3426_v52 }
 0x136   : > { %1178 = vperm.xlu1 %3286, %v3611_v53  }
 0x138   : > { %881 = vperm.xlu0 %3300, %v3611_v53  }
 0x13a   : > { %1183 = vperm.xlu1 %3286, %v3591_v47  }
 0x13c   : > { %891 = vperm.xlu0 %3300, %v3616_v54  }
 0x13e   : > { %3287 = vset.pattern.permute.xlu1 %v3427_v55 }
 0x13f   : > { %886 = vperm.xlu1 %3287, %v3591_v47  }
 0x140   : > { %901 = vperm.xlu0 %3300, %v3622_v56  }
 0x143   : > { %3288 = vset.pattern.permute.xlu1 %v3422_v44 }
 0x144   : > { %996 = vperm.xlu1 %3288, %v3616_v54   ;;  %3304 = vset.pattern.permute.xlu0 %v3428_v57 }
 0x145   : > { %600 = vperm.xlu0 %3304, %v3586_v46  }
 0x148   : > { %3289 = vset.pattern.permute.xlu1 %v3423_v45 }
 0x149   : > { %680 = vperm.xlu1 %3289, %v3616_v54  }
 0x14d   : > { %685 = vperm.xlu1 %3289, %v3597_v49  }
 0x151   : > { %3290 = vset.pattern.permute.xlu1 %v3424_v48 }
 0x152   : > { %1097 = vperm.xlu1 %3290, %v3597_v49  }
 0x156   : > { %3291 = vset.pattern.permute.xlu1 %v3425_v51 }
 0x157   : > { %794 = vperm.xlu1 %3291, %v3616_v54  }
 0x15b   : > { %3292 = vset.pattern.permute.xlu1 %v3426_v52 }
 0x15c   : > { %1188 = vperm.xlu1 %3292, %v3616_v54  }
 0x160   : > { %1193 = vperm.xlu1 %3292, %v3597_v49  }
 0x164   : > { %3293 = vset.pattern.permute.xlu1 %v3427_v55 }
 0x165   : > { %896 = vperm.xlu1 %3293, %v3597_v49  }
 0x169   : > { %3294 = vset.pattern.permute.xlu1 %v3422_v44 }
 0x16a   : > { %1006 = vperm.xlu1 %3294, %v3622_v56  }
 0x16e   : > { %3296 = vset.pattern.permute.xlu1 %v3423_v45 }
 0x16f   : > { %690 = vperm.xlu1 %3296, %v3622_v56  }
 0x173   : > { %695 = vperm.xlu1 %3296, %v3600_v50  }
 0x177   : > { %3298 = vset.pattern.permute.xlu1 %v3424_v48 }
 0x178   : > { %1107 = vperm.xlu1 %3298, %v3600_v50  }
 0x17c   : > { %v977_v7 = vpop.permute.xlu0 %976  ;;  %3299 = vset.pattern.permute.xlu1 %v3425_v51  ;;  %v661_v8 = vpop.permute.xlu1 %660 }
 0x17d   : > { %v1014_v9 = vmul.f32 %v977_v7, %v3711_v6  ;;  %804 = vperm.xlu1 %3299, %v3622_v56   ;;  %v698_v12 = vmul.f32 %v661_v8, %v3671_v60 }
 0x17f   : > { %1030 = vrot.lane.b32.xlu0 %v1014_v9, %s3429_s27 }
 0x180   : > { %v982_v10 = vpop.permute.xlu0 %981  ;;  %v666_v11 = vpop.permute.xlu1 %665 }
 0x181   : > { %3301 = vset.pattern.permute.xlu1 %v3426_v52  ;;  %v1015_v35 = vmul.f32 %v982_v10, %v3759_v30  ;;  %v699_v42 = vmul.f32 %v666_v11, %v3666_v58  ;;  %v3349_v11 = vld [vmem:[%s3536_s15 + $0x58] sm:$0xff]  }
 0x182   : > { %1198 = vperm.xlu1 %3301, %v3622_v56   ;;  %3073 = vmatprep.subr.bf16.mxu0 %v3349_v11  ;;  %v3357_v11 = vld [vmem:[%s3536_s15 + $0x78] sm:$0xff]  }
 0x183   : > { %714 = vrot.lane.b32.xlu0 %v698_v12, %s3429_s27  ;;  %v3350_v12 = vld [vmem:[%s3536_s15 + $0x18] sm:$0xff]  }
 0x184   : > { %v3721_v13 = vpop.permute.xlu0 %991  ;;  %3074 = vmatpush3.bf16.msra.mxu0 %v3350_v12 }
 0x185   : > { %v1078_v14 = vpop.permute.xlu1 %1077 }
 0x186   : > { %1203 = vperm.xlu1 %3301, %v3600_v50   ;;  %v1111_v7 = vmul.f32 %v1078_v14, %v3783_v2  ;;  %v3351_v14 = vld [vmem:[%s3536_s15 + $0x60] sm:$0xff]  }
 0x187   : > { %3075 = vmatprep.subr.bf16.mxu0 %v3351_v14  ;;  %v3358_v14 = vld [vmem:[%s3536_s15 + $0x38] sm:$0xff]  }
 0x188   : > { %v3724_v15 = vpop.permute.xlu0 %1001 }
 0x18a   : > { %3302 = vset.pattern.permute.xlu1 %v3427_v55  ;;  %v775_v16 = vpop.permute.xlu1 %774 }
 0x18b   : > { %906 = vperm.xlu1 %3302, %v3600_v50   ;;  %v812_v29 = vmul.f32 %v775_v16, %v3748_v26 }
 0x18c   : > { %v3729_v18 = vpop.permute.xlu0 %1011 }
 0x18f   : > { %v1169_v21 = vpop.permute.xlu1 %1168  ;;  %3303 = vset.pattern.permute.xlu1 %v3428_v57 }
 0x190   : > { %595 = vperm.xlu1 %3303, %v3579_v43   ;;  %v1206_v36 = vmul.f32 %v1169_v21, %v3668_v59  ;;  %v3352_v21 = vld [vmem:[%s3536_s15 + $0x20] sm:$0xff]  }
 0x191   : > { %v1073_v23 = vpop.permute.xlu0 %1072  ;;  %3076 = vmatpush3.bf16.msra.mxu0 %v3352_v21 }
 0x192   : > { %v1110_v24 = vmul.f32 %v1073_v23, %v3739_v22  ;;  %3077 = vmatprep.subr.bf16.mxu0 %v3353_v32  ;;  %v570_v32 = vrot.slane %v3677_v63, 7 }
 0x193   : > { %v1174_v27 = vpop.permute.xlu1 %1173 }
 0x194   : > { %605 = vperm.xlu1 %3303, %v3611_v53   ;;  %1126 = vrot.lane.b32.xlu0 %v1110_v24, %s3430_s29  ;;  %v1207_v23 = vmul.f32 %v1174_v27, %v3673_v61  ;;  %v751_v27 = vrot.slane %v3677_v63, 1 }
 0x195   : > { %v3752_v28 = vpop.permute.xlu0 %1082  ;;  %3078 = vmatpush3.bf16.msra.mxu0 %v3354_v34  ;;  %v3841_v34 = vsel %vm755_vm5, %v749_v25, %v750_v38 }
 0x196   : > { %3079 = vmatprep.subr.bf16.mxu0 %v3355_v4  ;;  %v3432_v4 = vmov 35  }
 0x198   : > { %v877_v31 = vpop.permute.xlu1 %876  ;;  %610 = vperm.xlu1 %3303, %v3591_v47   ;;  %828 = vrot.lane.b32.xlu0 %v812_v29, %s3430_s29 }
 0x199   : > { %v3764_v33 = vpop.permute.xlu0 %1092  ;;  %3080 = vmatpush3.bf16.msra.mxu0 %v3356_v5 }
 0x19a   : > { %3081 = vmatprep.subr.bf16.mxu0 %v3357_v11 }
 0x19c   : > { %1032 = vrot.lane.b32.xlu1 %v1015_v35, %s3429_s27  ;;  %1222 = vrot.lane.b32.xlu0 %v1206_v36, %s3431_s10  ;;  %v910_v35 = vmul.f32 %v877_v31, %v3739_v22  ;;  %v3819_v31 = vsel %vm576_vm6, %v573_v39, %v566_v17 }
 0x19d   : > { %v3774_v40 = vpop.permute.xlu0 %1102  ;;  %v3776_v41 = vpop.permute.xlu1 %986  ;;  %3082 = vmatpush3.bf16.msra.mxu0 %v3358_v14 }
 0x19e   : > { %v1016_v25 = vmul.f32 %v3776_v41, %v3841_v34 }
 0x1a0   : > { %716 = vrot.lane.b32.xlu1 %v699_v42, %s3429_s27 }
 0x1a2   : > { %v780_v8 = vpop.permute.xlu0 %779  ;;  %v3789_v9 = vpop.permute.xlu1 %670 }
 0x1a3   : > { %v813_v10 = vmul.f32 %v780_v8, %v3711_v6 }
 0x1a4   : > { %1128 = vrot.lane.b32.xlu1 %v1111_v7, %s3430_s29  ;;  %v3825_v7 = vsel %vm755_vm5, %v750_v38, %v751_v27 }
 0x1a5   : > { %v1017_v17 = vmul.f32 %v3721_v13, %v3825_v7 }
 0x1a6   : > { %v790_v16 = vpop.permute.xlu0 %789  ;;  %v676_v19 = vpop.permute.xlu1 %675 }
 0x1a7   : > { %v701_v13 = vmul.f32 %v676_v19, %v3673_v61  ;;  %v700_v19 = vmul.f32 %v3789_v9, %v3668_v59  ;;  %v815_v41 = vmul.f32 %v790_v16, %v3841_v34 }
 0x1a8   : > { %830 = vrot.lane.b32.xlu1 %v813_v10, %s3430_s29 }
 0x1aa   : > { %v3799_v24 = vpop.permute.xlu0 %799 }
 0x1ab   : > { %v1088_v29 = vpop.permute.xlu1 %1087 }
 0x1ac   : > { %1224 = vrot.lane.b32.xlu1 %v1207_v23, %s3431_s10  ;;  %v569_v23 = vrot.slane %v3675_v62, 7 }
 0x1ae   : > { %v3805_v36 = vpop.permute.xlu0 %809  ;;  %v3850_v5 = vsel %vm576_vm6, %v569_v23, %v570_v32  ;;  %v3868_v14 = vsel %vm576_vm6, %v568_v37, %v569_v23 }
 0x1af   : > { %v1113_v38 = vmul.f32 %v1088_v29, %v3850_v5 }
 0x1b0   : > { %v785_v42 = vpop.permute.xlu1 %784  ;;  %927 = vrot.lane.b32.xlu1 %v910_v35, %s3431_s10 }
 0x1b1   : > { %v814_v37 = vmul.f32 %v785_v42, %v3759_v30 }
 0x1b3   : > { %v872_v8 = vpop.permute.xlu0 %871 }
 0x1b4   : > { %v909_v10 = vmul.f32 %v872_v8, %v3819_v31  ;;  %620 = vperm.xlu1 %3303, %v3597_v49  }
 0x1b5   : > { %v1179_v12 = vpop.permute.xlu1 %1178 }
 0x1b6   : > { %925 = vrot.lane.b32.xlu0 %v909_v10, %s3431_s10 }
 0x1b7   : > { %v882_v21 = vpop.permute.xlu0 %881 }
 0x1b8   : > { %1036 = vrot.lane.b32.xlu1 %v1017_v17, %s3429_s27  ;;  %v1112_v17 = vmul.f32 %v3752_v28, %v3868_v14  ;;  %v1208_v28 = vmul.f32 %v1179_v12, %v3675_v62  ;;  %v752_v12 = vrot.slane %v3679_v0, 1 }
 0x1b9   : > { %v1184_v35 = vpop.permute.xlu1 %1183  ;;  %3305 = vset.pattern.permute.xlu1 %v3432_v4 }
 0x1ba   : > { %615 = vperm.xlu0 %3304, %v3616_v54  }
 0x1bb   : > { %v3852_v8 = vpop.permute.xlu0 %891 }
 0x1bc   : > { %720 = vrot.lane.b32.xlu1 %v701_v13, %s3429_s27 }
 0x1be   : > { %v887_v10 = vpop.permute.xlu1 %886  ;;  %1034 = vrot.lane.b32.xlu0 %v1016_v25, %s3429_s27  ;;  %v1209_v25 = vmul.f32 %v1184_v35, %v3677_v63  ;;  %v911_v35 = vmul.f32 %v882_v21, %v3783_v2 }
 0x1bf   : > { %v3861_v11 = vpop.permute.xlu0 %901  ;;  %v912_v23 = vmul.f32 %v887_v10, %v3868_v14  ;;  %v753_v10 = vrot.slane %v3681_v1, 1 }
 0x1c0   : > { %1132 = vrot.lane.b32.xlu1 %v1113_v38, %s3430_s29 }
 0x1c2   : > { %718 = vrot.lane.b32.xlu0 %v700_v19, %s3429_s27 }
 0x1c3   : > { %v997_v29 = vpop.permute.xlu1 %996 }
 0x1c4   : > { %834 = vrot.lane.b32.xlu1 %v815_v41, %s3430_s29  ;;  %v601_v9 = vpop.permute.xlu0 %600  ;;  %v3902_v41 = vsel %vm755_vm5, %v751_v27, %v752_v12 }
 0x1c5   : > { %v634_v13 = vmul.f32 %v601_v9, %v3819_v31  ;;  %v1018_v9 = vmul.f32 %v997_v29, %v3902_v41 }
 0x1c6   : > { %1130 = vrot.lane.b32.xlu0 %v1112_v17, %s3430_s29  ;;  %v3906_v17 = vsel %vm755_vm5, %v752_v12, %v753_v10 }
 0x1c7   : > { %643 = vst.msk [vmem:[#allocation3 + $0x18] sm:$0xff] %vm641_vm4, %v634_v13  ;;  %v571_v13 = vrot.slane %v3679_v0, 7 }
 0x1c8   : > { %v681_v16 = vpop.permute.xlu1 %680  ;;  %1228 = vrot.lane.b32.xlu1 %v1209_v25, %s3431_s10 }
 0x1c9   : > { %v702_v27 = vmul.f32 %v681_v16, %v3675_v62  ;;  %v572_v16 = vrot.slane %v3681_v1, 7 }
 0x1ca   : > { %832 = vrot.lane.b32.xlu0 %v814_v37, %s3430_s29  ;;  %v1019_v37 = vmul.f32 %v3724_v15, %v3906_v17 }
 0x1cc   : > { %v686_v38 = vpop.permute.xlu1 %685  ;;  %931 = vrot.lane.b32.xlu1 %v912_v23, %s3431_s10  ;;  %v3359_v23 = vld [vmem:[%s3536_s15 + $0x80] sm:$0xff]  }
 0x1cd   : > { %3177 = vmatprep.subr.bf16.mxu1 %v3359_v23 }
 0x1ce   : > { %1226 = vrot.lane.b32.xlu0 %v1208_v28, %s3431_s10  ;;  %v3920_v28 = vsel %vm576_vm6, %v570_v32, %v571_v13  ;;  %3178 = vmatpush3.bf16.msra.mxu1 %v3359_v23  ;;  %v3932_v32 = vsel %vm576_vm6, %v571_v13, %v572_v16 }
 0x1cf   : > { %v1114_v15 = vmul.f32 %v3764_v33, %v3920_v28  ;;  %v817_v33 = vmul.f32 %v3799_v24, %v3902_v41 }
 0x1d0   : > { %1269 = vperm.xlu1 %3305, %v3586_v46  }
 0x1d1   : > { %v1098_v19 = vpop.permute.xlu1 %1097 }
 0x1d2   : > { %929 = vrot.lane.b32.xlu0 %v911_v35, %s3431_s10  ;;  %v3360_v35 = vld [vmem:[%s3536_s15 + $0x88] sm:$0xff]   ;;  %v1115_v12 = vmul.f32 %v1098_v19, %v3932_v32 }
 0x1d3   : > { %3179 = vmatprep.subr.bf16.mxu1 %v3360_v35 }
 0x1d4   : > { %3306 = vset.pattern.permute.xlu1 %v3428_v57  ;;  %3180 = vmatpush3.bf16.msra.mxu1 %v3360_v35 }
 0x1d5   : > { %625 = vperm.xlu1 %3306, %v3622_v56  }
 0x1d6   : > { %v795_v42 = vpop.permute.xlu1 %794  ;;  %630 = vperm.xlu0 %3304, %v3600_v50  }
 0x1d9   : > { %3308 = vset.pattern.permute.xlu1 %v3432_v4 }
 0x1da   : > { %3307 = vset.pattern.permute.xlu0 %v3432_v4  ;;  %1274 = vperm.xlu1 %3308, %v3611_v53  }
 0x1db   : > { %v1189_v21 = vpop.permute.xlu1 %1188  ;;  %1264 = vperm.xlu0 %3307, %v3579_v43  }
 0x1de   : > { %1279 = vperm.xlu1 %3308, %v3591_v47   ;;  %v703_v47 = vmul.f32 %v686_v38, %v3677_v63  ;;  %v816_v38 = vmul.f32 %v795_v42, %v3825_v7  ;;  %v913_v42 = vmul.f32 %v3852_v8, %v3850_v5 }
 0x1df   : > { %v1194_v25 = vpop.permute.xlu1 %1193  ;;  %1038 = vrot.lane.b32.xlu0 %v1018_v9, %s3429_s27 }
 0x1e0   : > { %v1211_v19 = vmul.f32 %v1194_v25, %v3681_v1  ;;  %v1021_v25 = vmul.f32 %v3729_v18, %v3748_v26  ;;  %v577_v18 = vsel %vm576_vm6, %v572_v16, %v573_v39 }
 0x1e2   : > { %1040 = vrot.lane.b32.xlu1 %v1019_v37, %s3429_s27  ;;  %v1210_v37 = vmul.f32 %v1189_v21, %v3679_v0 }
 0x1e3   : > { %722 = vrot.lane.b32.xlu0 %v702_v27, %s3429_s27 }
 0x1e4   : > { %v897_v29 = vpop.permute.xlu1 %896 }
 0x1e5   : > { %v914_v24 = vmul.f32 %v897_v29, %v3920_v28 }
 0x1e6   : > { %724 = vrot.lane.b32.xlu1 %v703_v47, %s3429_s27  ;;  %v3962_v47 = vsel %vm755_vm5, %v753_v10, %v754_v20 }
 0x1e7   : > { %1134 = vrot.lane.b32.xlu0 %v1114_v15, %s3430_s29  ;;  %v1116_v15 = vmul.f32 %v3774_v40, %v577_v18 }
 0x1e9   : > { %v1007_v9 = vpop.permute.xlu1 %1006 }
 0x1ea   : > { %1136 = vrot.lane.b32.xlu1 %v1115_v12, %s3430_s29  ;;  %v819_v12 = vmul.f32 %v3805_v36, %v3962_v47 }
 0x1eb   : > { %836 = vrot.lane.b32.xlu0 %v816_v38, %s3430_s29 }
 0x1ee   : > { %v691_v23 = vpop.permute.xlu1 %690  ;;  %838 = vrot.lane.b32.xlu1 %v817_v33, %s3430_s29 }
 0x1ef   : > { %1230 = vrot.lane.b32.xlu0 %v1210_v37, %s3431_s10 }
 0x1f1   : > { %v1031_v13 = vpop.permute.xlu0 %1030 }
 0x1f2   : > { %1054 = vst.msk [vmem:[#allocation3 + $0x8] sm:$0xff] %vm738_vm7, %v1031_v13  ;;  %v696_v27 = vpop.permute.xlu1 %695  ;;  %1232 = vrot.lane.b32.xlu1 %v1211_v19, %s3431_s10  ;;  %v915_v19 = vmul.f32 %v3861_v11, %v3932_v32  ;;  %v4000_v13 = vld [vmem:[%s3531_s28 + $0x8] sm:$0xff]  ;;  %v4009_v11 = vld [vmem:[%s3531_s28 + $0x18] sm:$0xff] }
 0x1f3   : > { %933 = vrot.lane.b32.xlu0 %v913_v42, %s3431_s10 }
 0x1f5   : > { %v715_v29 = vpop.permute.xlu0 %714 }
 0x1f6   : > { %935 = vrot.lane.b32.xlu1 %v914_v24, %s3431_s10 }
 0x1f7   : > { %v1108_v21 = vpop.permute.xlu1 %1107  ;;  %1284 = vperm.xlu0 %3307, %v3616_v54   ;;  %v1020_v54 = vmul.f32 %v1007_v9, %v3962_v47 }
 0x1f8   : > { %v1117_v20 = vmul.f32 %v1108_v21, %v3819_v31  ;;  %v4014_v21 = vld [vmem:[%s3531_s28 + $0x28] sm:$0xff] }
 0x1fa   : > { %1289 = vperm.xlu1 %3308, %v3597_v49   ;;  %v705_v49 = vmul.f32 %v696_v27, %v3681_v1 }
 0x1fb   : > { %1299 = vperm.xlu0 %3307, %v3600_v50  }
 0x1fc   : > { %v805_v8 = vpop.permute.xlu1 %804 }
 0x1fd   : > { %v818_v39 = vmul.f32 %v805_v8, %v3906_v17 }
 0x1fe   : > { %1294 = vperm.xlu1 %3308, %v3622_v56   ;;  %v704_v56 = vmul.f32 %v691_v23, %v3679_v0 }
 0x1ff   : > { %1044 = vrot.lane.b32.xlu0 %v1021_v25, %s3429_s27 }
 0x200   : > { %3310 = vset.pattern.permute.xlu0 %v3422_v44 }
 0x201   : > { %v1199_v50 = vpop.permute.xlu1 %1198 }
 0x202   : > { %1042 = vrot.lane.b32.xlu1 %v1020_v54, %s3429_s27  ;;  %v1212_v36 = vmul.f32 %v1199_v50, %v3671_v60  ;;  %v4027_v54 = vld [vmem:[%s3531_s28] sm:$0xff] }
 0x203   : > { %728 = vrot.lane.b32.xlu0 %v705_v49, %s3429_s27  ;;  %3309 = vset.pattern.permute.xlu1 %v3422_v44 }
 0x205   : > { %v1204_v10 = vpop.permute.xlu1 %1203 }
 0x206   : > { %v1127_v35 = vpop.permute.xlu0 %1126  ;;  %726 = vrot.lane.b32.xlu1 %v704_v56, %s3429_s27  ;;  %v1213_v31 = vmul.f32 %v1204_v10, %v3666_v58  ;;  %v4036_v56 = vld [vmem:[%s3531_s28 + $0x10] sm:$0xff] }
 0x207   : > { %1150 = vst.msk [vmem:[#allocation3 + $0x8] sm:$0xff] %vm852_vm8, %v1127_v35  ;;  %1140 = vrot.lane.b32.xlu0 %v1117_v20, %s3430_s29  ;;  %v4043_v20 = vld [vmem:[%s3531_s28 + $0x20] sm:$0xff]  ;;  %v4049_v10 = vld [vmem:[%s3531_s28 + $0x30] sm:$0xff] }
 0x20a   : > { %v907_v38 = vpop.permute.xlu1 %906  ;;  %v829_v9 = vpop.permute.xlu0 %828  ;;  %1138 = vrot.lane.b32.xlu1 %v1116_v15, %s3430_s29 }
 0x20b   : > { %842 = vrot.lane.b32.xlu0 %v819_v12, %s3430_s29  ;;  %v916_v37 = vmul.f32 %v907_v38, %v577_v18 }
 0x20e   : > { %v1223_v16 = vpop.permute.xlu0 %1222  ;;  %840 = vrot.lane.b32.xlu1 %v818_v39, %s3430_s29 }
 0x20f   : > { %1246 = vst.msk [vmem:[#allocation3 + $0x8] sm:$0xff] %vm949_vm9, %v1223_v16  ;;  %v596_v40 = vpop.permute.xlu1 %595  ;;  %1236 = vrot.lane.b32.xlu0 %v1213_v31, %s3431_s10 }
 0x210   : > { %v633_v33 = vmul.f32 %v596_v40, %v577_v18 }
 0x212   : > { %642 = vst.msk [vmem:[#allocation3] sm:$0xff] %vm641_vm4, %v633_v33  ;;  %1234 = vrot.lane.b32.xlu1 %v1212_v36, %s3431_s10 }
 0x213   : > { %739 = vst.msk [vmem:[#allocation3] sm:$0xff] %vm738_vm7, %v715_v29  ;;  %v606_v23 = vpop.permute.xlu1 %605  ;;  %939 = vrot.lane.b32.xlu0 %v916_v37, %s3431_s10 }
 0x214   : > { %853 = vst.msk [vmem:[#allocation3] sm:$0xff] %vm852_vm8, %v829_v9  ;;  %v635_v42 = vmul.f32 %v606_v23, %v3739_v22 }
 0x216   : > { %644 = vst.msk [vmem:[#allocation3 + $0x30] sm:$0xff] %vm641_vm4, %v635_v42  ;;  %937 = vrot.lane.b32.xlu1 %v915_v19, %s3431_s10  ;;  %v1319_v15 = vld [vmem:[#allocation3 + $0x8] sm:$0xff] }
 0x217   : > { %v611_v27 = vpop.permute.xlu1 %610  ;;  %2062 = vperm.xlu0 %3310, %v4000_v13  }
 0x218   : > { %v636_v24 = vmul.f32 %v611_v27, %v3783_v2  ;;  %v4021_v2 = vld [vmem:[%s3531_s28 + $0x38] sm:$0xff] }
 0x21a   : > { %645 = vst.msk [vmem:[#allocation3 + $0x48] sm:$0xff] %vm641_vm4, %v636_v24  ;;  %2057 = vperm.xlu1 %3309, %v3579_v43  }
 0x21b   : > { %v1033_v22 = vpop.permute.xlu1 %1032  ;;  %2072 = vperm.xlu0 %3310, %v4009_v11  }
 0x21c   : > { %1055 = vst.msk [vmem:[#allocation3 + $0x20] sm:$0xff] %vm738_vm7, %v1033_v22 }
 0x21e   : > { %3311 = vset.pattern.permute.xlu1 %v3423_v45 }
 0x21f   : > { %v717_v8 = vpop.permute.xlu1 %716  ;;  %1745 = vperm.xlu1 %3311, %v3579_v43   ;;  %2082 = vperm.xlu0 %3310, %v4014_v21  }
 0x220   : > { %740 = vst.msk [vmem:[#allocation3 + $0x18] sm:$0xff] %vm738_vm7, %v717_v8 }
 0x223   : > { %v1129_v25 = vpop.permute.xlu1 %1128  ;;  %1750 = vperm.xlu1 %3311, %v3586_v46   ;;  %2092 = vperm.xlu0 %3310, %v4021_v2  }
 0x224   : > { %1151 = vst.msk [vmem:[#allocation3 + $0x20] sm:$0xff] %vm852_vm8, %v1129_v25 }
 0x227   : > { %v831_v49 = vpop.permute.xlu1 %830  ;;  %3312 = vset.pattern.permute.xlu1 %v3424_v48  ;;  %3329 = vset.pattern.permute.xlu0 %v3424_v48 }
 0x228   : > { %854 = vst.msk [vmem:[#allocation3 + $0x18] sm:$0xff] %vm852_vm8, %v831_v49  ;;  %v926_v50 = vpop.permute.xlu0 %925  ;;  %2158 = vperm.xlu1 %3312, %v3586_v46   ;;  %2153 = vperm.xlu0 %3329, %v4027_v54  }
 0x229   : > { %950 = vst.msk [vmem:[#allocation3] sm:$0xff] %vm949_vm9, %v926_v50 }
 0x22b   : > { %v1225_v29 = vpop.permute.xlu1 %1224 }
 0x22c   : > { %1247 = vst.msk [vmem:[#allocation3 + $0x20] sm:$0xff] %vm949_vm9, %v1225_v29  ;;  %3313 = vset.pattern.permute.xlu1 %v3425_v51  ;;  %2163 = vperm.xlu0 %3329, %v4036_v56  }
 0x22d   : > { %1857 = vperm.xlu1 %3313, %v3579_v43  }
 0x22f   : > { %v928_v18 = vpop.permute.xlu1 %927 }
 0x230   : > { %951 = vst.msk [vmem:[#allocation3 + $0x18] sm:$0xff] %vm949_vm9, %v928_v18  ;;  %2173 = vperm.xlu0 %3329, %v4043_v20   ;;  %v1318_v31 = vld [vmem:[#allocation3] sm:$0xff] }
 0x231   : > { %3314 = vset.pattern.permute.xlu1 %v3426_v52 }
 0x232   : > { %2249 = vperm.xlu1 %3314, %v3579_v43  }
 0x233   : > { %v621_v35 = vpop.permute.xlu1 %620  ;;  %v1322_v12 = vld [vmem:[#allocation3 + $0x20] sm:$0xff] }
 0x234   : > { %v638_v38 = vmul.f32 %v621_v35, %v3850_v5  ;;  %v1343_v9 = vpack.c.bf16 %v1322_v12, %v1319_v15  ;;  %2183 = vperm.xlu0 %3329, %v4049_v10  }
 0x236   : > { %647 = vst.msk [vmem:[#allocation3 + $0x78] sm:$0xff] %vm641_vm4, %v638_v38  ;;  %1548 = vmatprep.mubr.bf16.mxu0 %v1343_v9  ;;  %2254 = vperm.xlu1 %3314, %v3586_v46  }
 0x237   : > { %v1037_v39 = vpop.permute.xlu1 %1036  ;;  %v1321_v16 = vld [vmem:[#allocation3 + $0x18] sm:$0xff] }
 0x238   : > { %1057 = vst.msk [vmem:[#allocation3 + $0x50] sm:$0xff] %vm738_vm7, %v1037_v39  ;;  %v1342_v40 = vpack.c.bf16 %v1321_v16, %v1318_v31  ;;  %3331 = vset.pattern.permute.xlu0 %v3425_v51 }
 0x239   : > { %v616_v43 = vpop.permute.xlu0 %615  ;;  %1862 = vperm.xlu0 %3331, %v4000_v13  }
 0x23a   : > { %v637_v5 = vmul.f32 %v616_v43, %v3868_v14  ;;  %1549 = vmatmul.mubr.bf16.vlgmr.msra.gmra.mrb[0].mxu0 %v1342_v40  ;;  %3315 = vset.pattern.permute.xlu1 %v3427_v55 }
 0x23b   : > { %v721_v36 = vpop.permute.xlu1 %720  ;;  %1958 = vperm.xlu1 %3315, %v3586_v46  }
 0x23c   : > { %646 = vst.msk [vmem:[#allocation3 + $0x60] sm:$0xff] %vm641_vm4, %v637_v5 }
 0x23d   : > { %742 = vst.msk [vmem:[#allocation3 + $0x48] sm:$0xff] %vm738_vm7, %v721_v36  ;;  %v1035_v33 = vpop.permute.xlu0 %1034  ;;  %1872 = vperm.xlu0 %3331, %v4009_v11  }
 0x23e   : > { %1056 = vst.msk [vmem:[#allocation3 + $0x38] sm:$0xff] %vm738_vm7, %v1035_v33 }
 0x23f   : > { %v1133_v37 = vpop.permute.xlu1 %1132  ;;  %3316 = vset.pattern.permute.xlu1 %v3422_v44 }
 0x240   : > { %1153 = vst.msk [vmem:[#allocation3 + $0x50] sm:$0xff] %vm852_vm8, %v1133_v37  ;;  %2067 = vperm.xlu1 %3316, %v3611_v53  }
 0x241   : > { %v719_v14 = vpop.permute.xlu0 %718  ;;  %1882 = vperm.xlu0 %3331, %v4014_v21  }
 0x242   : > { %741 = vst.msk [vmem:[#allocation3 + $0x30] sm:$0xff] %vm738_vm7, %v719_v14 }
 0x243   : > { %v835_v46 = vpop.permute.xlu1 %834 }
 0x244   : > { %856 = vst.msk [vmem:[#allocation3 + $0x48] sm:$0xff] %vm852_vm8, %v835_v46  ;;  %3317 = vset.pattern.permute.xlu1 %v3423_v45 }
 0x245   : > { %v1131_v23 = vpop.permute.xlu0 %1130  ;;  %1755 = vperm.xlu1 %3317, %v3611_v53   ;;  %1892 = vperm.xlu0 %3331, %v4021_v2  }
 0x246   : > { %1152 = vst.msk [vmem:[#allocation3 + $0x38] sm:$0xff] %vm852_vm8, %v1131_v23 }
 0x247   : > { %v1229_v19 = vpop.permute.xlu1 %1228 }
 0x248   : > { %1249 = vst.msk [vmem:[#allocation3 + $0x50] sm:$0xff] %vm949_vm9, %v1229_v19 }
 0x249   : > { %v833_v42 = vpop.permute.xlu0 %832  ;;  %1760 = vperm.xlu1 %3317, %v4009_v11   ;;  %3334 = vset.pattern.permute.xlu0 %v3427_v55 }
 0x24a   : > { %855 = vst.msk [vmem:[#allocation3 + $0x30] sm:$0xff] %vm852_vm8, %v833_v42  ;;  %1953 = vperm.xlu0 %3334, %v4027_v54  }
 0x24b   : > { %v932_v27 = vpop.permute.xlu1 %931 }
 0x24c   : > { %953 = vst.msk [vmem:[#allocation3 + $0x48] sm:$0xff] %vm949_vm9, %v932_v27 }
 0x24d   : > { %v1227_v53 = vpop.permute.xlu0 %1226  ;;  %3318 = vset.pattern.permute.xlu1 %v3424_v48 }
 0x24e   : > { %1248 = vst.msk [vmem:[#allocation3 + $0x38] sm:$0xff] %vm949_vm9, %v1227_v53  ;;  %2168 = vperm.xlu1 %3318, %v4009_v11   ;;  %1963 = vperm.xlu0 %3334, %v4036_v56  }
 0x24f   : > { %v1270_v24 = vpop.permute.xlu1 %1269  ;;  %v1328_v18 = vld [vmem:[#allocation3 + $0x50] sm:$0xff] }
 0x250   : > { %v1303_v22 = vmul.f32 %v1270_v24, %v3841_v34 }
 0x251   : > { %v930_v8 = vpop.permute.xlu0 %929 }
 0x252   : > { %1311 = vst.msk [vmem:[#allocation3 + $0x28] sm:$0xff] %vm641_vm4, %v1303_v22  ;;  %3319 = vset.pattern.permute.xlu1 %v3425_v51  ;;  %1973 = vperm.xlu0 %3334, %v4043_v20  }
 0x253   : > { %952 = vst.msk [vmem:[#allocation3 + $0x30] sm:$0xff] %vm949_vm9, %v930_v8  ;;  %1867 = vperm.xlu1 %3319, %v4036_v56  }
 0x254   : > { %v626_v25 = vpop.permute.xlu1 %625 }
 0x255   : > { %v639_v49 = vmul.f32 %v626_v25, %v3920_v28  ;;  %v631_v50 = vpop.permute.xlu0 %630  ;;  %v1325_v29 = vld [vmem:[#allocation3 + $0x38] sm:$0xff]  ;;  %v1327_v28 = vld [vmem:[#allocation3 + $0x48] sm:$0xff] }
 0x256   : > { %v640_v35 = vmul.f32 %v631_v50, %v3932_v32  ;;  %v1346_v34 = vpack.c.bf16 %v1328_v18, %v1325_v29  ;;  %1983 = vperm.xlu0 %3334, %v4049_v10  }
 0x257   : > { %648 = vst.msk [vmem:[#allocation3 + $0x90] sm:$0xff] %vm641_vm4, %v639_v49  ;;  %3320 = vset.pattern.permute.xlu1 %v3426_v52 }
 0x258   : > { %649 = vst.msk [vmem:[#allocation3 + $0xa8] sm:$0xff] %vm641_vm4, %v640_v35  ;;  %1556 = vmatprep.mubr.bf16.mxu0 %v1346_v34  ;;  %2259 = vperm.xlu1 %3320, %v4036_v56  }
 0x259   : > { %v1275_v15 = vpop.permute.xlu1 %1274  ;;  %v1323_v43 = vld [vmem:[#allocation3 + $0x28] sm:$0xff] }
 0x25a   : > { %v1324_v12 = vld [vmem:[#allocation3 + $0x30] sm:$0xff]  ;;  %v1304_v38 = vmul.f32 %v1275_v15, %v3825_v7  ;;  %v1265_v9 = vpop.permute.xlu0 %1264  ;;  %3338 = vset.pattern.permute.xlu0 %v3428_v57 }
 0x25b   : > { %v1345_v39 = vpack.c.bf16 %v1327_v28, %v1324_v12  ;;  %v1302_v32 = vmul.f32 %v1265_v9, %v3759_v30  ;;  %1686 = vperm.xlu0 %3338, %v4000_v13  }
 0x25c   : > { %1312 = vst.msk [vmem:[#allocation3 + $0x40] sm:$0xff] %vm641_vm4, %v1304_v38  ;;  %2264 = vperm.xlu1 %3320, %v4009_v11  }
 0x25d   : > { %1557 = vmatmul.mubr.bf16.gmra.mrb[4].mxu0 %v1345_v39  ;;  %1310 = vst.msk [vmem:[#allocation3 + $0x10] sm:$0xff] %vm641_vm4, %v1302_v32  ;;  %v1280_v31 = vpop.permute.xlu1 %1279 }
 0x25e   : > { %v1305_v16 = vmul.f32 %v1280_v31, %v3902_v41  ;;  %v1039_v40 = vpop.permute.xlu0 %1038 }
 0x25f   : > { %1058 = vst.msk [vmem:[#allocation3 + $0x68] sm:$0xff] %vm738_vm7, %v1039_v40  ;;  %1701 = vperm.xlu0 %3338, %v4043_v20  }
 0x260   : > { %1313 = vst.msk [vmem:[#allocation3 + $0x58] sm:$0xff] %vm641_vm4, %v1305_v16  ;;  %3321 = vset.pattern.permute.xlu1 %v3427_v55 }
 0x261   : > { %v1041_v30 = vpop.permute.xlu1 %1040  ;;  %1968 = vperm.xlu1 %3321, %v4009_v11  }
 0x262   : > { %1059 = vst.msk [vmem:[#allocation3 + $0x80] sm:$0xff] %vm738_vm7, %v1041_v30  ;;  %v723_v7 = vpop.permute.xlu0 %722 }
 0x263   : > { %743 = vst.msk [vmem:[#allocation3 + $0x60] sm:$0xff] %vm738_vm7, %v723_v7  ;;  %1716 = vperm.xlu0 %3338, %v4021_v2   ;;  %v1326_v37 = vld [vmem:[#allocation3 + $0x40] sm:$0xff] }
 0x264   : > { %v1320_v41 = vld [vmem:[#allocation3 + $0x10] sm:$0xff] }
 0x265   : > { %v725_v5 = vpop.permute.xlu1 %724  ;;  %v1344_v36 = vpack.c.bf16 %v1323_v43, %v1320_v41  ;;  %3322 = vset.pattern.permute.xlu1 %v3422_v44 }
 0x266   : > { %744 = vst.msk [vmem:[#allocation3 + $0x78] sm:$0xff] %vm738_vm7, %v725_v5  ;;  %v1135_v33 = vpop.permute.xlu0 %1134  ;;  %2077 = vperm.xlu1 %3322, %v4043_v20  }
 0x267   : > { %1154 = vst.msk [vmem:[#allocation3 + $0x68] sm:$0xff] %vm852_vm8, %v1135_v33  ;;  %3181 = vmatprep.mubr.msk.bf16.mxu1 %vm641_vm4, %v1344_v36  ;;  %v1329_v14 = vld [vmem:[#allocation3 + $0x58] sm:$0xff]  ;;  %3341 = vset.pattern.permute.xlu0 %v3432_v4 }
 0x268   : > { %v1347_v46 = vpack.c.bf16 %v1329_v14, %v1326_v37  ;;  %2345 = vperm.xlu0 %3341, %v4027_v54  }
 0x269   : > { %v1137_v23 = vpop.permute.xlu1 %1136 }
 0x26a   : > { %1155 = vst.msk [vmem:[#allocation3 + $0x80] sm:$0xff] %vm852_vm8, %v1137_v23  ;;  %v837_v19 = vpop.permute.xlu0 %836  ;;  %3182 = vmatmul.mubr.msk.bf16.vlgmr.msra.gmra.mrb[0].mxu1 %vm641_vm4, %v1347_v46  ;;  %3323 = vset.pattern.permute.xlu1 %v3423_v45 }
 0x26b   : > { %857 = vst.msk [vmem:[#allocation3 + $0x60] sm:$0xff] %vm852_vm8, %v837_v19  ;;  %1765 = vperm.xlu1 %3323, %v4043_v20  }
 0x26c   : > { %2360 = vperm.xlu0 %3341, %v4009_v11  }
 0x26d   : > { %v839_v42 = vpop.permute.xlu1 %838 }
 0x26e   : > { %858 = vst.msk [vmem:[#allocation3 + $0x78] sm:$0xff] %vm852_vm8, %v839_v42  ;;  %v1231_v27 = vpop.permute.xlu0 %1230 }
 0x26f   : > { %1250 = vst.msk [vmem:[#allocation3 + $0x68] sm:$0xff] %vm949_vm9, %v1231_v27  ;;  %1770 = vperm.xlu1 %3323, %v4014_v21  }
 0x270   : > { %2365 = vperm.xlu0 %3341, %v4043_v20  }
 0x271   : > { %v1233_v53 = vpop.permute.xlu1 %1232 }
 0x272   : > { %1251 = vst.msk [vmem:[#allocation3 + $0x80] sm:$0xff] %vm949_vm9, %v1233_v53  ;;  %v934_v24 = vpop.permute.xlu0 %933 }
 0x273   : > { %954 = vst.msk [vmem:[#allocation3 + $0x60] sm:$0xff] %vm949_vm9, %v934_v24  ;;  %3324 = vset.pattern.permute.xlu1 %v3424_v48 }
 0x274   : > { %2178 = vperm.xlu1 %3324, %v4014_v21   ;;  %2380 = vperm.xlu0 %3341, %v4021_v2  }
 0x275   : > { %v936_v22 = vpop.permute.xlu1 %935 }
 0x276   : > { %955 = vst.msk [vmem:[#allocation3 + $0x78] sm:$0xff] %vm949_vm9, %v936_v22  ;;  %v1285_v8 = vpop.permute.xlu0 %1284  ;;  %v1331_v50 = vld [vmem:[#allocation3 + $0x68] sm:$0xff] }
 0x277   : > { %v1306_v25 = vmul.f32 %v1285_v8, %v3906_v17 }
 0x278   : > { %3325 = vset.pattern.permute.xlu1 %v3425_v51 }
 0x279   : > { %1314 = vst.msk [vmem:[#allocation3 + $0x70] sm:$0xff] %vm641_vm4, %v1306_v25  ;;  %v1290_v49 = vpop.permute.xlu1 %1289  ;;  %v1334_v29 = vld [vmem:[#allocation3 + $0x80] sm:$0xff]  ;;  %1877 = vperm.xlu1 %3325, %v4043_v20  }
 0x27a   : > { %v1307_v18 = vmul.f32 %v1290_v49, %v3962_v47  ;;  %v1300_v35 = vpop.permute.xlu0 %1299  ;;  %v1349_v34 = vpack.c.bf16 %v1334_v29, %v1331_v50  ;;  %v1330_v12 = vld [vmem:[#allocation3 + $0x60] sm:$0xff] }
 0x27b   : > { %v1309_v15 = vmul.f32 %v1300_v35, %v3711_v6 }
 0x27c   : > { %1315 = vst.msk [vmem:[#allocation3 + $0x88] sm:$0xff] %vm641_vm4, %v1307_v18  ;;  %1564 = vmatprep.mubr.bf16.mxu0 %v1349_v34 }
 0x27d   : > { %1317 = vst.msk [vmem:[#allocation3 + $0xb8] sm:$0xff] %vm641_vm4, %v1309_v15  ;;  %v1295_v17 = vpop.permute.xlu1 %1294  ;;  %v1333_v28 = vld [vmem:[#allocation3 + $0x78] sm:$0xff]  ;;  %3326 = vset.pattern.permute.xlu1 %v3426_v52 }
 0x27e   : > { %v1308_v38 = vmul.f32 %v1295_v17, %v3748_v26  ;;  %v1045_v9 = vpop.permute.xlu0 %1044  ;;  %v1348_v39 = vpack.c.bf16 %v1333_v28, %v1330_v12  ;;  %2269 = vperm.xlu1 %3326, %v4043_v20   ;;  %v3361_v12 = vld [vmem:[%s3541_s19 + $0x80] sm:$0xff]   ;;  %v3362_v28 = vld [vmem:[%s3541_s19 + $0x88] sm:$0xff]  }
 0x27f   : > { %1061 = vst.msk [vmem:[#allocation3 + $0xb0] sm:$0xff] %vm738_vm7, %v1045_v9  ;;  %3189 = vmatprep.subr.bf16.mxu0 %v3361_v12 }
 0x280   : > { %1316 = vst.msk [vmem:[#allocation3 + $0xa0] sm:$0xff] %vm641_vm4, %v1308_v38  ;;  %1565 = vmatmul.mubr.bf16.gmra.mrb[8].mxu0 %v1348_v39  ;;  %v1332_v32 = vld [vmem:[#allocation3 + $0x70] sm:$0xff] }
 0x281   : > { %v1043_v6 = vpop.permute.xlu1 %1042  ;;  %3190 = vmatpush3.bf16.msra.mxu0 %v3361_v12 }
 0x282   : > { %1060 = vst.msk [vmem:[#allocation3 + $0x98] sm:$0xff] %vm738_vm7, %v1043_v6  ;;  %v729_v47 = vpop.permute.xlu0 %728  ;;  %2274 = vperm.xlu1 %3326, %v4014_v21   ;;  %3191 = vmatprep.subr.bf16.mxu0 %v3362_v28 }
 0x283   : > { %746 = vst.msk [vmem:[#allocation3 + $0xa8] sm:$0xff] %vm738_vm7, %v729_v47  ;;  %v1335_v31 = vld [vmem:[#allocation3 + $0x88] sm:$0xff] }
 0x284   : > { %v1350_v26 = vpack.c.bf16 %v1335_v31, %v1332_v32  ;;  %v1341_v30 = vld [vmem:[#allocation3 + $0xb8] sm:$0xff] }
 0x285   : > { %v727_v16 = vpop.permute.xlu1 %726  ;;  %3192 = vmatpush3.bf16.msra.mxu0 %v3362_v28 }
 0x286   : > { %745 = vst.msk [vmem:[#allocation3 + $0x90] sm:$0xff] %vm738_vm7, %v727_v16  ;;  %v1141_v20 = vpop.permute.xlu0 %1140  ;;  %3185 = vmatprep.mubr.msk.bf16.mxu1 %vm641_vm4, %v1350_v26  ;;  %3327 = vset.pattern.permute.xlu1 %v3427_v55 }
 0x287   : > { %1157 = vst.msk [vmem:[#allocation3 + $0xb0] sm:$0xff] %vm852_vm8, %v1141_v20  ;;  %v1338_v40 = vld [vmem:[#allocation3 + $0xa0] sm:$0xff]  ;;  %1978 = vperm.xlu1 %3327, %v4014_v21  }
 0x288   : > { %v1353_v7 = vpack.c.bf16 %v1341_v30, %v1338_v40 }
 0x289   : > { %v1139_v41 = vpop.permute.xlu1 %1138 }
 0x28a   : > { %1156 = vst.msk [vmem:[#allocation3 + $0x98] sm:$0xff] %vm852_vm8, %v1139_v41  ;;  %v843_v43 = vpop.permute.xlu0 %842  ;;  %3186 = vmatmul.mubr.msk.bf16.gmra.mrb[4].mxu1 %vm641_vm4, %v1353_v7 }
 0x28b   : > { %860 = vst.msk [vmem:[#allocation3 + $0xa8] sm:$0xff] %vm852_vm8, %v843_v43  ;;  %3328 = vset.pattern.permute.xlu1 %v3422_v44 }
 0x28c   : > { %2087 = vperm.xlu1 %3328, %v4049_v10  }
 0x28d   : > { %v841_v5 = vpop.permute.xlu1 %840 }
 0x28e   : > { %859 = vst.msk [vmem:[#allocation3 + $0x90] sm:$0xff] %vm852_vm8, %v841_v5  ;;  %v1237_v36 = vpop.permute.xlu0 %1236 }
 0x28f   : > { %1253 = vst.msk [vmem:[#allocation3 + $0xb0] sm:$0xff] %vm949_vm9, %v1237_v36 }
 0x290   : > { %3330 = vset.pattern.permute.xlu1 %v3423_v45 }
 0x291   : > { %v1235_v33 = vpop.permute.xlu1 %1234  ;;  %1775 = vperm.xlu1 %3330, %v4049_v10  }
 0x292   : > { %1252 = vst.msk [vmem:[#allocation3 + $0x98] sm:$0xff] %vm949_vm9, %v1235_v33  ;;  %v940_v37 = vpop.permute.xlu0 %939 }
 0x293   : > { %957 = vst.msk [vmem:[#allocation3 + $0xa8] sm:$0xff] %vm949_vm9, %v940_v37 }
 0x295   : > { %v938_v14 = vpop.permute.xlu1 %937  ;;  %1780 = vperm.xlu1 %3330, %v4021_v2  }
 0x296   : > { %956 = vst.msk [vmem:[#allocation3 + $0x90] sm:$0xff] %vm949_vm9, %v938_v14  ;;  %v1340_v46 = vld [vmem:[#allocation3 + $0xb0] sm:$0xff]  ;;  %v4204_v25 = vpop.permute.xlu0 %2062 }
 0x299   : > { %v1337_v44 = vld [vmem:[#allocation3 + $0x98] sm:$0xff]  ;;  %3332 = vset.pattern.permute.xlu1 %v3424_v48  ;;  %v4173_v23 = vpop.permute.xlu1 %2057 }
 0x29a   : > { %v1352_v45 = vpack.c.bf16 %v1340_v46, %v1337_v44  ;;  %2188 = vperm.xlu1 %3332, %v4021_v2   ;;  %v1339_v42 = vld [vmem:[#allocation3 + $0xa8] sm:$0xff] }
 0x29c   : > { %1572 = vmatprep.mubr.bf16.mxu0 %v1352_v45 }
 0x29d   : > { %v1336_v19 = vld [vmem:[#allocation3 + $0x90] sm:$0xff] }
 0x29e   : > { %v1351_v27 = vpack.c.bf16 %v1339_v42, %v1336_v19  ;;  %3333 = vset.pattern.permute.xlu1 %v3425_v51  ;;  %v4177_v53 = vpop.permute.xlu1 %1745 }
 0x29f   : > { %1887 = vperm.xlu1 %3333, %v4049_v10  }
 0x2a0   : > { %1573 = vmatmul.mubr.bf16.gmra.mrb[12].mxu0 %v1351_v27 }
 0x2a2   : > { %v4180_v24 = vpop.permute.xlu1 %1750 }
 0x2a3   : > { %3335 = vset.pattern.permute.xlu1 %v3426_v52 }
 0x2a4   : > { %2279 = vperm.xlu1 %3335, %v4049_v10  }
 0x2a7   : > { %v4184_v48 = vpop.permute.xlu1 %2158 }
 0x2a8   : > { %2284 = vperm.xlu1 %3335, %v4021_v2  }
 0x2ac   : > { %3336 = vset.pattern.permute.xlu1 %v3427_v55  ;;  %v4188_v22 = vpop.permute.xlu1 %1857 }
 0x2ad   : > { %1988 = vperm.xlu1 %3336, %v4021_v2  }
 0x2b1   : > { %3337 = vset.pattern.permute.xlu1 %v3428_v57  ;;  %v4192_v51 = vpop.permute.xlu1 %2249 }
 0x2b2   : > { %1681 = vperm.xlu1 %3337, %v4027_v54   ;;  %v4211_v54 = vpop.permute.xlu0 %2072 }
 0x2b5   : > { %v4195_v8 = vpop.permute.xlu1 %2254 }
 0x2b6   : > { %1691 = vperm.xlu1 %3337, %v4036_v56   ;;  %v4219_v50 = vpop.permute.xlu0 %2082 }
 0x2b7   : > { %4736 = vst [vmem:[#allocation15_spill] sm:$0xff] %v4219_v50 }
 0x2ba   : > { %1696 = vperm.xlu1 %3337, %v4009_v11   ;;  %v4199_v52 = vpop.permute.xlu1 %1958 }
 0x2be   : > { %1706 = vperm.xlu1 %3337, %v4014_v21  }
 0x2bf   : > { %v4202_v55 = vpop.permute.xlu1 %2067 }
 0x2c2   : > { %3339 = vset.pattern.permute.xlu1 %v3432_v4 }
 0x2c3   : > { %2350 = vperm.xlu1 %3339, %v4000_v13  }
 0x2c4   : > { %v4208_v2 = vpop.permute.xlu1 %1755 }
 0x2c7   : > { %2355 = vperm.xlu1 %3339, %v4036_v56   ;;  %v4225_v56 = vpop.permute.xlu0 %2092 }
 0x2c8   : > { %v4213_v49 = vpop.permute.xlu1 %1760  ;;  %4737 = vst [vmem:[#allocation16_spill] sm:$0xff] %v4225_v56 }
 0x2cb   : > { %3340 = vset.pattern.permute.xlu1 %v3428_v57  ;;  %v4230_v57 = vpop.permute.xlu0 %2153 }
 0x2cc   : > { %1711 = vperm.xlu1 %3340, %v4049_v10  }
 0x2cd   : > { %v4217_v11 = vpop.permute.xlu1 %2168 }
 0x2cf   : > { %v4234_v35 = vpop.permute.xlu0 %2163 }
 0x2d0   : > { %3342 = vset.pattern.permute.xlu1 %v3432_v4 }
 0x2d1   : > { %2370 = vperm.xlu1 %3342, %v4014_v21  }
 0x2d2   : > { %v4223_v13 = vpop.permute.xlu1 %1867 }
 0x2d3   : > { %v4240_v21 = vpop.permute.xlu0 %2173 }
 0x2d5   : > { %2375 = vperm.xlu1 %3342, %v4049_v10  }
 0x2d7   : > { %v4228_v29 = vpop.permute.xlu1 %2259  ;;  %v4244_v17 = vpop.permute.xlu0 %2183 }
 0x2d8   : > { %4738 = vst [vmem:[#allocation17_spill] sm:$0xff] %v4244_v17 }
 0x2db   : > { %v4232_v18 = vpop.permute.xlu1 %2264  ;;  %v4250_v38 = vpop.permute.xlu0 %1862 }
 0x2df   : > { %v4254_v39 = vpop.permute.xlu0 %1872 }
 0x2e0   : > { %v4236_v34 = vpop.permute.xlu1 %1968 }
 0x2e3   : > { %v4260_v32 = vpop.permute.xlu0 %1882 }
 0x2e5   : > { %v4238_v4 = vpop.permute.xlu1 %2077 }
 0x2e7   : > { %v4264_v26 = vpop.permute.xlu0 %1892 }
 0x2e8   : > { %4741 = vst [vmem:[#allocation20_spill] sm:$0xff] %v4264_v26 }
 0x2ea   : > { %v4242_v15 = vpop.permute.xlu1 %1765 }
 0x2eb   : > { %v4268_v20 = vpop.permute.xlu0 %1953 }
 0x2ec   : > { %4742 = vst [vmem:[#allocation21_spill] sm:$0xff] %v4268_v20 }
 0x2ee   : > { %v4247_v10 = vpop.permute.xlu1 %1770 }
 0x2ef   : > { %v4272_v5 = vpop.permute.xlu0 %1963 }
 0x2f3   : > { %v4252_v9 = vpop.permute.xlu1 %2178  ;;  %v4278_v44 = vpop.permute.xlu0 %1973  ;;  %v4756_v3 = vld [vmem:[#allocation21_spill] sm:$0xff] }
 0x2f4   : > { %4739 = vst [vmem:[#allocation18_spill] sm:$0xff] %v4252_v9 }
 0x2f7   : > { %v4282_v45 = vpop.permute.xlu0 %1983 }
 0x2f8   : > { %v4256_v6 = vpop.permute.xlu1 %1877  ;;  %4746 = vst [vmem:[#allocation25_spill] sm:$0xff] %v4282_v45  ;;  %v4303_v45 = vld [vmem:[%s401_s21] ss:$0 sm:$0xff] }
 0x2fb   : > { %v4286_v42 = vpop.permute.xlu0 %1686 }
 0x2fd   : > { %v4258_v47 = vpop.permute.xlu1 %2269 }
 0x2ff   : > { %v4290_v28 = vpop.permute.xlu0 %1701 }
 0x301   : > { %v4262_v31 = vpop.permute.xlu1 %2274 }
 0x302   : > { %4740 = vst [vmem:[#allocation19_spill] sm:$0xff] %v4262_v31 }
 0x306   : > { %v4266_v16 = vpop.permute.xlu1 %1978 }
 0x30b   : > { %v4270_v40 = vpop.permute.xlu1 %2087 }
 0x30c   : > { %4743 = vst [vmem:[#allocation22_spill] sm:$0xff] %v4270_v40 }
 0x30d   : > { %v3083_v30 = vpop.f32.mrb[0].mxu0 }
 0x30e   : > { %v3084_v7 = vpop.f32.mrb[1].mxu0 }
 0x30f   : > { %v3085_v41 = vadd.f32 %v3084_v7, %v3083_v30  ;;  %v3086_v43 = vpop.f32.mrb[2].mxu0  ;;  %v4294_v7 = vpop.permute.xlu0 %1716 }
 0x310   : > { %v3087_v36 = vpop.f32.mrb[3].mxu0  ;;  %v4274_v33 = vpop.permute.xlu1 %1775  ;;  %4750 = vst [vmem:[#allocation29_spill] sm:$0xff] %v4294_v7 }
 0x311   : > { %v3088_v37 = vadd.f32 %v3087_v36, %v3086_v43 }
 0x313   : > { %v2346_v61 = vpop.permute.xlu0 %2345 }
 0x314   : > { %v4276_v14 = vpop.permute.xlu1 %1780 }
 0x315   : > { %4744 = vst [vmem:[#allocation23_spill] sm:$0xff] %v4276_v14 }
 0x319   : > { %v4280_v46 = vpop.permute.xlu1 %2188 }
 0x31a   : > { %4745 = vst [vmem:[#allocation24_spill] sm:$0xff] %v4280_v46  ;;  %v1554_v46 = vadd.f32 %v3088_v37, %v4303_v45 }
 0x31e   : > { %v4284_v19 = vpop.permute.xlu1 %1887 }
 0x31f   : > { %4747 = vst [vmem:[#allocation26_spill] sm:$0xff] %v4284_v19 }
 0x323   : > { %v4288_v27 = vpop.permute.xlu1 %2279 }
 0x324   : > { %4748 = vst [vmem:[#allocation27_spill] sm:$0xff] %v4288_v27  ;;  %v4305_v27 = vpop.permute.xlu0 %2360 }
 0x327   : > { %v2285_v12 = vpop.permute.xlu1 %2284 }
 0x328   : > { %v4315_v14 = vpop.permute.xlu0 %2365 }
 0x32c   : > { %v4292_v30 = vpop.permute.xlu1 %1988 }
 0x32d   : > { %4749 = vst [vmem:[#allocation28_spill] sm:$0xff] %v4292_v30 }
 0x330   : > { %v3089_v43 = vpop.f32.mrb[4].mxu0 }
 0x331   : > { %v3090_v36 = vpop.f32.mrb[5].mxu0  ;;  %v4296_v0 = vpop.permute.xlu1 %1681 }
 0x332   : > { %v3091_v60 = vadd.f32 %v3090_v36, %v3089_v43  ;;  %v3092_v1 = vpop.f32.mrb[6].mxu0  ;;  %v1551_v43 = vadd.f32 %v3085_v41, %v4303_v45 }
 0x333   : > { %v3093_v63 = vpop.f32.mrb[7].mxu0 }
 0x334   : > { %v3094_v62 = vadd.f32 %v3093_v63, %v3092_v1  ;;  %v1559_v30 = vadd.f32 %v3091_v60, %v4303_v45 }
 0x335   : > { %v1692_v59 = vpop.permute.xlu1 %1691 }
 0x336   : > { %v1562_v63 = vadd.f32 %v3094_v62, %v4303_v45 }
 0x339   : > { %v1697_v58 = vpop.permute.xlu1 %1696 }
 0x33d   : > { %v3183_v17 = vpop.f32.mrb[0].mxu1  ;;  %v4310_v1 = vpop.permute.xlu1 %1706 }
 0x33e   : > { %v1624_v36 = vadd.f32 %v3183_v17, %v1559_v30  ;;  %v1615_v40 = vpop.f32.mrb[1].mxu1 }
 0x33f   : > { %v1616_v26 = vadd.f32 %v1615_v40, %v1551_v43  ;;  %v3184_v19 = vpop.f32.mrb[2].mxu1  ;;  %v2381_v43 = vpop.permute.xlu0 %2380 }
 0x340   : > { %v4313_v9 = vmax.f32 %v1624_v36, 0.0  ;;  %v1627_v56 = vadd.f32 %v3184_v19, %v1562_v63  ;;  %v1618_v50 = vpop.f32.mrb[3].mxu1 }
 0x341   : > { %v4317_v60 = vmax.f32 %v1616_v26, 0.0  ;;  %v1619_v31 = vadd.f32 %v1618_v50, %v1554_v46 }
 0x342   : > { %2041 = vst.msk [vmem:[#allocation3 + $0x38] sm:$0xff] %vm641_vm4, %v4313_v9  ;;  %v4321_v17 = vmax.f32 %v1627_v56, 0.0  ;;  %v1657_v41 = vrot.slane %v4313_v9, 7  ;;  %v2351_v50 = vpop.permute.xlu1 %2350  ;;  %v1833_v26 = vrot.slane %v4313_v9, 1 }
 0x343   : > { %2039 = vst.msk [vmem:[#allocation3 + $0x8] sm:$0xff] %vm641_vm4, %v4317_v60  ;;  %v1647_v62 = vmax.f32 %v1619_v31, 0.0  ;;  %v1784_v40 = vmul.f32 %v4180_v24, %v4317_v60  ;;  %v1831_v36 = vrot.slane %v4317_v60, 1  ;;  %v4751_v7 = vrot.slane %v4317_v60, 7 }
 0x344   : > { %v4724_v37 = vrot.slane %v4321_v17, 7  ;;  %2042 = vst.msk [vmem:[#allocation3 + $0x50] sm:$0xff] %vm641_vm4, %v4321_v17  ;;  %v4723_v56 = vrot.slane %v4321_v17, 1 }
 0x345   : > { %v1656_v19 = vrot.slane %v1647_v62, 7  ;;  %2040 = vst.msk [vmem:[#allocation3 + $0x20] sm:$0xff] %vm641_vm4, %v1647_v62  ;;  %1801 = vrot.lane.b32.xlu1 %v1784_v40, %s3429_s27  ;;  %v1832_v24 = vrot.slane %v1647_v62, 1  ;;  %v2287_v31 = vmul.f32 %v4192_v51, %v1647_v62  ;;  %v4351_v40 = vmul.f32 %v2285_v12, %v4317_v60 }
 0x346   : > { %v4341_v30 = vsel %vm755_vm5, %v1833_v26, %v4723_v56  ;;  %v4348_v63 = vsel %vm576_vm6, %v1657_v41, %v4724_v37 }
 0x347   : > { %v2384_v51 = vmul.f32 %v2351_v50, %v4341_v30  ;;  %v1844_v46 = vsel %vm755_vm5, %v1832_v24, %v1833_v26  ;;  %2303 = vrot.lane.b32.xlu0 %v2287_v31, %s3431_s10  ;;  %v1845_v56 = vsel %vm755_vm5, %v1831_v36, %v1832_v24  ;;  %v1669_v37 = vsel %vm576_vm6, %v4751_v7, %v1656_v19 }
 0x348   : > { %v2383_v20 = vmul.f32 %v2346_v61, %v1844_v46  ;;  %v1896_v12 = vmul.f32 %v4250_v38, %v1845_v56  ;;  %v2390_v50 = vmul.f32 %v2381_v43, %v1845_v56  ;;  %v1785_v26 = vmul.f32 %v4208_v2, %v1647_v62 }
 0x349   : > { %2392 = vst.msk [vmem:[#allocation3 + $0x28] sm:$0xff] %vm641_vm4, %v2384_v51  ;;  %v1668_v31 = vsel %vm576_vm6, %v1656_v19, %v1657_v41  ;;  %v1721_v61 = vmul.f32 %v1692_v59, %v1669_v37  ;;  %v1723_v24 = vmul.f32 %v4290_v28, %v4348_v63  ;;  %v2095_v38 = vmul.f32 %v4173_v23, %v1845_v56 }
 0x34a   : > { %2391 = vst.msk [vmem:[#allocation3 + $0x10] sm:$0xff] %vm641_vm4, %v2383_v20  ;;  %2398 = vst.msk [vmem:[#allocation3 + $0xb8] sm:$0xff] %vm641_vm4, %v2390_v50  ;;  %1913 = vrot.lane.b32.xlu1 %v1896_v12, %s3430_s29  ;;  %v1722_v7 = vmul.f32 %v1697_v58, %v1668_v31  ;;  %v1992_v2 = vmul.f32 %v4199_v52, %v1669_v37  ;;  %v2288_v58 = vmul.f32 %v4195_v8, %v4313_v9 }
 0x34b   : > { %1803 = vrot.lane.b32.xlu0 %v1785_v26, %s3429_s27  ;;  %1729 = vst.msk [vmem:[#allocation3 + $0x30] sm:$0xff] %vm641_vm4, %v1721_v61  ;;  %1731 = vst.msk [vmem:[#allocation3 + $0x60] sm:$0xff] %vm641_vm4, %v1723_v24  ;;  %v2191_v59 = vmul.f32 %v4230_v57, %v1669_v37  ;;  %v1786_v19 = vmul.f32 %v4213_v49, %v4313_v9  ;;  %v2289_v8 = vmul.f32 %v4228_v29, %v4321_v17  ;;  %v2356_v61 = vpop.permute.xlu1 %2355 }
 0x34c   : > { %1730 = vst.msk [vmem:[#allocation3 + $0x48] sm:$0xff] %vm641_vm4, %v1722_v7  ;;  %v2096_v37 = vmul.f32 %v4204_v25, %v1844_v46  ;;  %v1787_v51 = vmul.f32 %v4242_v15, %v4321_v17  ;;  %v2192_v29 = vmul.f32 %v4184_v48, %v1668_v31  ;;  %v1897_v9 = vmul.f32 %v4223_v13, %v1844_v46 }
 0x34d   : > { %v1898_v24 = vmul.f32 %v4254_v39, %v4341_v30  ;;  %v1993_v48 = vmul.f32 %v4272_v5, %v1668_v31  ;;  %v4752_v5 = vrot.slane %v4321_v17, 1 }
 0x34e   : > { %2009 = vrot.lane.b32.xlu1 %v1992_v2, %s3431_s10 }
 0x34f   : > { %2111 = vrot.lane.b32.xlu0 %v2095_v38, %s3429_s27 }
 0x350   : > { %v2404_v20 = vld [vmem:[#allocation3 + $0x28] sm:$0xff] }
 0x351   : > { %v2401_v28 = vld [vmem:[#allocation3 + $0x10] sm:$0xff] }
 0x352   : > { %v2425_v23 = vpack.c.bf16 %v2404_v20, %v2401_v28  ;;  %2305 = vrot.lane.b32.xlu1 %v2288_v58, %s3431_s10  ;;  %v2097_v58 = vmul.f32 %v4202_v55, %v4341_v30  ;;  %v1712_v28 = vpop.permute.xlu1 %1711  ;;  %v4753_v30 = vrot.slane %v4321_v17, 7 }
 0x353   : > { %2207 = vrot.lane.b32.xlu0 %v2191_v59, %s3430_s29  ;;  %v3095_v52 = vpop.f32.mrb[8].mxu0  ;;  %v1994_v59 = vmul.f32 %v4236_v34, %v4348_v63 }
 0x354   : > { %v3096_v62 = vpop.f32.mrb[9].mxu0  ;;  %3193 = vmatprep.mubr.msk.bf16.mxu0 %vm641_vm4, %v2425_v23 }
 0x355   : > { %v3097_v41 = vadd.f32 %v3096_v62, %v3095_v52  ;;  %v3098_v56 = vpop.f32.mrb[10].mxu0  ;;  %v3363_v62 = vld [vmem:[%s3541_s19 + $0x40] sm:$0xff]  }
 0x356   : > { %v3099_v43 = vpop.f32.mrb[11].mxu0  ;;  %1805 = vrot.lane.b32.xlu1 %v1786_v19, %s3429_s27  ;;  %3113 = vmatprep.subr.bf16.mxu1 %v3363_v62  ;;  %v3375_v62 = vld [vmem:[%s3541_s19 + $0x70] sm:$0xff]  }
 0x357   : > { %v3100_v57 = vadd.f32 %v3099_v43, %v3098_v56  ;;  %2307 = vrot.lane.b32.xlu0 %v2289_v8, %s3431_s10  ;;  %v1567_v49 = vadd.f32 %v3097_v41, %v4303_v45  ;;  %v3364_v41 = vld [vmem:[%s3541_s19] sm:$0xff]  }
 0x358   : > { %3114 = vmatpush3.bf16.msra.mxu1 %v3364_v41 }
 0x359   : > { %v1570_v15 = vadd.f32 %v3100_v57, %v4303_v45  ;;  %v2193_v57 = vmul.f32 %v4234_v35, %v4348_v63  ;;  %v3368_v63 = vld [vmem:[%s3541_s19 + $0x10] sm:$0xff]  }
 0x35a   : > { %2113 = vrot.lane.b32.xlu1 %v2096_v37, %s3429_s27  ;;  %v3366_v37 = vld [vmem:[%s3541_s19 + $0x8] sm:$0xff]  }
 0x35b   : > { %1807 = vrot.lane.b32.xlu0 %v1787_v51, %s3429_s27 }
 0x35d   : > { %v4400_v12 = vpop.f32.mrb[4].mxu1 }
 0x35e   : > { %v1631_v50 = vpop.f32.mrb[5].mxu1  ;;  %2209 = vrot.lane.b32.xlu1 %v2192_v29, %s3430_s29 }
 0x35f   : > { %v1632_v26 = vadd.f32 %v1631_v50, %v1567_v49  ;;  %v4406_v25 = vpop.f32.mrb[6].mxu1  ;;  %1915 = vrot.lane.b32.xlu0 %v1897_v9, %s3430_s29 }
 0x360   : > { %v1634_v7 = vpop.f32.mrb[7].mxu1 }
 0x361   : > { %v1650_v38 = vmax.f32 %v1632_v26, 0.0  ;;  %v1635_v2 = vadd.f32 %v1634_v7, %v1570_v15  ;;  %v3369_v26 = vld [vmem:[%s3541_s19 + $0x58] sm:$0xff]  }
 0x362   : > { %1917 = vrot.lane.b32.xlu1 %v1898_v24, %s3430_s29 }
 0x363   : > { %2043 = vst.msk [vmem:[#allocation3 + $0x68] sm:$0xff] %vm641_vm4, %v1650_v38  ;;  %v4414_v13 = vmax.f32 %v1635_v2, 0.0  ;;  %v1835_v46 = vrot.slane %v1650_v38, 1  ;;  %2011 = vrot.lane.b32.xlu0 %v1993_v48, %s3431_s10  ;;  %v1659_v20 = vrot.slane %v1650_v38, 7  ;;  %v2290_v43 = vmul.f32 %v4232_v18, %v1650_v38 }
 0x364   : > { %v1788_v18 = vmul.f32 %v4247_v10, %v1650_v38  ;;  %v3371_v38 = vld [vmem:[%s3541_s19 + $0x60] sm:$0xff]  }
 0x365   : > { %v1836_v39 = vrot.slane %v4414_v13, 1  ;;  %2044 = vst.msk [vmem:[#allocation3 + $0x80] sm:$0xff] %vm641_vm4, %v4414_v13  ;;  %v1842_v31 = vsel %vm755_vm5, %v4752_v5, %v1835_v46  ;;  %v1660_v23 = vrot.slane %v4414_v13, 7  ;;  %v1666_v56 = vsel %vm576_vm6, %v4753_v30, %v1659_v20  ;;  %v2371_v5 = vpop.permute.xlu1 %2370 }
 0x366   : > { %v2385_v52 = vmul.f32 %v2356_v61, %v1842_v31  ;;  %2013 = vrot.lane.b32.xlu1 %v1994_v59, %s3431_s10  ;;  %v1724_v17 = vmul.f32 %v4310_v1, %v1666_v56  ;;  %v2291_v35 = vmul.f32 %v4258_v47, %v4414_v13  ;;  %v3367_v1 = vld [vmem:[%s3541_s19 + $0x50] sm:$0xff]   ;;  %v1899_v51 = vmul.f32 %v4256_v6, %v1842_v31  ;;  %v3370_v6 = vld [vmem:[%s3541_s19 + $0x18] sm:$0xff]  }
 0x367   : > { %v4436_v55 = vsel %vm755_vm5, %v1835_v46, %v1836_v39  ;;  %v4443_v34 = vsel %vm576_vm6, %v1659_v20, %v1660_v23  ;;  %2115 = vrot.lane.b32.xlu0 %v2097_v58, %s3429_s27  ;;  %v1789_v49 = vmul.f32 %v4274_v33, %v4414_v13  ;;  %v2098_v15 = vmul.f32 %v4211_v54, %v1842_v31  ;;  %v3372_v46 = vld [vmem:[%s3541_s19 + $0x20] sm:$0xff]   ;;  %v3373_v31 = vld [vmem:[%s3541_s19 + $0x68] sm:$0xff]  }
 0x368   : > { %v2386_v19 = vmul.f32 %v4305_v27, %v4436_v55  ;;  %2393 = vst.msk [vmem:[#allocation3 + $0x40] sm:$0xff] %vm641_vm4, %v2385_v52  ;;  %v1725_v8 = vmul.f32 %v1712_v28, %v4443_v34  ;;  %v3365_v27 = vld [vmem:[%s3541_s19 + $0x48] sm:$0xff]   ;;  %1732 = vst.msk [vmem:[#allocation3 + $0x78] sm:$0xff] %vm641_vm4, %v1724_v17  ;;  %v1995_v7 = vmul.f32 %v4278_v44, %v1666_v56  ;;  %v4754_v13 = vrot.slane %v4317_v60, 7 }
 0x369   : > { %3115 = vmatprep.subr.bf16.mxu1 %v3365_v27  ;;  %v2195_v54 = vmul.f32 %v4240_v21, %v4443_v34  ;;  %v2194_v58 = vmul.f32 %v4217_v11, %v1666_v56  ;;  %v3374_v52 = vld [vmem:[%s3541_s19 + $0x28] sm:$0xff]   ;;  %v2099_v11 = vmul.f32 %v4238_v4, %v4436_v55  ;;  %v3377_v27 = vld [vmem:[%s3541_s19 + $0x78] sm:$0xff]  }
 0x36a   : > { %2394 = vst.msk [vmem:[#allocation3 + $0x58] sm:$0xff] %vm641_vm4, %v2386_v19  ;;  %1733 = vst.msk [vmem:[#allocation3 + $0x90] sm:$0xff] %vm641_vm4, %v1725_v8  ;;  %2309 = vrot.lane.b32.xlu1 %v2290_v43, %s3431_s10  ;;  %3116 = vmatpush3.bf16.msra.mxu1 %v3366_v37  ;;  %v2376_v19 = vpop.permute.xlu1 %2375  ;;  %v3376_v43 = vld [vmem:[%s3541_s19 + $0x30] sm:$0xff]  }
 0x36b   : > { %2211 = vrot.lane.b32.xlu0 %v2193_v57, %s3430_s29  ;;  %3117 = vmatprep.subr.bf16.mxu1 %v3367_v1 }
 0x36e   : > { %1809 = vrot.lane.b32.xlu1 %v1788_v18, %s3429_s27  ;;  %3118 = vmatpush3.bf16.msra.mxu1 %v3368_v63  ;;  %v4755_v18 = vld [vmem:[#allocation29_spill] sm:$0xff] }
 0x36f   : > { %2311 = vrot.lane.b32.xlu0 %v2291_v35, %s3431_s10  ;;  %v2407_v29 = vld [vmem:[#allocation3 + $0x40] sm:$0xff]  ;;  %3119 = vmatprep.subr.bf16.mxu1 %v3369_v26  ;;  %v4760_v26 = vld [vmem:[#allocation16_spill] sm:$0xff] }
 0x371   : > { %v2410_v9 = vld [vmem:[#allocation3 + $0x58] sm:$0xff] }
 0x372   : > { %v2428_v10 = vpack.c.bf16 %v2410_v9, %v2407_v29  ;;  %1811 = vrot.lane.b32.xlu1 %v1789_v49, %s3429_s27  ;;  %3120 = vmatpush3.bf16.msra.mxu1 %v3370_v6  ;;  %v2422_v9 = vld [vmem:[#allocation3 + $0xb8] sm:$0xff] }
 0x373   : > { %v3101_v47 = vpop.f32.mrb[12].mxu0  ;;  %1919 = vrot.lane.b32.xlu0 %v1899_v51, %s3430_s29  ;;  %3121 = vmatprep.subr.bf16.mxu1 %v3371_v38 }
 0x374   : > { %v3102_v50 = vpop.f32.mrb[13].mxu0  ;;  %3194 = vmatmul.mubr.msk.bf16.vlgmr.msra.gmra.mrb[16].mxu0 %vm641_vm4, %v2428_v10  ;;  %v4759_v10 = vld [vmem:[#allocation15_spill] sm:$0xff] }
 0x375   : > { %v3103_v33 = vadd.f32 %v3102_v50, %v3101_v47  ;;  %v3104_v61 = vpop.f32.mrb[14].mxu0 }
 0x376   : > { %v3105_v24 = vpop.f32.mrb[15].mxu0  ;;  %2117 = vrot.lane.b32.xlu1 %v2098_v15, %s3429_s27  ;;  %3122 = vmatpush3.bf16.msra.mxu1 %v3372_v46  ;;  %v4761_v15 = vld [vmem:[#allocation18_spill] sm:$0xff] }
 0x377   : > { %v1575_v2 = vadd.f32 %v3103_v33, %v4303_v45  ;;  %v3106_v48 = vadd.f32 %v3105_v24, %v3104_v61  ;;  %2015 = vrot.lane.b32.xlu0 %v1995_v7, %s3431_s10  ;;  %3123 = vmatprep.subr.bf16.mxu1 %v3373_v31  ;;  %v4762_v61 = vld [vmem:[#allocation24_spill] sm:$0xff]  ;;  %v4763_v24 = vld [vmem:[#allocation26_spill] sm:$0xff]  ;;  %v4768_v31 = vld [vmem:[#allocation27_spill] sm:$0xff] }
 0x378   : > { %v4765_v46 = vld [vmem:[#allocation22_spill] sm:$0xff] }
 0x379   : > { %v1640_v20 = vadd.f32 %v4400_v12, %v1575_v2  ;;  %v1578_v44 = vadd.f32 %v3106_v48, %v4303_v45  ;;  %v4764_v2 = vld [vmem:[#allocation20_spill] sm:$0xff] }
 0x37a   : > { %2213 = vrot.lane.b32.xlu1 %v2194_v58, %s3430_s29  ;;  %3124 = vmatpush3.bf16.msra.mxu1 %v3374_v52  ;;  %v4767_v58 = vld [vmem:[#allocation28_spill] sm:$0xff] }
 0x37b   : > { %v1652_v59 = vmax.f32 %v1640_v20, 0.0  ;;  %v1643_v28 = vadd.f32 %v4406_v25, %v1578_v44  ;;  %2215 = vrot.lane.b32.xlu0 %v2195_v54, %s3430_s29  ;;  %3125 = vmatprep.subr.bf16.mxu1 %v3375_v62  ;;  %v4766_v20 = vld [vmem:[#allocation17_spill] sm:$0xff] }
 0x37d   : > { %2045 = vst.msk [vmem:[#allocation3 + $0x98] sm:$0xff] %vm641_vm4, %v1652_v59  ;;  %v4498_v21 = vmax.f32 %v1643_v28, 0.0  ;;  %v1837_v45 = vrot.slane %v1652_v59, 1  ;;  %v1661_v12 = vrot.slane %v1652_v59, 7  ;;  %v4769_v28 = vld [vmem:[#allocation25_spill] sm:$0xff] }
 0x37e   : > { %2119 = vrot.lane.b32.xlu1 %v2099_v11, %s3429_s27  ;;  %3126 = vmatpush3.bf16.msra.mxu1 %v3376_v43 }
 0x37f   : > { %2046 = vst.msk [vmem:[#allocation3 + $0xb0] sm:$0xff] %vm641_vm4, %v4498_v21  ;;  %v1838_v25 = vrot.slane %v4498_v21, 1  ;;  %v1840_v41 = vsel %vm755_vm5, %v1836_v39, %v1837_v45  ;;  %v1783_v30 = vmul.f32 %v4177_v53, %v4498_v21  ;;  %v1662_v4 = vrot.slane %v4498_v21, 7  ;;  %3127 = vmatprep.subr.bf16.mxu1 %v3377_v27 }
 0x380   : > { %v2387_v56 = vmul.f32 %v4315_v14, %v1840_v41  ;;  %v4519_v8 = vsel %vm576_vm6, %v1660_v23, %v1661_v12  ;;  %v1900_v14 = vmul.f32 %v4260_v32, %v4436_v55  ;;  %v1996_v55 = vmul.f32 %v4266_v16, %v4443_v34  ;;  %v4757_v16 = vld [vmem:[#allocation19_spill] sm:$0xff] }
 0x381   : > { %v1839_v39 = vsel %vm755_vm5, %v1837_v45, %v1838_v25  ;;  %v1846_v53 = vsel %vm755_vm5, %v1838_v25, %v1831_v36  ;;  %1799 = vrot.lane.b32.xlu0 %v1783_v30, %s3429_s27  ;;  %v1670_v23 = vsel %vm576_vm6, %v1662_v4, %v4754_v13  ;;  %v1663_v32 = vsel %vm576_vm6, %v1661_v12, %v1662_v4  ;;  %v3378_v36 = vld [vmem:[%s3541_s19 + $0x38] sm:$0xff]  }
 0x382   : > { %v2388_v57 = vmul.f32 %v2371_v5, %v1839_v39  ;;  %2395 = vst.msk [vmem:[#allocation3 + $0x70] sm:$0xff] %vm641_vm4, %v2387_v56  ;;  %v1895_v17 = vmul.f32 %v4188_v22, %v1846_v53  ;;  %v2389_v37 = vmul.f32 %v2376_v19, %v1846_v53  ;;  %1921 = vrot.lane.b32.xlu1 %v1900_v14, %s3430_s29 }
 0x383   : > { %v1720_v60 = vmul.f32 %v4286_v42, %v1670_v23  ;;  %v1719_v22 = vmul.f32 %v4296_v0, %v1663_v32  ;;  %v1726_v35 = vmul.f32 %v4755_v18, %v4519_v8  ;;  %v1991_v42 = vmul.f32 %v4756_v3, %v1670_v23  ;;  %3128 = vmatpush3.bf16.msra.mxu1 %v3378_v36  ;;  %v4758_v0 = vld [vmem:[#allocation23_spill] sm:$0xff] }
 0x384   : > { %2396 = vst.msk [vmem:[#allocation3 + $0x88] sm:$0xff] %vm641_vm4, %v2388_v57  ;;  %2397 = vst.msk [vmem:[#allocation3 + $0xa0] sm:$0xff] %vm641_vm4, %v2389_v37  ;;  %v2292_v34 = vmul.f32 %v4757_v16, %v1652_v59  ;;  %v1790_v1 = vmul.f32 %v4758_v0, %v1652_v59  ;;  %v2100_v47 = vmul.f32 %v4759_v10, %v1840_v41 }
 0x385   : > { %1911 = vrot.lane.b32.xlu0 %v1895_v17, %s3430_s29  ;;  %1728 = vst.msk [vmem:[#allocation3 + $0x18] sm:$0xff] %vm641_vm4, %v1720_v60  ;;  %1727 = vst.msk [vmem:[#allocation3] sm:$0xff] %vm641_vm4, %v1719_v22  ;;  %v2102_v6 = vmul.f32 %v4760_v26, %v1846_v53  ;;  %v2196_v33 = vmul.f32 %v4761_v15, %v4519_v8  ;;  %v2198_v7 = vmul.f32 %v4762_v61, %v1670_v23 }
 0x386   : > { %2017 = vrot.lane.b32.xlu1 %v1996_v55, %s3431_s10  ;;  %1734 = vst.msk [vmem:[#allocation3 + $0xa8] sm:$0xff] %vm641_vm4, %v1726_v35  ;;  %v1901_v38 = vmul.f32 %v4763_v24, %v1840_v41  ;;  %v1902_v48 = vmul.f32 %v4764_v2, %v1839_v39  ;;  %v2101_v54 = vmul.f32 %v4765_v46, %v1839_v39 }
 0x387   : > { %v2197_v44 = vmul.f32 %v4766_v20, %v1663_v32  ;;  %v1998_v5 = vmul.f32 %v4767_v58, %v1663_v32  ;;  %v2293_v59 = vmul.f32 %v4768_v31, %v4498_v21  ;;  %v1997_v52 = vmul.f32 %v4769_v28, %v4519_v8 }
 0x389   : > { %2007 = vrot.lane.b32.xlu0 %v1991_v42, %s3431_s10  ;;  %v2413_v63 = vld [vmem:[#allocation3 + $0x70] sm:$0xff] }
 0x38a   : > { %2313 = vrot.lane.b32.xlu1 %v2292_v34, %s3431_s10 }
 0x38b   : > { %v2416_v51 = vld [vmem:[#allocation3 + $0x88] sm:$0xff]  ;;  %v2419_v29 = vld [vmem:[#allocation3 + $0xa0] sm:$0xff] }
 0x38c   : > { %v2431_v49 = vpack.c.bf16 %v2416_v51, %v2413_v63  ;;  %v2434_v50 = vpack.c.bf16 %v2422_v9, %v2419_v29 }
 0x38d   : > { %1813 = vrot.lane.b32.xlu0 %v1790_v1, %s3429_s27 }
 0x38e   : > { %3197 = vmatprep.mubr.msk.bf16.mxu0 %vm641_vm4, %v2431_v49  ;;  %2121 = vrot.lane.b32.xlu1 %v2100_v47, %s3429_s27 }
 0x38f   : > { %3198 = vmatmul.mubr.msk.bf16.gmra.mrb[20].mxu0 %vm641_vm4, %v2434_v50 }
 0x391   : > { %2125 = vrot.lane.b32.xlu0 %v2102_v6, %s3429_s27 }
 0x392   : > { %2217 = vrot.lane.b32.xlu1 %v2196_v33, %s3430_s29 }
 0x395   : > { %2221 = vrot.lane.b32.xlu0 %v2198_v7, %s3430_s29 }
 0x396   : > { %1923 = vrot.lane.b32.xlu1 %v1901_v38, %s3430_s29 }
 0x399   : > { %1925 = vrot.lane.b32.xlu0 %v1902_v48, %s3430_s29 }
 0x39a   : > { %2123 = vrot.lane.b32.xlu1 %v2101_v54, %s3429_s27 }
 0x39d   : > { %2317 = vrot.lane.b32.xlu0 %v4351_v40, %s3431_s10 }
 0x39e   : > { %2219 = vrot.lane.b32.xlu1 %v2197_v44, %s3430_s29 }
 0x3a1   : > { %2021 = vrot.lane.b32.xlu0 %v1998_v5, %s3431_s10 }
 0x3a2   : > { %2315 = vrot.lane.b32.xlu1 %v2293_v59, %s3431_s10 }
 0x3a6   : > { %2019 = vrot.lane.b32.xlu1 %v1997_v52, %s3431_s10 }
 0x3b7   : > { %v1802_v45 = vpop.permute.xlu1 %1801 }
 0x3b8   : > { %1824 = vst.msk [vmem:[#allocation3 + $0x18] sm:$0xff] %vm738_vm7, %v1802_v45 }
 0x3b9   : > { %v2304_v40 = vpop.permute.xlu0 %2303 }
 0x3bc   : > { %v1914_v11 = vpop.permute.xlu1 %1913 }
 0x3bd   : > { %v1804_v12 = vpop.permute.xlu0 %1803  ;;  %1936 = vst.msk [vmem:[#allocation3 + $0x18] sm:$0xff] %vm852_vm8, %v1914_v11 }
 0x3be   : > { %1825 = vst.msk [vmem:[#allocation3 + $0x30] sm:$0xff] %vm738_vm7, %v1804_v12 }
 0x3c0   : > { %v2010_v62 = vpop.permute.xlu1 %2009 }
 0x3c1   : > { %v2112_v25 = vpop.permute.xlu0 %2111  ;;  %2032 = vst.msk [vmem:[#allocation3 + $0x18] sm:$0xff] %vm949_vm9, %v2010_v62 }
 0x3c2   : > { %2135 = vst.msk [vmem:[#allocation3 + $0x8] sm:$0xff] %vm738_vm7, %v2112_v25 }
 0x3c4   : > { %v2306_v21 = vpop.permute.xlu1 %2305 }
 0x3c5   : > { %v2208_v41 = vpop.permute.xlu0 %2207 }
 0x3c6   : > { %2231 = vst.msk [vmem:[#allocation3 + $0x8] sm:$0xff] %vm852_vm8, %v2208_v41 }
 0x3c7   : > { %2327 = vst.msk [vmem:[#allocation3 + $0x8] sm:$0xff] %vm949_vm9, %v2304_v40 }
 0x3c8   : > { %v1806_v30 = vpop.permute.xlu1 %1805  ;;  %v2402_v50 = vld [vmem:[#allocation3 + $0x18] sm:$0xff] }
 0x3c9   : > { %v2308_v4 = vpop.permute.xlu0 %2307  ;;  %1826 = vst.msk [vmem:[#allocation3 + $0x48] sm:$0xff] %vm738_vm7, %v1806_v30 }
 0x3cc   : > { %v2114_v56 = vpop.permute.xlu1 %2113 }
 0x3cd   : > { %v1808_v19 = vpop.permute.xlu0 %1807  ;;  %2136 = vst.msk [vmem:[#allocation3 + $0x20] sm:$0xff] %vm738_vm7, %v2114_v56 }
 0x3ce   : > { %1827 = vst.msk [vmem:[#allocation3 + $0x60] sm:$0xff] %vm738_vm7, %v1808_v19  ;;  %v2400_v23 = vld [vmem:[#allocation3 + $0x8] sm:$0xff] }
 0x3d0   : > { %v2210_v8 = vpop.permute.xlu1 %2209 }
 0x3d1   : > { %v1916_v43 = vpop.permute.xlu0 %1915  ;;  %2232 = vst.msk [vmem:[#allocation3 + $0x20] sm:$0xff] %vm852_vm8, %v2210_v8 }
 0x3d2   : > { %1937 = vst.msk [vmem:[#allocation3 + $0x30] sm:$0xff] %vm852_vm8, %v1916_v43 }
 0x3d3   : > { %2328 = vst.msk [vmem:[#allocation3 + $0x20] sm:$0xff] %vm949_vm9, %v2306_v21 }
 0x3d4   : > { %v1918_v39 = vpop.permute.xlu1 %1917 }
 0x3d5   : > { %v2012_v53 = vpop.permute.xlu0 %2011  ;;  %1938 = vst.msk [vmem:[#allocation3 + $0x48] sm:$0xff] %vm852_vm8, %v1918_v39 }
 0x3d6   : > { %2033 = vst.msk [vmem:[#allocation3 + $0x30] sm:$0xff] %vm949_vm9, %v2012_v53 }
 0x3d8   : > { %v2014_v14 = vpop.permute.xlu1 %2013 }
 0x3d9   : > { %v2116_v13 = vpop.permute.xlu0 %2115  ;;  %2034 = vst.msk [vmem:[#allocation3 + $0x48] sm:$0xff] %vm949_vm9, %v2014_v14 }
 0x3da   : > { %2137 = vst.msk [vmem:[#allocation3 + $0x38] sm:$0xff] %vm738_vm7, %v2116_v13  ;;  %v2403_v57 = vld [vmem:[#allocation3 + $0x20] sm:$0xff] }
 0x3db   : > { %v2424_v17 = vpack.c.bf16 %v2403_v57, %v2400_v23  ;;  %v3028_v13 = vld [vmem:[%s409_s25] ss:$0 sm:$0xff] }
 0x3dc   : > { %v2310_v27 = vpop.permute.xlu1 %2309 }
 0x3dd   : > { %2629 = vmatprep.mubr.bf16.mxu1 %v2424_v17  ;;  %v2212_v37 = vpop.permute.xlu0 %2211  ;;  %v2405_v2 = vld [vmem:[#allocation3 + $0x30] sm:$0xff] }
 0x3de   : > { %2233 = vst.msk [vmem:[#allocation3 + $0x38] sm:$0xff] %vm852_vm8, %v2212_v37 }
 0x3df   : > { %2329 = vst.msk [vmem:[#allocation3 + $0x38] sm:$0xff] %vm949_vm9, %v2308_v4 }
 0x3e0   : > { %v1810_v32 = vpop.permute.xlu1 %1809  ;;  %v2408_v24 = vld [vmem:[#allocation3 + $0x48] sm:$0xff] }
 0x3e1   : > { %v2312_v60 = vpop.permute.xlu0 %2311  ;;  %1828 = vst.msk [vmem:[#allocation3 + $0x78] sm:$0xff] %vm738_vm7, %v1810_v32  ;;  %v2426_v48 = vpack.c.bf16 %v2408_v24, %v2405_v2 }
 0x3e4   : > { %v1812_v36 = vpop.permute.xlu1 %1811 }
 0x3e5   : > { %v1920_v55 = vpop.permute.xlu0 %1919  ;;  %1829 = vst.msk [vmem:[#allocation3 + $0x90] sm:$0xff] %vm738_vm7, %v1812_v36 }
 0x3e6   : > { %1939 = vst.msk [vmem:[#allocation3 + $0x60] sm:$0xff] %vm852_vm8, %v1920_v55  ;;  %v2406_v6 = vld [vmem:[#allocation3 + $0x38] sm:$0xff]  ;;  %v4770_v55 = vld [vmem:[#allocation7_spill] sm:$0xff] }
 0x3e8   : > { %v2118_v22 = vpop.permute.xlu1 %2117 }
 0x3e9   : > { %v2016_v18 = vpop.permute.xlu0 %2015  ;;  %2138 = vst.msk [vmem:[#allocation3 + $0x50] sm:$0xff] %vm738_vm7, %v2118_v22 }
 0x3ea   : > { %2035 = vst.msk [vmem:[#allocation3 + $0x60] sm:$0xff] %vm949_vm9, %v2016_v18 }
 0x3ec   : > { %v2214_v35 = vpop.permute.xlu1 %2213 }
 0x3ed   : > { %2234 = vst.msk [vmem:[#allocation3 + $0x50] sm:$0xff] %vm852_vm8, %v2214_v35  ;;  %v2216_v3 = vpop.permute.xlu0 %2215 }
 0x3ee   : > { %2330 = vst.msk [vmem:[#allocation3 + $0x50] sm:$0xff] %vm949_vm9, %v2310_v27 }
 0x3f0   : > { %v2120_v42 = vpop.permute.xlu1 %2119 }
 0x3f1   : > { %2139 = vst.msk [vmem:[#allocation3 + $0x68] sm:$0xff] %vm738_vm7, %v2120_v42  ;;  %v2411_v28 = vld [vmem:[#allocation3 + $0x60] sm:$0xff] }
 0x3f2   : > { %2235 = vst.msk [vmem:[#allocation3 + $0x68] sm:$0xff] %vm852_vm8, %v2216_v3 }
 0x3f3   : > { %v1800_v16 = vpop.permute.xlu0 %1799  ;;  %2331 = vst.msk [vmem:[#allocation3 + $0x68] sm:$0xff] %vm949_vm9, %v2312_v60 }
 0x3f4   : > { %1823 = vst.msk [vmem:[#allocation3] sm:$0xff] %vm738_vm7, %v1800_v16  ;;  %v1922_v34 = vpop.permute.xlu1 %1921  ;;  %v4771_v16 = vld [vmem:[#allocation8_spill] sm:$0xff] }
 0x3f5   : > { %1940 = vst.msk [vmem:[#allocation3 + $0x78] sm:$0xff] %vm852_vm8, %v1922_v34  ;;  %v2409_v9 = vld [vmem:[#allocation3 + $0x50] sm:$0xff] }
 0x3f6   : > { %v2427_v33 = vpack.c.bf16 %v2409_v9, %v2406_v6 }
 0x3f7   : > { %v1912_v0 = vpop.permute.xlu0 %1911 }
 0x3f8   : > { %1935 = vst.msk [vmem:[#allocation3] sm:$0xff] %vm852_vm8, %v1912_v0  ;;  %v2018_v1 = vpop.permute.xlu1 %2017 }
 0x3f9   : > { %2036 = vst.msk [vmem:[#allocation3 + $0x78] sm:$0xff] %vm949_vm9, %v2018_v1 }
 0x3fa   : > { %v2412_v54 = vld [vmem:[#allocation3 + $0x68] sm:$0xff] }
 0x3fb   : > { %v2008_v63 = vpop.permute.xlu0 %2007 }
 0x3fc   : > { %2031 = vst.msk [vmem:[#allocation3] sm:$0xff] %vm949_vm9, %v2008_v63  ;;  %v2314_v51 = vpop.permute.xlu1 %2313 }
 0x3ff   : > { %v1814_v49 = vpop.permute.xlu0 %1813 }
 0x400   : > { %1830 = vst.msk [vmem:[#allocation3 + $0xa8] sm:$0xff] %vm738_vm7, %v1814_v49  ;;  %v2122_v29 = vpop.permute.xlu1 %2121  ;;  %v2414_v31 = vld [vmem:[#allocation3 + $0x78] sm:$0xff] }
 0x401   : > { %2140 = vst.msk [vmem:[#allocation3 + $0x80] sm:$0xff] %vm738_vm7, %v2122_v29  ;;  %v2429_v52 = vpack.c.bf16 %v2414_v31, %v2411_v28  ;;  %v4775_v28 = vld [vmem:[#allocation13_spill] sm:$0xff] }
 0x403   : > { %v2126_v10 = vpop.permute.xlu0 %2125  ;;  %v2399_v47 = vld [vmem:[#allocation3] sm:$0xff] }
 0x404   : > { %2142 = vst.msk [vmem:[#allocation3 + $0xb0] sm:$0xff] %vm738_vm7, %v2126_v10  ;;  %v2423_v26 = vpack.c.bf16 %v2402_v50, %v2399_v47  ;;  %v2218_v15 = vpop.permute.xlu1 %2217  ;;  %v4772_v47 = vld [vmem:[#allocation10_spill] sm:$0xff] }
 0x405   : > { %2236 = vst.msk [vmem:[#allocation3 + $0x80] sm:$0xff] %vm852_vm8, %v2218_v15 }
 0x406   : > { %2630 = vmatmul.mubr.bf16.vlgmr.msra.gmra.mrb[8].mxu1 %v2423_v26  ;;  %2332 = vst.msk [vmem:[#allocation3 + $0x80] sm:$0xff] %vm949_vm9, %v2314_v51 }
 0x407   : > { %v2222_v61 = vpop.permute.xlu0 %2221  ;;  %2637 = vmatprep.mubr.bf16.mxu1 %v2427_v33 }
 0x408   : > { %2238 = vst.msk [vmem:[#allocation3 + $0xb0] sm:$0xff] %vm852_vm8, %v2222_v61  ;;  %v1924_v7 = vpop.permute.xlu1 %1923  ;;  %v4773_v61 = vld [vmem:[#allocation11_spill] sm:$0xff] }
 0x409   : > { %1941 = vst.msk [vmem:[#allocation3 + $0x90] sm:$0xff] %vm852_vm8, %v1924_v7 }
 0x40b   : > { %v1926_v38 = vpop.permute.xlu0 %1925 }
 0x40c   : > { %1942 = vst.msk [vmem:[#allocation3 + $0xa8] sm:$0xff] %vm852_vm8, %v1926_v38  ;;  %v2124_v46 = vpop.permute.xlu1 %2123 }
 0x40d   : > { %2141 = vst.msk [vmem:[#allocation3 + $0x98] sm:$0xff] %vm738_vm7, %v2124_v46  ;;  %v2415_v20 = vld [vmem:[#allocation3 + $0x80] sm:$0xff] }
 0x40e   : > { %2638 = vmatmul.mubr.bf16.gmra.mrb[12].mxu1 %v2426_v48  ;;  %v2430_v58 = vpack.c.bf16 %v2415_v20, %v2412_v54 }
 0x40f   : > { %v2318_v44 = vpop.permute.xlu0 %2317 }
 0x410   : > { %2334 = vst.msk [vmem:[#allocation3 + $0xb0] sm:$0xff] %vm949_vm9, %v2318_v44  ;;  %2645 = vmatprep.mubr.bf16.mxu1 %v2430_v58  ;;  %v2220_v5 = vpop.permute.xlu1 %2219  ;;  %v4774_v58 = vld [vmem:[#allocation12_spill] sm:$0xff] }
 0x411   : > { %2237 = vst.msk [vmem:[#allocation3 + $0x98] sm:$0xff] %vm852_vm8, %v2220_v5 }
 0x413   : > { %v2022_v59 = vpop.permute.xlu0 %2021 }
 0x414   : > { %2038 = vst.msk [vmem:[#allocation3 + $0xa8] sm:$0xff] %vm949_vm9, %v2022_v59  ;;  %v2316_v45 = vpop.permute.xlu1 %2315 }
 0x415   : > { %2333 = vst.msk [vmem:[#allocation3 + $0x98] sm:$0xff] %vm949_vm9, %v2316_v45 }
 0x416   : > { %2646 = vmatmul.mubr.bf16.gmra.mrb[16].mxu1 %v2429_v52 }
 0x417   : > { %v2421_v12 = vld [vmem:[#allocation3 + $0xb0] sm:$0xff] }
 0x418   : > { %v2020_v40 = vpop.permute.xlu1 %2019 }
 0x419   : > { %2037 = vst.msk [vmem:[#allocation3 + $0x90] sm:$0xff] %vm949_vm9, %v2020_v40 }
 0x41b   : > { %v2420_v21 = vld [vmem:[#allocation3 + $0xa8] sm:$0xff] }
 0x41c   : > { %v2418_v11 = vld [vmem:[#allocation3 + $0x98] sm:$0xff] }
 0x41d   : > { %v2433_v62 = vpack.c.bf16 %v2421_v12, %v2418_v11 }
 0x41f   : > { %2653 = vmatprep.mubr.bf16.mxu1 %v2433_v62 }
 0x420   : > { %v2417_v25 = vld [vmem:[#allocation3 + $0x90] sm:$0xff] }
 0x421   : > { %v2432_v41 = vpack.c.bf16 %v2420_v21, %v2417_v25 }
 0x423   : > { %2654 = vmatmul.mubr.bf16.gmra.mrb[20].mxu1 %v2432_v41 }
 0x447   : > { %v3195_v30 = vpop.f32.mrb[16].mxu0 }
 0x448   : > { %v2696_v4 = vpop.f32.mrb[17].mxu0 }
 0x449   : > { %v3196_v56 = vpop.f32.mrb[18].mxu0 }
 0x44a   : > { %v2699_v19 = vpop.f32.mrb[19].mxu0 }
 0x462   : > { %v3199_v8 = vpop.f32.mrb[20].mxu0 }
 0x463   : > { %v2712_v43 = vpop.f32.mrb[21].mxu0 }
 0x464   : > { %v3200_v39 = vpop.f32.mrb[22].mxu0 }
 0x465   : > { %v2715_v53 = vpop.f32.mrb[23].mxu0 }
 0x4d9   : > { %v3129_v14 = vpop.f32.mrb[8].mxu1 }
 0x4da   : > { %v3130_v23 = vpop.f32.mrb[9].mxu1 }
 0x4db   : > { %v3131_v57 = vadd.f32 %v3130_v23, %v3129_v14  ;;  %v3132_v17 = vpop.f32.mrb[10].mxu1  ;;  %v4777_v14 = vld [vmem:[#allocation9_spill] sm:$0xff] }
 0x4dc   : > { %v3133_v27 = vpop.f32.mrb[11].mxu1 }
 0x4dd   : > { %v2632_v37 = vadd.f32 %v3131_v57, %v3028_v13  ;;  %v3134_v32 = vadd.f32 %v3133_v27, %v3132_v17  ;;  %v3379_v17 = vld [vmem:[%s4711_s7] sm:$0xff] (!%p3051_p8)  }
 0x4de   : > { %3201 = vmatprep.subr.bf16.mxu0 (!%p3051_p8), %v3379_v17  ;;  %3217 = vmatprep.subr.bf16.mxu1 (!%p3051_p8), %v3379_v17 }
 0x4df   : > { %v2697_v60 = vadd.f32 %v2696_v4, %v2632_v37  ;;  %v2635_v36 = vadd.f32 %v3134_v32, %v3028_v13  ;;  %3202 = vmatpush3.bf16.msra.mxu0 (!%p3051_p8), %v3379_v17  ;;  %3219 = vmatpush3.bf16.msra.mxu1 (!%p3051_p8), %v3379_v17  ;;  %v3052_v32 = vld [vmem:[%s4712_s8] ss:$0 sm:$0xff] (!%p3051_p8) }
 0x4e1   : > { %v2727_v22 = vadd.f32 %v2697_v60, %v4770_v55  ;;  %v2700_v18 = vadd.f32 %v2699_v19, %v2635_v36  ;;  %v3135_v35 = vpop.f32.mrb[12].mxu1 }
 0x4e2   : > { %v3136_v3 = vpop.f32.mrb[13].mxu1 }
 0x4e3   : > { %v2735_v42 = vmax.f32 %v2727_v22, 0.0  ;;  %v2728_v34 = vadd.f32 %v2700_v18, %v4771_v16  ;;  %v3137_v0 = vadd.f32 %v3136_v3, %v3135_v35  ;;  %v3138_v1 = vpop.f32.mrb[14].mxu1 }
 0x4e4   : > { %v3139_v63 = vpop.f32.mrb[15].mxu1 }
 0x4e5   : > { %2743 = vst.msk [vmem:[#allocation2] sm:$0xff] %vm641_vm4, %v2735_v42  ;;  %v2736_v51 = vmax.f32 %v2728_v34, 0.0  ;;  %v2640_v49 = vadd.f32 %v3137_v0, %v3028_v13  ;;  %v3140_v29 = vadd.f32 %v3139_v63, %v3138_v1 }
 0x4e7   : > { %2744 = vst.msk [vmem:[#allocation2 + $0x8] sm:$0xff] %vm641_vm4, %v2736_v51  ;;  %v2705_v9 = vadd.f32 %v3195_v30, %v2640_v49  ;;  %v2643_v10 = vadd.f32 %v3140_v29, %v3028_v13 }
 0x4e9   : > { %v2729_v50 = vadd.f32 %v2705_v9, %v4772_v47  ;;  %v2708_v26 = vadd.f32 %v3196_v56, %v2643_v10  ;;  %v3141_v6 = vpop.f32.mrb[16].mxu1  ;;  %v4776_v56 = vld [vmem:[#allocation14_spill] sm:$0xff] }
 0x4ea   : > { %v3142_v15 = vpop.f32.mrb[17].mxu1 }
 0x4eb   : > { %v2737_v33 = vmax.f32 %v2729_v50, 0.0  ;;  %v2730_v7 = vadd.f32 %v2708_v26, %v4773_v61  ;;  %v3143_v24 = vadd.f32 %v3142_v15, %v3141_v6  ;;  %v3144_v38 = vpop.f32.mrb[18].mxu1 }
 0x4ec   : > { %v3145_v2 = vpop.f32.mrb[19].mxu1 }
 0x4ed   : > { %2745 = vst.msk [vmem:[#allocation2 + $0x10] sm:$0xff] %vm641_vm4, %v2737_v33  ;;  %v2738_v48 = vmax.f32 %v2730_v7, 0.0  ;;  %v2648_v46 = vadd.f32 %v3143_v24, %v3028_v13  ;;  %v3146_v54 = vadd.f32 %v3145_v2, %v3144_v38 }
 0x4ef   : > { %2746 = vst.msk [vmem:[#allocation2 + $0x18] sm:$0xff] %vm641_vm4, %v2738_v48  ;;  %v2713_v20 = vadd.f32 %v2712_v43, %v2648_v46  ;;  %v2651_v44 = vadd.f32 %v3146_v54, %v3028_v13  ;;  %v2756_v27 = vpack.c.bf16 (!%p3051_p8), %v2738_v48, %v2737_v33 }
 0x4f1   : > { %v2731_v5 = vadd.f32 %v2713_v20, %v4774_v58  ;;  %v2716_v31 = vadd.f32 %v2715_v53, %v2651_v44 }
 0x4f3   : > { %v2739_v59 = vmax.f32 %v2731_v5, 0.0  ;;  %v2732_v52 = vadd.f32 %v2716_v31, %v4775_v28 }
 0x4f5   : > { %2747 = vst.msk [vmem:[#allocation2 + $0x20] sm:$0xff] %vm641_vm4, %v2739_v59  ;;  %v2740_v45 = vmax.f32 %v2732_v52, 0.0 }
 0x4f6   : > { %v3147_v40 = vpop.f32.mrb[20].mxu1 }
 0x4f7   : > { %2748 = vst.msk [vmem:[#allocation2 + $0x28] sm:$0xff] %vm641_vm4, %v2740_v45  ;;  %v3148_v11 = vpop.f32.mrb[21].mxu1 }
 0x4f8   : > { %v3149_v12 = vadd.f32 %v3148_v11, %v3147_v40  ;;  %v3150_v62 = vpop.f32.mrb[22].mxu1 }
 0x4f9   : > { %v3151_v25 = vpop.f32.mrb[23].mxu1 }
 0x4fa   : > { %v2656_v21 = vadd.f32 %v3149_v12, %v3028_v13  ;;  %v3152_v41 = vadd.f32 %v3151_v25, %v3150_v62 }
 0x4fc   : > { %v2721_v30 = vadd.f32 %v3199_v8, %v2656_v21  ;;  %v2659_v4 = vadd.f32 %v3152_v41, %v3028_v13  ;;  %v3380_v8 = vld [vmem:[%s4711_s7 + $0x8] sm:$0xff] (!%p3051_p8)   ;;  %v2757_v13 = vpack.c.bf16 (!%p3051_p8), %v2740_v45, %v2739_v59 }
 0x4fd   : > { %3203 = vmatprep.subr.bf16.mxu0 (!%p3051_p8), %v3380_v8  ;;  %3218 = vmatprep.subr.bf16.mxu1 (!%p3051_p8), %v3380_v8 }
 0x4fe   : > { %v2733_v19 = vadd.f32 %v2721_v30, %v4776_v56  ;;  %v2724_v43 = vadd.f32 %v3200_v39, %v2659_v4  ;;  %2754 = sbr.rel (%p3051_p8) target bundleno = 1506 (0x5e2), region = 64  ;;  %v2755_v39 = vpack.c.bf16 (!%p3051_p8), %v2736_v51, %v2735_v42  ;;  %3209 = vmatprep.mubr.msk.bf16.mxu1 (!%p3051_p8), %vm641_vm4, %v2757_v13  ;;  %3204 = vmatpush3.bf16.msra.mxu0 (!%p3051_p8), %v3380_v8 }
 0x4ff   : > { %3220 = vmatpush3.bf16.msra.mxu1 (!%p3051_p8), %v3380_v8 }
 0x500   : > { %v2741_v53 = vmax.f32 %v2733_v19, 0.0  ;;  %v2734_v23 = vadd.f32 %v2724_v43, %v4777_v14  ;;  %3205 = vmatprep.mubr.msk.bf16.mxu0 (!%p3051_p8), %vm641_vm4, %v2755_v39 }
 0x501   : > { %3206 = vmatmul.mubr.msk.bf16.vlgmr.msra.gmra.mrb[0].mxu0 (!%p3051_p8), %vm641_vm4, %v2756_v27 }
 0x502   : > { %2749 = vst.msk [vmem:[#allocation2 + $0x30] sm:$0xff] %vm641_vm4, %v2741_v53  ;;  %v2742_v57 = vmax.f32 %v2734_v23, 0.0 }
 0x504   : > { %2750 = vst.msk [vmem:[#allocation2 + $0x38] sm:$0xff] %vm641_vm4, %v2742_v57  ;;  %v2758_v37 = vpack.c.bf16 (!%p3051_p8), %v2742_v57, %v2741_v53 }
 0x506   : > { %3210 = vmatmul.mubr.msk.bf16.vlgmr.msra.gmra.mrb[0].mxu1 %vm641_vm4, %v2758_v37 }
 0x5d4   : > { %v3207_v60 = vpop.f32.mrb[0].mxu0 }
 0x5d5   : > { %v2837_v55 = vadd.f32 %v3207_v60, %v3052_v32  ;;  %v2828_v18 = vpop.f32.mrb[1].mxu0 }
 0x5d6   : > { %v2829_v3 = vadd.f32 %v3052_v32, %v2828_v18  ;;  %v3208_v16 = vpop.f32.mrb[2].mxu0 }
 0x5d7   : > { %v2861_v0 = vmax.f32 %v2837_v55, 0.0  ;;  %v2840_v63 = vadd.f32 %v3208_v16, %v3052_v32  ;;  %v2831_v49 = vpop.f32.mrb[3].mxu0 }
 0x5d8   : > { %v2859_v9 = vmax.f32 %v2829_v3, 0.0  ;;  %v2832_v47 = vadd.f32 %v3052_v32, %v2831_v49 }
 0x5d9   : > { %v3211_v36 = vpop.f32.mrb[0].mxu1  ;;  %2870 = vst.msk [vmem:[%s3546_s23 + $0x10] sm:$0xff] %vm2867_vm10, %v2861_v0  ;;  %v2862_v26 = vmax.f32 %v2840_v63, 0.0 }
 0x5da   : > { %v2853_v22 = vadd.f32 %v3211_v36, %v3052_v32  ;;  %v2844_v35 = vpop.f32.mrb[1].mxu1  ;;  %2868 = vst.msk [vmem:[%s3546_s23] sm:$0xff] %vm2867_vm10, %v2859_v9  ;;  %v2860_v15 = vmax.f32 %v2832_v47, 0.0 }
 0x5db   : > { %v2845_v42 = vadd.f32 %v3052_v32, %v2844_v35  ;;  %v3212_v34 = vpop.f32.mrb[2].mxu1  ;;  %2871 = vst.msk [vmem:[%s3546_s23 + $0x18] sm:$0xff] %vm2867_vm10, %v2862_v26 }
 0x5dc   : > { %v2865_v1 = vmax.f32 %v2853_v22, 0.0  ;;  %v2856_v51 = vadd.f32 %v3212_v34, %v3052_v32  ;;  %v2847_v29 = vpop.f32.mrb[3].mxu1  ;;  %2869 = vst.msk [vmem:[%s3546_s23 + $0x8] sm:$0xff] %vm2867_vm10, %v2860_v15 }
 0x5dd   : > { %v2863_v10 = vmax.f32 %v2845_v42, 0.0  ;;  %v2848_v50 = vadd.f32 %v3052_v32, %v2847_v29 }
 0x5de   : > { %2874 = vst.msk [vmem:[%s3546_s23 + $0x30] sm:$0xff] %vm2867_vm10, %v2865_v1  ;;  %v2866_v6 = vmax.f32 %v2856_v51, 0.0 }
 0x5df   : > { %2872 = vst.msk [vmem:[%s3546_s23 + $0x20] sm:$0xff] %vm2867_vm10, %v2863_v10  ;;  %v2864_v33 = vmax.f32 %v2848_v50, 0.0 }
 0x5e0   : > { %2875 = vst.msk [vmem:[%s3546_s23 + $0x38] sm:$0xff] %vm2867_vm10, %v2866_v6 }
 0x5e1   : > { %2873 = vst.msk [vmem:[%s3546_s23 + $0x28] sm:$0xff] %vm2867_vm10, %v2864_v33 }
 0x5e2 PF: > { %s19_s13 = sadd.s32 1, %s3419_s13   ;;  %s4778_s10 = sld [smem:[#allocation4_spill]] }
 0x5e3   : > { %p16_p9 = scmp.ge.s32.totalorder %s19_s13, 6   ;;  %s4779_s26 = sld [smem:[#allocation5_spill]] }
 0x5e4   : > { %s4780_s12 = sld [smem:[#allocation6_spill]]  ;;  %s4781_s30 = smov %s3411_s11 }
 0x5e5   :  { %18 = sbr.rel (!%p16_p9) target bundleno = 3 (0x3), region = 106 }
 0x5e9   : > { %s4782_s11 = smov %s4779_s26 }

</bundles_post_ra>
